<compile_context>
chip_gen: v7x
topology: tpu7x:2x2x1
jax: 0.10.0
libtpu: 0.0.40
codegen_flags: <defaults>
</compile_context>

<pallas_src>
import functools
import math

import jax
import jax.numpy as jnp
from jax.experimental import pallas as pl
from jax.experimental.pallas import tpu as pltpu

EPS = 1e-5                      # nn.LayerNorm default eps
SQRT2_INV = 1.0 / math.sqrt(2.0)

# Gate: cast matmul operands to bf16 (f32 accumulation) for ~2x MXU throughput on v6e/v7x
# and half the weight/activation DMA bytes.  Off by default = exact f32 PyTorch parity.
USE_BF16_MATMUL = False

_VMEM_LIMIT_BYTES = 32 * 1024 * 1024


# ----------------------------- in-kernel helpers ---------------------------- #

def _dot(a, b, dn=None):
    """Matmul with optional bf16 operand cast; always f32 accumulation."""
    if USE_BF16_MATMUL:
        a = a.astype(jnp.bfloat16)
        b = b.astype(jnp.bfloat16)
    if dn is None:
        return jnp.dot(a, b, preferred_element_type=jnp.float32)
    return jax.lax.dot_general(a, b, dn, preferred_element_type=jnp.float32)


def _layernorm_f32(x, g, b):
    mean = jnp.mean(x, axis=-1, keepdims=True)
    var = jnp.mean(jnp.square(x - mean), axis=-1, keepdims=True)
    return (x - mean) * jax.lax.rsqrt(var + EPS) * g + b


def _gelu_exact(x):
    # PyTorch nn.GELU default (approximate='none')
    return 0.5 * x * (1.0 + jax.lax.erf(x * SQRT2_INV))


# ----------------------------- Pallas kernels ------------------------------ #

def _nat_attn_block_kernel(x_ref, g_ref, b_ref, qw_ref, qb_ref, bias_ref,
                           pw_ref, pb_ref, o_ref, *, num_heads, scale):
    """Whole attention branch for one batch element.

    x_ref   : (1, L, C)  residual / LN1 input
    bias_ref: (num_heads, L, L) neighborhood mask + relative-position bias (VMEM-resident)
    o_ref   : (1, L, C)  = x + proj(attention(LN1(x)))   -- single lane-dense store
    """
    L = x_ref.shape[1]
    C = x_ref.shape[2]
    Dh = C // num_heads

    x = x_ref[0].astype(jnp.float32)                                  # (L, C)
    xn = _layernorm_f32(x, g_ref[...].astype(jnp.float32),
                        b_ref[...].astype(jnp.float32))
    qkv = _dot(xn, qw_ref[...].astype(jnp.float32)) \
        + qb_ref[...].astype(jnp.float32)                             # (L, 3C)

    # Accumulate the output projection head-by-head:
    #   proj(concat_h(o_h)) == sum_h o_h @ proj_w[h*Dh:(h+1)*Dh, :]
    # -> no (L, Dh) masked column stores; the only store is the final (L, C) one.
    y = jnp.zeros((L, C), jnp.float32)
    for h in range(num_heads):                                        # static unrolled
        q = qkv[:, h * Dh:(h + 1) * Dh] * scale                       # (L, Dh)
        k = qkv[:, C + h * Dh:C + (h + 1) * Dh]                       # (L, Dh)
        v = qkv[:, 2 * C + h * Dh:2 * C + (h + 1) * Dh]               # (L, Dh)
        s = _dot(q, k, dn=(((1,), (1,)), ((), ())))                   # q @ k^T  (L, L)
        s = s + bias_ref[h].astype(jnp.float32)
        s = s - jnp.max(s, axis=-1, keepdims=True)
        p = jnp.exp(s)
        denom = jnp.sum(p, axis=-1, keepdims=True)
        o = _dot(p, v) / denom                                        # exact softmax (L, Dh)
        y = y + _dot(o, pw_ref[h * Dh:(h + 1) * Dh, :].astype(jnp.float32))

    y = y + pb_ref[...].astype(jnp.float32)
    o_ref[0] = (x + y).astype(o_ref.dtype)


def nat_attn_block(x, ln_g, ln_b, qkv_w, qkv_b, bias, proj_w, proj_b,
                   *, num_heads, scale):
    # x: (B, L, C), bias: (num_heads, L, L)
    B, L, C = x.shape
    nh = bias.shape[0]
    kernel = functools.partial(_nat_attn_block_kernel, num_heads=num_heads, scale=scale)
    return pl.pallas_call(
        kernel,
        out_shape=jax.ShapeDtypeStruct((B, L, C), x.dtype),
        grid=(B,),
        in_specs=[
            pl.BlockSpec((1, L, C), lambda b: (b, 0, 0)),             # x (per batch)
            pl.BlockSpec((1, C), lambda b: (0, 0)),                   # ln1 gamma (resident)
            pl.BlockSpec((1, C), lambda b: (0, 0)),                   # ln1 beta
            pl.BlockSpec((C, 3 * C), lambda b: (0, 0)),               # qkv weight
            pl.BlockSpec((1, 3 * C), lambda b: (0, 0)),               # qkv bias
            pl.BlockSpec((nh, L, L), lambda b: (0, 0, 0)),            # NAT bias (resident)
            pl.BlockSpec((C, C), lambda b: (0, 0)),                   # proj weight
            pl.BlockSpec((1, C), lambda b: (0, 0)),                   # proj bias
        ],
        out_specs=pl.BlockSpec((1, L, C), lambda b: (b, 0, 0)),
        input_output_aliases={0: 0},                                  # residual reused in place
        compiler_params=pltpu.CompilerParams(
            dimension_semantics=("parallel",),
            vmem_limit_bytes=_VMEM_LIMIT_BYTES),
    )(x, ln_g, ln_b, qkv_w, qkv_b, bias, proj_w, proj_b)


def _ln_mlp_residual_kernel(x_ref, g_ref, b_ref, w1_ref, b1_ref, w2_ref, b2_ref, o_ref):
    """Fused LayerNorm + MLP (fc1 -> GELU -> fc2) + residual add.

    GELU intermediate never leaves VMEM/vregs.
    """
    x = x_ref[...].astype(jnp.float32)
    xn = _layernorm_f32(x, g_ref[...].astype(jnp.float32),
                        b_ref[...].astype(jnp.float32))
    h = _dot(xn, w1_ref[...].astype(jnp.float32)) + b1_ref[...].astype(jnp.float32)
    h = _gelu_exact(h)
    y = _dot(h, w2_ref[...].astype(jnp.float32)) + b2_ref[...].astype(jnp.float32)
    o_ref[...] = (x + y).astype(o_ref.dtype)


def ln_mlp_residual(x, g, b, w1, b1, w2, b2, *, block_rows=512):
    N, C = x.shape
    Hd = w1.shape[1]
    tm = min(block_rows, N)
    return pl.pallas_call(
        _ln_mlp_residual_kernel,
        out_shape=jax.ShapeDtypeStruct((N, C), x.dtype),
        grid=(pl.cdiv(N, tm),),
        in_specs=[pl.BlockSpec((tm, C), lambda i: (i, 0)),
                  pl.BlockSpec((1, C), lambda i: (0, 0)),
                  pl.BlockSpec((1, C), lambda i: (0, 0)),
                  pl.BlockSpec((C, Hd), lambda i: (0, 0)),
                  pl.BlockSpec((1, Hd), lambda i: (0, 0)),
                  pl.BlockSpec((Hd, C), lambda i: (0, 0)),
                  pl.BlockSpec((1, C), lambda i: (0, 0))],
        out_specs=pl.BlockSpec((tm, C), lambda i: (i, 0)),
        input_output_aliases={0: 0},                                  # residual reused in place
        compiler_params=pltpu.CompilerParams(
            dimension_semantics=("parallel",),
            vmem_limit_bytes=_VMEM_LIMIT_BYTES),
    )(x, g, b, w1, b1, w2, b2)


# ---------------------------- JAX glue / params ---------------------------- #

def build_nat_bias(rpb, H, W, k):
    """Dense (num_heads, H*W, H*W) additive bias encoding NAT neighborhood + rel-pos bias.

    Depends only on parameters (rpb) and (H, W) -> computed once per layer, never per batch.
    """
    nh = k // 2
    ii = jnp.arange(H)
    jj = jnp.arange(W)
    si = jnp.clip(ii - nh, 0, H - k)                        # neighborhood row start per query row
    sj = jnp.clip(jj - nh, 0, W - k)                        # neighborhood col start per query col
    qi = ii[:, None, None, None]
    qj = jj[None, :, None, None]
    ki = ii[None, None, :, None]
    kj = jj[None, None, None, :]
    in_row = (ki >= si[:, None, None, None]) & (ki < si[:, None, None, None] + k)
    in_col = (kj >= sj[None, :, None, None]) & (kj < sj[None, :, None, None] + k)
    mask = in_row & in_col                                   # (H, W, H, W)
    ri = jnp.clip(ki - qi + k - 1, 0, 2 * k - 2)
    rj = jnp.clip(kj - qj + k - 1, 0, 2 * k - 2)
    bias = rpb[:, ri, rj]                                    # (num_heads, H, W, H, W)
    bias = jnp.where(mask[None], bias, jnp.float32(-1e30))
    return bias.reshape(rpb.shape[0], H * W, H * W)


def init_nat_layer_params(key, dim, num_heads, kernel_size, mlp_ratio):
    hidden = int(dim * mlp_ratio)
    ks = jax.random.split(key, 5)

    def lin_w(k, fan_in, fan_out):
        return jax.random.normal(k, (fan_in, fan_out), jnp.float32) * 0.02

    return dict(
        ln1_w=jnp.ones((1, dim), jnp.float32),
        ln1_b=jnp.zeros((1, dim), jnp.float32),
        qkv_w=lin_w(ks[0], dim, 3 * dim),
        qkv_b=jnp.zeros((1, 3 * dim), jnp.float32),
        rpb=jax.random.normal(ks[1], (num_heads, 2 * kernel_size - 1, 2 * kernel_size - 1),
                              jnp.float32) * 0.02,
        proj_w=lin_w(ks[2], dim, dim),
        proj_b=jnp.zeros((1, dim), jnp.float32),
        ln2_w=jnp.ones((1, dim), jnp.float32),
        ln2_b=jnp.zeros((1, dim), jnp.float32),
        fc1_w=lin_w(ks[3], dim, hidden),
        fc1_b=jnp.zeros((1, hidden), jnp.float32),
        fc2_w=lin_w(ks[4], hidden, dim),
        fc2_b=jnp.zeros((1, dim), jnp.float32),
    )


def nat_layer_forward(x, p, bias, num_heads, scale):
    # x: (B, H, W, C). dropout / attn_drop / drop_path are p=0.0 -> identity; layer_scale=None.
    B, H, W, C = x.shape
    L = H * W

    # --- attention branch: LN1 + QKV + NAT attention + proj + residual in ONE kernel ---
    xb = nat_attn_block(x.reshape(B, L, C),
                        p["ln1_w"], p["ln1_b"], p["qkv_w"], p["qkv_b"],
                        bias, p["proj_w"], p["proj_b"],
                        num_heads=num_heads, scale=scale)              # (B, L, C)

    # --- MLP branch: LN2 + FC1 + GELU + FC2 + residual in one row-tiled kernel ---
    xf = ln_mlp_residual(xb.reshape(B * L, C), p["ln2_w"], p["ln2_b"],
                         p["fc1_w"], p["fc1_b"], p["fc2_w"], p["fc2_b"])
    return xf.reshape(B, H, W, C)


def basic_layer_forward(x, params, biases, num_heads, scale):
    # BasicLayer_up: sequential NATLayer blocks; upsample=None here.
    # TODO(synk): torch.utils.checkpoint is a training-memory optimization; forward math unchanged.
    for p, b in zip(params, biases):
        x = nat_layer_forward(x, p, b, num_heads, scale)
    return x


# --------------------------------- main ------------------------------------ #

if __name__ == "__main__":
    B, H, W = 2, 8, 8
    dim, depth, num_heads = 32, 2, 2
    kernel_size, mlp_ratio = 7, 4.0
    head_dim = dim // num_heads
    scale = head_dim ** -0.5

    key = jax.random.PRNGKey(0)
    kx, *kblocks = jax.random.split(key, depth + 1)
    x = jax.random.normal(kx, (B, H, W, dim), jnp.float32)

    params = [init_nat_layer_params(kb, dim, num_heads, kernel_size, mlp_ratio)
              for kb in kblocks]
    biases = [build_nat_bias(p["rpb"], H, W, kernel_size) for p in params]

    fwd = jax.jit(functools.partial(basic_layer_forward, num_heads=num_heads, scale=scale))
    out = fwd(x, params, biases)
    jax.block_until_ready(out)

    assert out.shape == (B, H, W, dim), out.shape
    assert bool(jnp.all(jnp.isfinite(out)))
    print("KERNEL_OK")
</pallas_src>

<mosaic_0001>
module attributes {stable_mosaic.version = 11 : i64} {
  func.func @_ln_mlp_residual_kernel(%arg0: i32, %arg1: memref<128x32xf32, #tpu.memory_space<vmem>>, %arg2: memref<1x32xf32, #tpu.memory_space<vmem>>, %arg3: memref<1x32xf32, #tpu.memory_space<vmem>>, %arg4: memref<32x128xf32, #tpu.memory_space<vmem>>, %arg5: memref<1x128xf32, #tpu.memory_space<vmem>>, %arg6: memref<128x32xf32, #tpu.memory_space<vmem>>, %arg7: memref<1x32xf32, #tpu.memory_space<vmem>>, %arg8: memref<128x32xf32, #tpu.memory_space<vmem>>) attributes {dimension_semantics = [#tpu.dimension_semantics<parallel>], iteration_bounds = array<i64: 1>, scalar_prefetch = 0 : i64, scratch_operands = 0 : i64, tpu.core_type = #tpu.core_type<tc>, window_params = [{transform_indices = @transform_0, window_bounds = array<i64: 128, 32>}, {pipeline_mode = #tpu.pipeline_mode<synchronous>, transform_indices = @transform_1, window_bounds = array<i64: 1, 32>}, {pipeline_mode = #tpu.pipeline_mode<synchronous>, transform_indices = @transform_2, window_bounds = array<i64: 1, 32>}, {pipeline_mode = #tpu.pipeline_mode<synchronous>, transform_indices = @transform_3, window_bounds = array<i64: 32, 128>}, {pipeline_mode = #tpu.pipeline_mode<synchronous>, transform_indices = @transform_4, window_bounds = array<i64: 1, 128>}, {pipeline_mode = #tpu.pipeline_mode<synchronous>, transform_indices = @transform_5, window_bounds = array<i64: 128, 32>}, {pipeline_mode = #tpu.pipeline_mode<synchronous>, transform_indices = @transform_6, window_bounds = array<i64: 1, 32>}, {transform_indices = @transform_7, window_bounds = array<i64: 128, 32>}]} {
    %c0 = arith.constant 0 : index
    %c0_0 = arith.constant 0 : index
    %0 = vector.load %arg1[%c0, %c0_0] : memref<128x32xf32, #tpu.memory_space<vmem>>, vector<128x32xf32>
    %c0_1 = arith.constant 0 : index
    %c0_2 = arith.constant 0 : index
    %1 = vector.load %arg2[%c0_1, %c0_2] : memref<1x32xf32, #tpu.memory_space<vmem>>, vector<1x32xf32>
    %c0_3 = arith.constant 0 : index
    %c0_4 = arith.constant 0 : index
    %2 = vector.load %arg3[%c0_3, %c0_4] : memref<1x32xf32, #tpu.memory_space<vmem>>, vector<1x32xf32>
    %cst = arith.constant dense<0.000000e+00> : vector<128xf32>
    %3 = vector.multi_reduction <add>, %0, %cst [1] : vector<128x32xf32> to vector<128xf32>
    %4 = vector.shape_cast %3 : vector<128xf32> to vector<128x1xf32>
    %cst_5 = arith.constant 3.200000e+01 : f32
    %5 = vector.broadcast %cst_5 : f32 to vector<128x1xf32>
    %6 = arith.divf %4, %5 : vector<128x1xf32>
    %7 = vector.broadcast %6 : vector<128x1xf32> to vector<128x32xf32>
    %8 = arith.subf %0, %7 : vector<128x32xf32>
    %9 = arith.mulf %8, %8 : vector<128x32xf32>
    %cst_6 = arith.constant dense<0.000000e+00> : vector<128xf32>
    %10 = vector.multi_reduction <add>, %9, %cst_6 [1] : vector<128x32xf32> to vector<128xf32>
    %11 = vector.shape_cast %10 : vector<128xf32> to vector<128x1xf32>
    %cst_7 = arith.constant 3.200000e+01 : f32
    %12 = vector.broadcast %cst_7 : f32 to vector<128x1xf32>
    %13 = arith.divf %11, %12 : vector<128x1xf32>
    %14 = vector.broadcast %6 : vector<128x1xf32> to vector<128x32xf32>
    %15 = arith.subf %0, %14 : vector<128x32xf32>
    %cst_8 = arith.constant 9.99999974E-6 : f32
    %16 = vector.broadcast %cst_8 : f32 to vector<128x1xf32>
    %17 = arith.addf %13, %16 : vector<128x1xf32>
    %18 = math.rsqrt %17 : vector<128x1xf32>
    %19 = vector.broadcast %18 : vector<128x1xf32> to vector<128x32xf32>
    %20 = arith.mulf %15, %19 : vector<128x32xf32>
    %21 = vector.broadcast %1 : vector<1x32xf32> to vector<128x32xf32>
    %22 = arith.mulf %20, %21 : vector<128x32xf32>
    %23 = vector.broadcast %2 : vector<1x32xf32> to vector<128x32xf32>
    %24 = arith.addf %22, %23 : vector<128x32xf32>
    %c0_9 = arith.constant 0 : index
    %c0_10 = arith.constant 0 : index
    %25 = vector.load %arg4[%c0_9, %c0_10] : memref<32x128xf32, #tpu.memory_space<vmem>>, vector<32x128xf32>
    %cst_11 = arith.constant dense<0.000000e+00> : vector<128x128xf32>
    %26 = tpu.matmul %24, %25, %cst_11 {dimension_numbers = #tpu.dot_dimension_numbers<[1], [0], [0], [1], [0, 0, 1, 1], [], []>} : vector<128x32xf32>, vector<32x128xf32>, vector<128x128xf32> -> vector<128x128xf32>
    %c0_12 = arith.constant 0 : index
    %c0_13 = arith.constant 0 : index
    %27 = vector.load %arg5[%c0_12, %c0_13] : memref<1x128xf32, #tpu.memory_space<vmem>>, vector<1x128xf32>
    %28 = vector.broadcast %27 : vector<1x128xf32> to vector<128x128xf32>
    %29 = arith.addf %26, %28 : vector<128x128xf32>
    %cst_14 = arith.constant 5.000000e-01 : f32
    %30 = vector.broadcast %cst_14 : f32 to vector<128x128xf32>
    %31 = arith.mulf %30, %29 : vector<128x128xf32>
    %cst_15 = arith.constant 0.707106769 : f32
    %32 = vector.broadcast %cst_15 : f32 to vector<128x128xf32>
    %33 = arith.mulf %29, %32 : vector<128x128xf32>
    %34 = math.erf %33 : vector<128x128xf32>
    %cst_16 = arith.constant 1.000000e+00 : f32
    %35 = vector.broadcast %cst_16 : f32 to vector<128x128xf32>
    %36 = arith.addf %35, %34 : vector<128x128xf32>
    %37 = arith.mulf %31, %36 : vector<128x128xf32>
    %c0_17 = arith.constant 0 : index
    %c0_18 = arith.constant 0 : index
    %38 = vector.load %arg6[%c0_17, %c0_18] : memref<128x32xf32, #tpu.memory_space<vmem>>, vector<128x32xf32>
    %cst_19 = arith.constant dense<0.000000e+00> : vector<128x32xf32>
    %39 = tpu.matmul %37, %38, %cst_19 {dimension_numbers = #tpu.dot_dimension_numbers<[1], [0], [0], [1], [0, 0, 1, 1], [], []>} : vector<128x128xf32>, vector<128x32xf32>, vector<128x32xf32> -> vector<128x32xf32>
    %c0_20 = arith.constant 0 : index
    %c0_21 = arith.constant 0 : index
    %40 = vector.load %arg7[%c0_20, %c0_21] : memref<1x32xf32, #tpu.memory_space<vmem>>, vector<1x32xf32>
    %41 = vector.broadcast %40 : vector<1x32xf32> to vector<128x32xf32>
    %42 = arith.addf %39, %41 : vector<128x32xf32>
    %43 = arith.addf %0, %42 : vector<128x32xf32>
    %c0_22 = arith.constant 0 : index
    %c0_23 = arith.constant 0 : index
    %44 = vector.load %arg8[%c0_22, %c0_23] : memref<128x32xf32, #tpu.memory_space<vmem>>, vector<128x32xf32>
    tpu.vector_store %arg8[%c0_22, %c0_23], %43 {strides = array<i32>} : memref<128x32xf32, #tpu.memory_space<vmem>>, vector<128x32xf32>,
    return
  }
  func.func @transform_0(%arg0: i32) -> (i32, i32) {
    %c0_i32 = arith.constant 0 : i32
    %c0_i32_0 = arith.constant 0 : i32
    return %arg0, %c0_i32 : i32, i32
  }
  func.func @transform_1(%arg0: i32) -> (i32, i32) {
    %c0_i32 = arith.constant 0 : i32
    %c0_i32_0 = arith.constant 0 : i32
    %c0_i32_1 = arith.constant 0 : i32
    return %c0_i32, %c0_i32_0 : i32, i32
  }
  func.func @transform_2(%arg0: i32) -> (i32, i32) {
    %c0_i32 = arith.constant 0 : i32
    %c0_i32_0 = arith.constant 0 : i32
    %c0_i32_1 = arith.constant 0 : i32
    return %c0_i32, %c0_i32_0 : i32, i32
  }
  func.func @transform_3(%arg0: i32) -> (i32, i32) {
    %c0_i32 = arith.constant 0 : i32
    %c0_i32_0 = arith.constant 0 : i32
    %c0_i32_1 = arith.constant 0 : i32
    return %c0_i32, %c0_i32_0 : i32, i32
  }
  func.func @transform_4(%arg0: i32) -> (i32, i32) {
    %c0_i32 = arith.constant 0 : i32
    %c0_i32_0 = arith.constant 0 : i32
    %c0_i32_1 = arith.constant 0 : i32
    return %c0_i32, %c0_i32_0 : i32, i32
  }
  func.func @transform_5(%arg0: i32) -> (i32, i32) {
    %c0_i32 = arith.constant 0 : i32
    %c0_i32_0 = arith.constant 0 : i32
    %c0_i32_1 = arith.constant 0 : i32
    return %c0_i32, %c0_i32_0 : i32, i32
  }
  func.func @transform_6(%arg0: i32) -> (i32, i32) {
    %c0_i32 = arith.constant 0 : i32
    %c0_i32_0 = arith.constant 0 : i32
    %c0_i32_1 = arith.constant 0 : i32
    return %c0_i32, %c0_i32_0 : i32, i32
  }
  func.func @transform_7(%arg0: i32) -> (i32, i32) {
    %c0_i32 = arith.constant 0 : i32
    %c0_i32_0 = arith.constant 0 : i32
    return %arg0, %c0_i32 : i32, i32
  }
}

module attributes {stable_mosaic.version = 11 : i64} {
  func.func @_nat_attn_block_kernel(%arg0: i32, %arg1: memref<1x64x32xf32, #tpu.memory_space<vmem>>, %arg2: memref<1x32xf32, #tpu.memory_space<vmem>>, %arg3: memref<1x32xf32, #tpu.memory_space<vmem>>, %arg4: memref<32x96xf32, #tpu.memory_space<vmem>>, %arg5: memref<1x96xf32, #tpu.memory_space<vmem>>, %arg6: memref<2x64x64xf32, #tpu.memory_space<vmem>>, %arg7: memref<32x32xf32, #tpu.memory_space<vmem>>, %arg8: memref<1x32xf32, #tpu.memory_space<vmem>>, %arg9: memref<1x64x32xf32, #tpu.memory_space<vmem>>) attributes {dimension_semantics = [#tpu.dimension_semantics<parallel>], iteration_bounds = array<i64: 2>, scalar_prefetch = 0 : i64, scratch_operands = 0 : i64, tpu.core_type = #tpu.core_type<tc>, window_params = [{transform_indices = @transform_0, window_bounds = array<i64: 1, 64, 32>}, {pipeline_mode = #tpu.pipeline_mode<synchronous>, transform_indices = @transform_1, window_bounds = array<i64: 1, 32>}, {pipeline_mode = #tpu.pipeline_mode<synchronous>, transform_indices = @transform_2, window_bounds = array<i64: 1, 32>}, {pipeline_mode = #tpu.pipeline_mode<synchronous>, transform_indices = @transform_3, window_bounds = array<i64: 32, 96>}, {pipeline_mode = #tpu.pipeline_mode<synchronous>, transform_indices = @transform_4, window_bounds = array<i64: 1, 96>}, {pipeline_mode = #tpu.pipeline_mode<synchronous>, transform_indices = @transform_5, window_bounds = array<i64: 2, 64, 64>}, {pipeline_mode = #tpu.pipeline_mode<synchronous>, transform_indices = @transform_6, window_bounds = array<i64: 32, 32>}, {pipeline_mode = #tpu.pipeline_mode<synchronous>, transform_indices = @transform_7, window_bounds = array<i64: 1, 32>}, {transform_indices = @transform_8, window_bounds = array<i64: 1, 64, 32>}]} {
    %c0 = arith.constant 0 : index
    %c0_0 = arith.constant 0 : index
    %c0_1 = arith.constant 0 : index
    %0 = vector.load %arg1[%c0, %c0_0, %c0_1] : memref<1x64x32xf32, #tpu.memory_space<vmem>>, vector<1x64x32xf32>
    %1 = vector.shape_cast %0 : vector<1x64x32xf32> to vector<64x32xf32>
    %c0_2 = arith.constant 0 : index
    %c0_3 = arith.constant 0 : index
    %2 = vector.load %arg2[%c0_2, %c0_3] : memref<1x32xf32, #tpu.memory_space<vmem>>, vector<1x32xf32>
    %c0_4 = arith.constant 0 : index
    %c0_5 = arith.constant 0 : index
    %3 = vector.load %arg3[%c0_4, %c0_5] : memref<1x32xf32, #tpu.memory_space<vmem>>, vector<1x32xf32>
    %cst = arith.constant dense<0.000000e+00> : vector<64xf32>
    %4 = vector.multi_reduction <add>, %1, %cst [1] : vector<64x32xf32> to vector<64xf32>
    %5 = vector.shape_cast %4 : vector<64xf32> to vector<64x1xf32>
    %cst_6 = arith.constant 3.200000e+01 : f32
    %6 = vector.broadcast %cst_6 : f32 to vector<64x1xf32>
    %7 = arith.divf %5, %6 : vector<64x1xf32>
    %8 = vector.broadcast %7 : vector<64x1xf32> to vector<64x32xf32>
    %9 = arith.subf %1, %8 : vector<64x32xf32>
    %10 = arith.mulf %9, %9 : vector<64x32xf32>
    %cst_7 = arith.constant dense<0.000000e+00> : vector<64xf32>
    %11 = vector.multi_reduction <add>, %10, %cst_7 [1] : vector<64x32xf32> to vector<64xf32>
    %12 = vector.shape_cast %11 : vector<64xf32> to vector<64x1xf32>
    %cst_8 = arith.constant 3.200000e+01 : f32
    %13 = vector.broadcast %cst_8 : f32 to vector<64x1xf32>
    %14 = arith.divf %12, %13 : vector<64x1xf32>
    %15 = vector.broadcast %7 : vector<64x1xf32> to vector<64x32xf32>
    %16 = arith.subf %1, %15 : vector<64x32xf32>
    %cst_9 = arith.constant 9.99999974E-6 : f32
    %17 = vector.broadcast %cst_9 : f32 to vector<64x1xf32>
    %18 = arith.addf %14, %17 : vector<64x1xf32>
    %19 = math.rsqrt %18 : vector<64x1xf32>
    %20 = vector.broadcast %19 : vector<64x1xf32> to vector<64x32xf32>
    %21 = arith.mulf %16, %20 : vector<64x32xf32>
    %22 = vector.broadcast %2 : vector<1x32xf32> to vector<64x32xf32>
    %23 = arith.mulf %21, %22 : vector<64x32xf32>
    %24 = vector.broadcast %3 : vector<1x32xf32> to vector<64x32xf32>
    %25 = arith.addf %23, %24 : vector<64x32xf32>
    %c0_10 = arith.constant 0 : index
    %c0_11 = arith.constant 0 : index
    %26 = vector.load %arg4[%c0_10, %c0_11] : memref<32x96xf32, #tpu.memory_space<vmem>>, vector<32x96xf32>
    %cst_12 = arith.constant dense<0.000000e+00> : vector<64x96xf32>
    %27 = tpu.matmul %25, %26, %cst_12 {dimension_numbers = #tpu.dot_dimension_numbers<[1], [0], [0], [1], [0, 0, 1, 1], [], []>} : vector<64x32xf32>, vector<32x96xf32>, vector<64x96xf32> -> vector<64x96xf32>
    %c0_13 = arith.constant 0 : index
    %c0_14 = arith.constant 0 : index
    %28 = vector.load %arg5[%c0_13, %c0_14] : memref<1x96xf32, #tpu.memory_space<vmem>>, vector<1x96xf32>
    %29 = vector.broadcast %28 : vector<1x96xf32> to vector<64x96xf32>
    %30 = arith.addf %27, %29 : vector<64x96xf32>
    %cst_15 = arith.constant 0.000000e+00 : f32
    %31 = vector.broadcast %cst_15 : f32 to vector<64x32xf32>
    %32 = vector.extract_strided_slice %30 {offsets = [0, 0], sizes = [64, 16], strides = [1, 1]} : vector<64x96xf32> to vector<64x16xf32>
    %cst_16 = arith.constant 2.500000e-01 : f32
    %33 = vector.broadcast %cst_16 : f32 to vector<64x16xf32>
    %34 = arith.mulf %32, %33 : vector<64x16xf32>
    %35 = vector.extract_strided_slice %30 {offsets = [0, 32], sizes = [64, 16], strides = [1, 1]} : vector<64x96xf32> to vector<64x16xf32>
    %36 = vector.extract_strided_slice %30 {offsets = [0, 64], sizes = [64, 16], strides = [1, 1]} : vector<64x96xf32> to vector<64x16xf32>
    %cst_17 = arith.constant dense<0.000000e+00> : vector<64x64xf32>
    %37 = tpu.matmul %34, %35, %cst_17 {dimension_numbers = #tpu.dot_dimension_numbers<[1], [1], [0], [0], [0, 0, 1, 0], [], []>} : vector<64x16xf32>, vector<64x16xf32>, vector<64x64xf32> -> vector<64x64xf32>
    %c0_18 = arith.constant 0 : index
    %c0_19 = arith.constant 0 : index
    %c0_20 = arith.constant 0 : index
    %38 = vector.load %arg6[%c0_18, %c0_19, %c0_20] : memref<2x64x64xf32, #tpu.memory_space<vmem>>, vector<1x64x64xf32>
    %39 = vector.shape_cast %38 : vector<1x64x64xf32> to vector<64x64xf32>
    %40 = arith.addf %37, %39 : vector<64x64xf32>
    %cst_21 = arith.constant dense<0xFF800000> : vector<64xf32>
    %41 = vector.multi_reduction <maximumf>, %40, %cst_21 [1] : vector<64x64xf32> to vector<64xf32>
    %42 = vector.shape_cast %41 : vector<64xf32> to vector<64x1xf32>
    %43 = vector.broadcast %42 : vector<64x1xf32> to vector<64x64xf32>
    %44 = arith.subf %40, %43 : vector<64x64xf32>
    %45 = math.exp %44 : vector<64x64xf32>
    %cst_22 = arith.constant dense<0.000000e+00> : vector<64xf32>
    %46 = vector.multi_reduction <add>, %45, %cst_22 [1] : vector<64x64xf32> to vector<64xf32>
    %47 = vector.shape_cast %46 : vector<64xf32> to vector<64x1xf32>
    %cst_23 = arith.constant dense<0.000000e+00> : vector<64x16xf32>
    %48 = tpu.matmul %45, %36, %cst_23 {dimension_numbers = #tpu.dot_dimension_numbers<[1], [0], [0], [1], [0, 0, 1, 1], [], []>} : vector<64x64xf32>, vector<64x16xf32>, vector<64x16xf32> -> vector<64x16xf32>
    %49 = vector.broadcast %47 : vector<64x1xf32> to vector<64x16xf32>
    %50 = arith.divf %48, %49 : vector<64x16xf32>
    %c0_24 = arith.constant 0 : index
    %c0_25 = arith.constant 0 : index
    %51 = vector.load %arg7[%c0_24, %c0_25] : memref<32x32xf32, #tpu.memory_space<vmem>>, vector<16x32xf32>
    %cst_26 = arith.constant dense<0.000000e+00> : vector<64x32xf32>
    %52 = tpu.matmul %50, %51, %cst_26 {dimension_numbers = #tpu.dot_dimension_numbers<[1], [0], [0], [1], [0, 0, 1, 1], [], []>} : vector<64x16xf32>, vector<16x32xf32>, vector<64x32xf32> -> vector<64x32xf32>
    %53 = arith.addf %31, %52 : vector<64x32xf32>
    %54 = vector.extract_strided_slice %30 {offsets = [0, 16], sizes = [64, 16], strides = [1, 1]} : vector<64x96xf32> to vector<64x16xf32>
    %cst_27 = arith.constant 2.500000e-01 : f32
    %55 = vector.broadcast %cst_27 : f32 to vector<64x16xf32>
    %56 = arith.mulf %54, %55 : vector<64x16xf32>
    %57 = vector.extract_strided_slice %30 {offsets = [0, 48], sizes = [64, 16], strides = [1, 1]} : vector<64x96xf32> to vector<64x16xf32>
    %58 = vector.extract_strided_slice %30 {offsets = [0, 80], sizes = [64, 16], strides = [1, 1]} : vector<64x96xf32> to vector<64x16xf32>
    %cst_28 = arith.constant dense<0.000000e+00> : vector<64x64xf32>
    %59 = tpu.matmul %56, %57, %cst_28 {dimension_numbers = #tpu.dot_dimension_numbers<[1], [1], [0], [0], [0, 0, 1, 0], [], []>} : vector<64x16xf32>, vector<64x16xf32>, vector<64x64xf32> -> vector<64x64xf32>
    %c1 = arith.constant 1 : index
    %c0_29 = arith.constant 0 : index
    %c0_30 = arith.constant 0 : index
    %60 = vector.load %arg6[%c1, %c0_29, %c0_30] : memref<2x64x64xf32, #tpu.memory_space<vmem>>, vector<1x64x64xf32>
    %61 = vector.shape_cast %60 : vector<1x64x64xf32> to vector<64x64xf32>
    %62 = arith.addf %59, %61 : vector<64x64xf32>
    %cst_31 = arith.constant dense<0xFF800000> : vector<64xf32>
    %63 = vector.multi_reduction <maximumf>, %62, %cst_31 [1] : vector<64x64xf32> to vector<64xf32>
    %64 = vector.shape_cast %63 : vector<64xf32> to vector<64x1xf32>
    %65 = vector.broadcast %64 : vector<64x1xf32> to vector<64x64xf32>
    %66 = arith.subf %62, %65 : vector<64x64xf32>
    %67 = math.exp %66 : vector<64x64xf32>
    %cst_32 = arith.constant dense<0.000000e+00> : vector<64xf32>
    %68 = vector.multi_reduction <add>, %67, %cst_32 [1] : vector<64x64xf32> to vector<64xf32>
    %69 = vector.shape_cast %68 : vector<64xf32> to vector<64x1xf32>
    %cst_33 = arith.constant dense<0.000000e+00> : vector<64x16xf32>
    %70 = tpu.matmul %67, %58, %cst_33 {dimension_numbers = #tpu.dot_dimension_numbers<[1], [0], [0], [1], [0, 0, 1, 1], [], []>} : vector<64x64xf32>, vector<64x16xf32>, vector<64x16xf32> -> vector<64x16xf32>
    %71 = vector.broadcast %69 : vector<64x1xf32> to vector<64x16xf32>
    %72 = arith.divf %70, %71 : vector<64x16xf32>
    %c16 = arith.constant 16 : index
    %c0_34 = arith.constant 0 : index
    %73 = vector.load %arg7[%c16, %c0_34] : memref<32x32xf32, #tpu.memory_space<vmem>>, vector<16x32xf32>
    %cst_35 = arith.constant dense<0.000000e+00> : vector<64x32xf32>
    %74 = tpu.matmul %72, %73, %cst_35 {dimension_numbers = #tpu.dot_dimension_numbers<[1], [0], [0], [1], [0, 0, 1, 1], [], []>} : vector<64x16xf32>, vector<16x32xf32>, vector<64x32xf32> -> vector<64x32xf32>
    %75 = arith.addf %53, %74 : vector<64x32xf32>
    %c0_36 = arith.constant 0 : index
    %c0_37 = arith.constant 0 : index
    %76 = vector.load %arg8[%c0_36, %c0_37] : memref<1x32xf32, #tpu.memory_space<vmem>>, vector<1x32xf32>
    %77 = vector.broadcast %76 : vector<1x32xf32> to vector<64x32xf32>
    %78 = arith.addf %75, %77 : vector<64x32xf32>
    %79 = arith.addf %1, %78 : vector<64x32xf32>
    %c0_38 = arith.constant 0 : index
    %c0_39 = arith.constant 0 : index
    %c0_40 = arith.constant 0 : index
    %80 = vector.load %arg9[%c0_38, %c0_39, %c0_40] : memref<1x64x32xf32, #tpu.memory_space<vmem>>, vector<1x64x32xf32>
    %81 = vector.shape_cast %80 : vector<1x64x32xf32> to vector<64x32xf32>
    %82 = vector.shape_cast %79 : vector<64x32xf32> to vector<1x64x32xf32>
    tpu.vector_store %arg9[%c0_38, %c0_39, %c0_40], %82 {strides = array<i32>} : memref<1x64x32xf32, #tpu.memory_space<vmem>>, vector<1x64x32xf32>,
    return
  }
  func.func @transform_0(%arg0: i32) -> (i32, i32, i32) {
    %c0_i32 = arith.constant 0 : i32
    %c0_i32_0 = arith.constant 0 : i32
    %c0_i32_1 = arith.constant 0 : i32
    return %arg0, %c0_i32, %c0_i32_0 : i32, i32, i32
  }
  func.func @transform_1(%arg0: i32) -> (i32, i32) {
    %c0_i32 = arith.constant 0 : i32
    %c0_i32_0 = arith.constant 0 : i32
    %c0_i32_1 = arith.constant 0 : i32
    return %c0_i32, %c0_i32_0 : i32, i32
  }
  func.func @transform_2(%arg0: i32) -> (i32, i32) {
    %c0_i32 = arith.constant 0 : i32
    %c0_i32_0 = arith.constant 0 : i32
    %c0_i32_1 = arith.constant 0 : i32
    return %c0_i32, %c0_i32_0 : i32, i32
  }
  func.func @transform_3(%arg0: i32) -> (i32, i32) {
    %c0_i32 = arith.constant 0 : i32
    %c0_i32_0 = arith.constant 0 : i32
    %c0_i32_1 = arith.constant 0 : i32
    return %c0_i32, %c0_i32_0 : i32, i32
  }
  func.func @transform_4(%arg0: i32) -> (i32, i32) {
    %c0_i32 = arith.constant 0 : i32
    %c0_i32_0 = arith.constant 0 : i32
    %c0_i32_1 = arith.constant 0 : i32
    return %c0_i32, %c0_i32_0 : i32, i32
  }
  func.func @transform_5(%arg0: i32) -> (i32, i32, i32) {
    %c0_i32 = arith.constant 0 : i32
    %c0_i32_0 = arith.constant 0 : i32
    %c0_i32_1 = arith.constant 0 : i32
    %c0_i32_2 = arith.constant 0 : i32
    return %c0_i32, %c0_i32_0, %c0_i32_1 : i32, i32, i32
  }
  func.func @transform_6(%arg0: i32) -> (i32, i32) {
    %c0_i32 = arith.constant 0 : i32
    %c0_i32_0 = arith.constant 0 : i32
    %c0_i32_1 = arith.constant 0 : i32
    return %c0_i32, %c0_i32_0 : i32, i32
  }
  func.func @transform_7(%arg0: i32) -> (i32, i32) {
    %c0_i32 = arith.constant 0 : i32
    %c0_i32_0 = arith.constant 0 : i32
    %c0_i32_1 = arith.constant 0 : i32
    return %c0_i32, %c0_i32_0 : i32, i32
  }
  func.func @transform_8(%arg0: i32) -> (i32, i32, i32) {
    %c0_i32 = arith.constant 0 : i32
    %c0_i32_0 = arith.constant 0 : i32
    %c0_i32_1 = arith.constant 0 : i32
    return %arg0, %c0_i32, %c0_i32_0 : i32, i32, i32
  }
}

module attributes {stable_mosaic.version = 11 : i64} {
  func.func @_nat_attn_block_kernel(%arg0: i32, %arg1: memref<1x64x32xf32, #tpu.memory_space<vmem>>, %arg2: memref<1x32xf32, #tpu.memory_space<vmem>>, %arg3: memref<1x32xf32, #tpu.memory_space<vmem>>, %arg4: memref<32x96xf32, #tpu.memory_space<vmem>>, %arg5: memref<1x96xf32, #tpu.memory_space<vmem>>, %arg6: memref<2x64x64xf32, #tpu.memory_space<vmem>>, %arg7: memref<32x32xf32, #tpu.memory_space<vmem>>, %arg8: memref<1x32xf32, #tpu.memory_space<vmem>>, %arg9: memref<1x64x32xf32, #tpu.memory_space<vmem>>) attributes {dimension_semantics = [#tpu.dimension_semantics<parallel>], iteration_bounds = array<i64: 2>, scalar_prefetch = 0 : i64, scratch_operands = 0 : i64, tpu.core_type = #tpu.core_type<tc>, window_params = [{transform_indices = @transform_0, window_bounds = array<i64: 1, 64, 32>}, {pipeline_mode = #tpu.pipeline_mode<synchronous>, transform_indices = @transform_1, window_bounds = array<i64: 1, 32>}, {pipeline_mode = #tpu.pipeline_mode<synchronous>, transform_indices = @transform_2, window_bounds = array<i64: 1, 32>}, {pipeline_mode = #tpu.pipeline_mode<synchronous>, transform_indices = @transform_3, window_bounds = array<i64: 32, 96>}, {pipeline_mode = #tpu.pipeline_mode<synchronous>, transform_indices = @transform_4, window_bounds = array<i64: 1, 96>}, {pipeline_mode = #tpu.pipeline_mode<synchronous>, transform_indices = @transform_5, window_bounds = array<i64: 2, 64, 64>}, {pipeline_mode = #tpu.pipeline_mode<synchronous>, transform_indices = @transform_6, window_bounds = array<i64: 32, 32>}, {pipeline_mode = #tpu.pipeline_mode<synchronous>, transform_indices = @transform_7, window_bounds = array<i64: 1, 32>}, {transform_indices = @transform_8, window_bounds = array<i64: 1, 64, 32>}]} {
    %c0 = arith.constant 0 : index
    %c0_0 = arith.constant 0 : index
    %c0_1 = arith.constant 0 : index
    %0 = vector.load %arg1[%c0, %c0_0, %c0_1] : memref<1x64x32xf32, #tpu.memory_space<vmem>>, vector<1x64x32xf32>
    %1 = vector.shape_cast %0 : vector<1x64x32xf32> to vector<64x32xf32>
    %c0_2 = arith.constant 0 : index
    %c0_3 = arith.constant 0 : index
    %2 = vector.load %arg2[%c0_2, %c0_3] : memref<1x32xf32, #tpu.memory_space<vmem>>, vector<1x32xf32>
    %c0_4 = arith.constant 0 : index
    %c0_5 = arith.constant 0 : index
    %3 = vector.load %arg3[%c0_4, %c0_5] : memref<1x32xf32, #tpu.memory_space<vmem>>, vector<1x32xf32>
    %cst = arith.constant dense<0.000000e+00> : vector<64xf32>
    %4 = vector.multi_reduction <add>, %1, %cst [1] : vector<64x32xf32> to vector<64xf32>
    %5 = vector.shape_cast %4 : vector<64xf32> to vector<64x1xf32>
    %cst_6 = arith.constant 3.200000e+01 : f32
    %6 = vector.broadcast %cst_6 : f32 to vector<64x1xf32>
    %7 = arith.divf %5, %6 : vector<64x1xf32>
    %8 = vector.broadcast %7 : vector<64x1xf32> to vector<64x32xf32>
    %9 = arith.subf %1, %8 : vector<64x32xf32>
    %10 = arith.mulf %9, %9 : vector<64x32xf32>
    %cst_7 = arith.constant dense<0.000000e+00> : vector<64xf32>
    %11 = vector.multi_reduction <add>, %10, %cst_7 [1] : vector<64x32xf32> to vector<64xf32>
    %12 = vector.shape_cast %11 : vector<64xf32> to vector<64x1xf32>
    %cst_8 = arith.constant 3.200000e+01 : f32
    %13 = vector.broadcast %cst_8 : f32 to vector<64x1xf32>
    %14 = arith.divf %12, %13 : vector<64x1xf32>
    %15 = vector.broadcast %7 : vector<64x1xf32> to vector<64x32xf32>
    %16 = arith.subf %1, %15 : vector<64x32xf32>
    %cst_9 = arith.constant 9.99999974E-6 : f32
    %17 = vector.broadcast %cst_9 : f32 to vector<64x1xf32>
    %18 = arith.addf %14, %17 : vector<64x1xf32>
    %19 = math.rsqrt %18 : vector<64x1xf32>
    %20 = vector.broadcast %19 : vector<64x1xf32> to vector<64x32xf32>
    %21 = arith.mulf %16, %20 : vector<64x32xf32>
    %22 = vector.broadcast %2 : vector<1x32xf32> to vector<64x32xf32>
    %23 = arith.mulf %21, %22 : vector<64x32xf32>
    %24 = vector.broadcast %3 : vector<1x32xf32> to vector<64x32xf32>
    %25 = arith.addf %23, %24 : vector<64x32xf32>
    %c0_10 = arith.constant 0 : index
    %c0_11 = arith.constant 0 : index
    %26 = vector.load %arg4[%c0_10, %c0_11] : memref<32x96xf32, #tpu.memory_space<vmem>>, vector<32x96xf32>
    %cst_12 = arith.constant dense<0.000000e+00> : vector<64x96xf32>
    %27 = tpu.matmul %25, %26, %cst_12 {dimension_numbers = #tpu.dot_dimension_numbers<[1], [0], [0], [1], [0, 0, 1, 1], [], []>} : vector<64x32xf32>, vector<32x96xf32>, vector<64x96xf32> -> vector<64x96xf32>
    %c0_13 = arith.constant 0 : index
    %c0_14 = arith.constant 0 : index
    %28 = vector.load %arg5[%c0_13, %c0_14] : memref<1x96xf32, #tpu.memory_space<vmem>>, vector<1x96xf32>
    %29 = vector.broadcast %28 : vector<1x96xf32> to vector<64x96xf32>
    %30 = arith.addf %27, %29 : vector<64x96xf32>
    %cst_15 = arith.constant 0.000000e+00 : f32
    %31 = vector.broadcast %cst_15 : f32 to vector<64x32xf32>
    %32 = vector.extract_strided_slice %30 {offsets = [0, 0], sizes = [64, 16], strides = [1, 1]} : vector<64x96xf32> to vector<64x16xf32>
    %cst_16 = arith.constant 2.500000e-01 : f32
    %33 = vector.broadcast %cst_16 : f32 to vector<64x16xf32>
    %34 = arith.mulf %32, %33 : vector<64x16xf32>
    %35 = vector.extract_strided_slice %30 {offsets = [0, 32], sizes = [64, 16], strides = [1, 1]} : vector<64x96xf32> to vector<64x16xf32>
    %36 = vector.extract_strided_slice %30 {offsets = [0, 64], sizes = [64, 16], strides = [1, 1]} : vector<64x96xf32> to vector<64x16xf32>
    %cst_17 = arith.constant dense<0.000000e+00> : vector<64x64xf32>
    %37 = tpu.matmul %34, %35, %cst_17 {dimension_numbers = #tpu.dot_dimension_numbers<[1], [1], [0], [0], [0, 0, 1, 0], [], []>} : vector<64x16xf32>, vector<64x16xf32>, vector<64x64xf32> -> vector<64x64xf32>
    %c0_18 = arith.constant 0 : index
    %c0_19 = arith.constant 0 : index
    %c0_20 = arith.constant 0 : index
    %38 = vector.load %arg6[%c0_18, %c0_19, %c0_20] : memref<2x64x64xf32, #tpu.memory_space<vmem>>, vector<1x64x64xf32>
    %39 = vector.shape_cast %38 : vector<1x64x64xf32> to vector<64x64xf32>
    %40 = arith.addf %37, %39 : vector<64x64xf32>
    %cst_21 = arith.constant dense<0xFF800000> : vector<64xf32>
    %41 = vector.multi_reduction <maximumf>, %40, %cst_21 [1] : vector<64x64xf32> to vector<64xf32>
    %42 = vector.shape_cast %41 : vector<64xf32> to vector<64x1xf32>
    %43 = vector.broadcast %42 : vector<64x1xf32> to vector<64x64xf32>
    %44 = arith.subf %40, %43 : vector<64x64xf32>
    %45 = math.exp %44 : vector<64x64xf32>
    %cst_22 = arith.constant dense<0.000000e+00> : vector<64xf32>
    %46 = vector.multi_reduction <add>, %45, %cst_22 [1] : vector<64x64xf32> to vector<64xf32>
    %47 = vector.shape_cast %46 : vector<64xf32> to vector<64x1xf32>
    %cst_23 = arith.constant dense<0.000000e+00> : vector<64x16xf32>
    %48 = tpu.matmul %45, %36, %cst_23 {dimension_numbers = #tpu.dot_dimension_numbers<[1], [0], [0], [1], [0, 0, 1, 1], [], []>} : vector<64x64xf32>, vector<64x16xf32>, vector<64x16xf32> -> vector<64x16xf32>
    %49 = vector.broadcast %47 : vector<64x1xf32> to vector<64x16xf32>
    %50 = arith.divf %48, %49 : vector<64x16xf32>
    %c0_24 = arith.constant 0 : index
    %c0_25 = arith.constant 0 : index
    %51 = vector.load %arg7[%c0_24, %c0_25] : memref<32x32xf32, #tpu.memory_space<vmem>>, vector<16x32xf32>
    %cst_26 = arith.constant dense<0.000000e+00> : vector<64x32xf32>
    %52 = tpu.matmul %50, %51, %cst_26 {dimension_numbers = #tpu.dot_dimension_numbers<[1], [0], [0], [1], [0, 0, 1, 1], [], []>} : vector<64x16xf32>, vector<16x32xf32>, vector<64x32xf32> -> vector<64x32xf32>
    %53 = arith.addf %31, %52 : vector<64x32xf32>
    %54 = vector.extract_strided_slice %30 {offsets = [0, 16], sizes = [64, 16], strides = [1, 1]} : vector<64x96xf32> to vector<64x16xf32>
    %cst_27 = arith.constant 2.500000e-01 : f32
    %55 = vector.broadcast %cst_27 : f32 to vector<64x16xf32>
    %56 = arith.mulf %54, %55 : vector<64x16xf32>
    %57 = vector.extract_strided_slice %30 {offsets = [0, 48], sizes = [64, 16], strides = [1, 1]} : vector<64x96xf32> to vector<64x16xf32>
    %58 = vector.extract_strided_slice %30 {offsets = [0, 80], sizes = [64, 16], strides = [1, 1]} : vector<64x96xf32> to vector<64x16xf32>
    %cst_28 = arith.constant dense<0.000000e+00> : vector<64x64xf32>
    %59 = tpu.matmul %56, %57, %cst_28 {dimension_numbers = #tpu.dot_dimension_numbers<[1], [1], [0], [0], [0, 0, 1, 0], [], []>} : vector<64x16xf32>, vector<64x16xf32>, vector<64x64xf32> -> vector<64x64xf32>
    %c1 = arith.constant 1 : index
    %c0_29 = arith.constant 0 : index
    %c0_30 = arith.constant 0 : index
    %60 = vector.load %arg6[%c1, %c0_29, %c0_30] : memref<2x64x64xf32, #tpu.memory_space<vmem>>, vector<1x64x64xf32>
    %61 = vector.shape_cast %60 : vector<1x64x64xf32> to vector<64x64xf32>
    %62 = arith.addf %59, %61 : vector<64x64xf32>
    %cst_31 = arith.constant dense<0xFF800000> : vector<64xf32>
    %63 = vector.multi_reduction <maximumf>, %62, %cst_31 [1] : vector<64x64xf32> to vector<64xf32>
    %64 = vector.shape_cast %63 : vector<64xf32> to vector<64x1xf32>
    %65 = vector.broadcast %64 : vector<64x1xf32> to vector<64x64xf32>
    %66 = arith.subf %62, %65 : vector<64x64xf32>
    %67 = math.exp %66 : vector<64x64xf32>
    %cst_32 = arith.constant dense<0.000000e+00> : vector<64xf32>
    %68 = vector.multi_reduction <add>, %67, %cst_32 [1] : vector<64x64xf32> to vector<64xf32>
    %69 = vector.shape_cast %68 : vector<64xf32> to vector<64x1xf32>
    %cst_33 = arith.constant dense<0.000000e+00> : vector<64x16xf32>
    %70 = tpu.matmul %67, %58, %cst_33 {dimension_numbers = #tpu.dot_dimension_numbers<[1], [0], [0], [1], [0, 0, 1, 1], [], []>} : vector<64x64xf32>, vector<64x16xf32>, vector<64x16xf32> -> vector<64x16xf32>
    %71 = vector.broadcast %69 : vector<64x1xf32> to vector<64x16xf32>
    %72 = arith.divf %70, %71 : vector<64x16xf32>
    %c16 = arith.constant 16 : index
    %c0_34 = arith.constant 0 : index
    %73 = vector.load %arg7[%c16, %c0_34] : memref<32x32xf32, #tpu.memory_space<vmem>>, vector<16x32xf32>
    %cst_35 = arith.constant dense<0.000000e+00> : vector<64x32xf32>
    %74 = tpu.matmul %72, %73, %cst_35 {dimension_numbers = #tpu.dot_dimension_numbers<[1], [0], [0], [1], [0, 0, 1, 1], [], []>} : vector<64x16xf32>, vector<16x32xf32>, vector<64x32xf32> -> vector<64x32xf32>
    %75 = arith.addf %53, %74 : vector<64x32xf32>
    %c0_36 = arith.constant 0 : index
    %c0_37 = arith.constant 0 : index
    %76 = vector.load %arg8[%c0_36, %c0_37] : memref<1x32xf32, #tpu.memory_space<vmem>>, vector<1x32xf32>
    %77 = vector.broadcast %76 : vector<1x32xf32> to vector<64x32xf32>
    %78 = arith.addf %75, %77 : vector<64x32xf32>
    %79 = arith.addf %1, %78 : vector<64x32xf32>
    %c0_38 = arith.constant 0 : index
    %c0_39 = arith.constant 0 : index
    %c0_40 = arith.constant 0 : index
    %80 = vector.load %arg9[%c0_38, %c0_39, %c0_40] : memref<1x64x32xf32, #tpu.memory_space<vmem>>, vector<1x64x32xf32>
    %81 = vector.shape_cast %80 : vector<1x64x32xf32> to vector<64x32xf32>
    %82 = vector.shape_cast %79 : vector<64x32xf32> to vector<1x64x32xf32>
    tpu.vector_store %arg9[%c0_38, %c0_39, %c0_40], %82 {strides = array<i32>} : memref<1x64x32xf32, #tpu.memory_space<vmem>>, vector<1x64x32xf32>,
    return
  }
  func.func @transform_0(%arg0: i32) -> (i32, i32, i32) {
    %c0_i32 = arith.constant 0 : i32
    %c0_i32_0 = arith.constant 0 : i32
    %c0_i32_1 = arith.constant 0 : i32
    return %arg0, %c0_i32, %c0_i32_0 : i32, i32, i32
  }
  func.func @transform_1(%arg0: i32) -> (i32, i32) {
    %c0_i32 = arith.constant 0 : i32
    %c0_i32_0 = arith.constant 0 : i32
    %c0_i32_1 = arith.constant 0 : i32
    return %c0_i32, %c0_i32_0 : i32, i32
  }
  func.func @transform_2(%arg0: i32) -> (i32, i32) {
    %c0_i32 = arith.constant 0 : i32
    %c0_i32_0 = arith.constant 0 : i32
    %c0_i32_1 = arith.constant 0 : i32
    return %c0_i32, %c0_i32_0 : i32, i32
  }
  func.func @transform_3(%arg0: i32) -> (i32, i32) {
    %c0_i32 = arith.constant 0 : i32
    %c0_i32_0 = arith.constant 0 : i32
    %c0_i32_1 = arith.constant 0 : i32
    return %c0_i32, %c0_i32_0 : i32, i32
  }
  func.func @transform_4(%arg0: i32) -> (i32, i32) {
    %c0_i32 = arith.constant 0 : i32
    %c0_i32_0 = arith.constant 0 : i32
    %c0_i32_1 = arith.constant 0 : i32
    return %c0_i32, %c0_i32_0 : i32, i32
  }
  func.func @transform_5(%arg0: i32) -> (i32, i32, i32) {
    %c0_i32 = arith.constant 0 : i32
    %c0_i32_0 = arith.constant 0 : i32
    %c0_i32_1 = arith.constant 0 : i32
    %c0_i32_2 = arith.constant 0 : i32
    return %c0_i32, %c0_i32_0, %c0_i32_1 : i32, i32, i32
  }
  func.func @transform_6(%arg0: i32) -> (i32, i32) {
    %c0_i32 = arith.constant 0 : i32
    %c0_i32_0 = arith.constant 0 : i32
    %c0_i32_1 = arith.constant 0 : i32
    return %c0_i32, %c0_i32_0 : i32, i32
  }
  func.func @transform_7(%arg0: i32) -> (i32, i32) {
    %c0_i32 = arith.constant 0 : i32
    %c0_i32_0 = arith.constant 0 : i32
    %c0_i32_1 = arith.constant 0 : i32
    return %c0_i32, %c0_i32_0 : i32, i32
  }
  func.func @transform_8(%arg0: i32) -> (i32, i32, i32) {
    %c0_i32 = arith.constant 0 : i32
    %c0_i32_0 = arith.constant 0 : i32
    %c0_i32_1 = arith.constant 0 : i32
    return %arg0, %c0_i32, %c0_i32_0 : i32, i32, i32
  }
}

</mosaic_0001>

<bundles_post_ra>
// kernel: basic_layer_forward.5
= control target key start
LH: loop header
LB: loop body
LE: loop exit
PB: predicated region body
PF: predicated region fallthrough
CT: control target
= control target key end

     0   :  { %vm44_vm0 = vcmask 261120   ;;  %s1625_s0 = inlined_call_operand.vmem [shape: f32[128,32], index: 0, kind: input, shape index: {}, may-alias: {0,7}]   ;;  %s1626_s3 = inlined_call_operand.vmem [shape: f32[32,128], index: 3, kind: input, shape index: {}]   ;;  %s1627_s5 = inlined_call_operand.vmem [shape: f32[128,32], index: 5, kind: input, shape index: {}]   ;;  %s1628_s1 = inlined_call_operand.vmem [shape: f32[1,32], index: 1, kind: input, shape index: {}]   ;;  %s1629_s2 = inlined_call_operand.vmem [shape: f32[1,32], index: 2, kind: input, shape index: {}]   ;;  %s1630_s4 = inlined_call_operand.vmem [shape: f32[1,128], index: 4, kind: input, shape index: {}]   ;;  %s1631_s6 = inlined_call_operand.vmem [shape: f32[1,32], index: 6, kind: input, shape index: {}]   ;;  %s1632_s7 = inlined_call_operand.vmem [shape: f32[128,32], index: 7, kind: output, shape index: {}, may-alias: {0,7}]  }
   0x1   :  { %v26_v0 = vld [vmem:[%s1625_s0] sm:$0xff]  ;;  %v28_v1 = vld [vmem:[%s1625_s0 + $0x10] sm:$0xff]  ;;  %v1130_v2 = vld [vmem:[%s1625_s0 + $0x8] sm:$0xff] }
   0x2   :  { %v45_v3 = vsel %vm44_vm0, %v26_v0, 0.0  ;;  %v51_v4 = vsel %vm44_vm0, %v28_v1, 0.0  ;;  %v29_v5 = vld [vmem:[%s1625_s0 + $0x18] sm:$0xff]  ;;  %v48_v6 = vsel %vm44_vm0, %v1130_v2, 0.0  ;;  %v30_v8 = vld [vmem:[%s1625_s0 + $0x20] sm:$0xff]  ;;  %v31_v9 = vld [vmem:[%s1625_s0 + $0x28] sm:$0xff] }
   0x3   :  { %46 = vadd.xlane.f32.xlu0 %v45_v3  ;;  %52 = vadd.xlane.f32.xlu1 %v51_v4  ;;  %v54_v7 = vsel %vm44_vm0, %v29_v5, 0.0  ;;  %v57_v10 = vsel %vm44_vm0, %v30_v8, 0.0  ;;  %v60_v11 = vsel %vm44_vm0, %v31_v9, 0.0  ;;  %v1151_v12 = vld [vmem:[%s1625_s0 + $0x30] sm:$0xff]  ;;  %v1156_v13 = vld [vmem:[%s1625_s0 + $0x38] sm:$0xff]  ;;  %v1165_v16 = vld [vmem:[%s1625_s0 + $0x40] sm:$0xff] }
   0x4   :  { %v63_v14 = vsel %vm44_vm0, %v1151_v12, 0.0  ;;  %v66_v15 = vsel %vm44_vm0, %v1156_v13, 0.0  ;;  %v1170_v17 = vld [vmem:[%s1625_s0 + $0x48] sm:$0xff]  ;;  %v69_v18 = vsel %vm44_vm0, %v1165_v16, 0.0  ;;  %v1179_v20 = vld [vmem:[%s1625_s0 + $0x50] sm:$0xff]  ;;  %v1184_v21 = vld [vmem:[%s1625_s0 + $0x58] sm:$0xff] }
   0x5   :  { %v72_v19 = vsel %vm44_vm0, %v1170_v17, 0.0  ;;  %v75_v22 = vsel %vm44_vm0, %v1179_v20, 0.0  ;;  %v78_v23 = vsel %vm44_vm0, %v1184_v21, 0.0  ;;  %v1193_v24 = vld [vmem:[%s1625_s0 + $0x60] sm:$0xff]  ;;  %v1198_v25 = vld [vmem:[%s1625_s0 + $0x68] sm:$0xff]  ;;  %v1207_v28 = vld [vmem:[%s1625_s0 + $0x70] sm:$0xff] }
   0x6   :  { %v81_v26 = vsel %vm44_vm0, %v1193_v24, 0.0  ;;  %v84_v27 = vsel %vm44_vm0, %v1198_v25, 0.0  ;;  %v1212_v29 = vld [vmem:[%s1625_s0 + $0x78] sm:$0xff]  ;;  %v87_v30 = vsel %vm44_vm0, %v1207_v28, 0.0 }
   0x7   :  { %49 = vadd.xlane.f32.xlu0 %v48_v6  ;;  %55 = vadd.xlane.f32.xlu1 %v54_v7  ;;  %v90_v31 = vsel %vm44_vm0, %v1212_v29, 0.0 }
   0xb   :  { %58 = vadd.xlane.f32.xlu0 %v57_v10  ;;  %61 = vadd.xlane.f32.xlu1 %v60_v11 }
   0xf   :  { %64 = vadd.xlane.f32.xlu0 %v63_v14  ;;  %67 = vadd.xlane.f32.xlu1 %v66_v15 }
  0x13   :  { %70 = vadd.xlane.f32.xlu0 %v69_v18  ;;  %73 = vadd.xlane.f32.xlu1 %v72_v19 }
  0x17   :  { %76 = vadd.xlane.f32.xlu0 %v75_v22  ;;  %79 = vadd.xlane.f32.xlu1 %v78_v23 }
  0x1b   :  { %82 = vadd.xlane.f32.xlu0 %v81_v26  ;;  %85 = vadd.xlane.f32.xlu1 %v84_v27 }
  0x1f   :  { %88 = vadd.xlane.f32.xlu0 %v87_v30  ;;  %91 = vadd.xlane.f32.xlu1 %v90_v31 }
  0x90   :  { %v47_v32 = vpop.xlane.xlu0 %46  ;;  %v53_v33 = vpop.xlane.xlu1 %52 }
  0x91   :  { %v94_v34 = vmul.f32 0.03125, %v47_v32  ;;  %v96_v35 = vmul.f32 0.03125, %v53_v33 }
  0x93   :  { %v1218_v36 = vsub.f32 %v26_v0, %v94_v34  ;;  %v1220_v37 = vsub.f32 %v28_v1, %v96_v35 }
  0x94   :  { %v50_v38 = vpop.xlane.xlu0 %49  ;;  %v56_v39 = vpop.xlane.xlu1 %55 }
  0x95   :  { %v95_v40 = vmul.f32 0.03125, %v50_v38  ;;  %v97_v41 = vmul.f32 0.03125, %v56_v39  ;;  %v126_v42 = vmul.f32 %v1218_v36, %v1218_v36  ;;  %v128_v43 = vmul.f32 %v1220_v37, %v1220_v37 }
  0x97   :  { %v1227_v44 = vsub.f32 %v1130_v2, %v95_v40  ;;  %v1229_v45 = vsub.f32 %v29_v5, %v97_v41  ;;  %v142_v46 = vsel %vm44_vm0, %v126_v42, 0.0  ;;  %v148_v49 = vsel %vm44_vm0, %v128_v43, 0.0 }
  0x98   :  { %143 = vadd.xlane.f32.xlu0 %v142_v46  ;;  %v59_v47 = vpop.xlane.xlu0 %58  ;;  %v62_v48 = vpop.xlane.xlu1 %61 }
  0x99   :  { %v98_v50 = vmul.f32 0.03125, %v59_v47  ;;  %v99_v51 = vmul.f32 0.03125, %v62_v48  ;;  %v127_v52 = vmul.f32 %v1227_v44, %v1227_v44  ;;  %v129_v53 = vmul.f32 %v1229_v45, %v1229_v45 }
  0x9b   :  { %v1237_v54 = vsub.f32 %v30_v8, %v98_v50  ;;  %v1239_v55 = vsub.f32 %v31_v9, %v99_v51  ;;  %v145_v56 = vsel %vm44_vm0, %v127_v52, 0.0  ;;  %v151_v59 = vsel %vm44_vm0, %v129_v53, 0.0 }
  0x9c   :  { %149 = vadd.xlane.f32.xlu0 %v148_v49  ;;  %146 = vadd.xlane.f32.xlu1 %v145_v56  ;;  %v65_v57 = vpop.xlane.xlu0 %64  ;;  %v68_v58 = vpop.xlane.xlu1 %67  ;;  %v299_v56 = vld [vmem:[%s1626_s3 + $0x8] sm:$0xff] }
  0x9d   :  { %v100_v60 = vmul.f32 0.03125, %v65_v57  ;;  %v101_v61 = vmul.f32 0.03125, %v68_v58  ;;  %v130_v62 = vmul.f32 %v1237_v54, %v1237_v54  ;;  %v131_v63 = vmul.f32 %v1239_v55, %v1239_v55  ;;  %v300_v58 = vld [vmem:[%s1626_s3 + $0x10] sm:$0xff] }
  0x9f   :  { %v1248_v0 = vsub.f32 %v1151_v12, %v100_v60  ;;  %v1251_v1 = vsub.f32 %v1156_v13, %v101_v61  ;;  %v154_v3 = vsel %vm44_vm0, %v130_v62, 0.0  ;;  %v157_v6 = vsel %vm44_vm0, %v131_v63, 0.0  ;;  %v582_v61 = vld [vmem:[%s1627_s5] sm:$0xff]  ;;  %v583_v62 = vld [vmem:[%s1627_s5 + $0x8] sm:$0xff]  ;;  %v584_v63 = vld [vmem:[%s1627_s5 + $0x10] sm:$0xff] }
  0xa0   :  { %152 = vadd.xlane.f32.xlu1 %v151_v59  ;;  %155 = vadd.xlane.f32.xlu0 %v154_v3  ;;  %v71_v4 = vpop.xlane.xlu0 %70  ;;  %v74_v5 = vpop.xlane.xlu1 %73  ;;  %v301_v59 = vld [vmem:[%s1626_s3 + $0x18] sm:$0xff]  ;;  %v1330_v3 = vpack.c.bf16 %v583_v62, %v582_v61 }
  0xa1   :  { %v102_v7 = vmul.f32 0.03125, %v71_v4  ;;  %v103_v8 = vmul.f32 0.03125, %v74_v5  ;;  %v132_v9 = vmul.f32 %v1248_v0, %v1248_v0  ;;  %v133_v10 = vmul.f32 %v1251_v1, %v1251_v1  ;;  %v585_v4 = vld [vmem:[%s1627_s5 + $0x18] sm:$0xff] }
  0xa2   :  { %v950_v60 = vpack.c.bf16 %v301_v59, %v300_v58  ;;  %v1336_v5 = vpack.c.bf16 %v585_v4, %v584_v63  ;;  %986 = vmatprep.subr.bf16.mxu1 %v1330_v3 }
  0xa3   :  { %v1260_v11 = vsub.f32 %v1165_v16, %v102_v7  ;;  %v1263_v12 = vsub.f32 %v1170_v17, %v103_v8  ;;  %v160_v13 = vsel %vm44_vm0, %v132_v9, 0.0  ;;  %v163_v18 = vsel %vm44_vm0, %v133_v10, 0.0  ;;  %v587_v7 = vld [vmem:[%s1627_s5 + $0x28] sm:$0xff]  ;;  %994 = vmatpush3.bf16.msra.mxu1 %v1330_v3 }
  0xa4   :  { %158 = vadd.xlane.f32.xlu1 %v157_v6  ;;  %161 = vadd.xlane.f32.xlu0 %v160_v13  ;;  %v77_v14 = vpop.xlane.xlu0 %76  ;;  %v80_v15 = vpop.xlane.xlu1 %79  ;;  %v586_v6 = vld [vmem:[%s1627_s5 + $0x20] sm:$0xff] }
  0xa5   :  { %v104_v19 = vmul.f32 0.03125, %v77_v14  ;;  %v105_v22 = vmul.f32 0.03125, %v80_v15  ;;  %v134_v23 = vmul.f32 %v1260_v11, %v1260_v11  ;;  %v135_v16 = vmul.f32 %v1263_v12, %v1263_v12  ;;  %987 = vmatprep.subr.bf16.mxu1 %v1336_v5 }
  0xa6   :  { %v1347_v8 = vpack.c.bf16 %v587_v7, %v586_v6 }
  0xa7   :  { %v1272_v26 = vsub.f32 %v1179_v20, %v104_v19  ;;  %v1275_v17 = vsub.f32 %v1184_v21, %v105_v22  ;;  %v166_v27 = vsel %vm44_vm0, %v134_v23, 0.0  ;;  %v169_v32 = vsel %vm44_vm0, %v135_v16, 0.0  ;;  %995 = vmatpush3.bf16.msra.mxu1 %v1336_v5 }
  0xa8   :  { %164 = vadd.xlane.f32.xlu1 %v163_v18  ;;  %167 = vadd.xlane.f32.xlu0 %v166_v27  ;;  %v83_v30 = vpop.xlane.xlu0 %82  ;;  %v86_v31 = vpop.xlane.xlu1 %85 }
  0xa9   :  { %v106_v33 = vmul.f32 0.03125, %v83_v30  ;;  %v107_v34 = vmul.f32 0.03125, %v86_v31  ;;  %v136_v35 = vmul.f32 %v1272_v26, %v1272_v26  ;;  %v137_v20 = vmul.f32 %v1275_v17, %v1275_v17  ;;  %988 = vmatprep.subr.bf16.mxu1 %v1347_v8 }
  0xab   :  { %v1284_v38 = vsub.f32 %v1193_v24, %v106_v33  ;;  %v1287_v21 = vsub.f32 %v1198_v25, %v107_v34  ;;  %v172_v39 = vsel %vm44_vm0, %v136_v35, 0.0  ;;  %v175_v42 = vsel %vm44_vm0, %v137_v20, 0.0  ;;  %996 = vmatpush3.bf16.msra.mxu1 %v1347_v8 }
  0xac   :  { %170 = vadd.xlane.f32.xlu1 %v169_v32  ;;  %173 = vadd.xlane.f32.xlu0 %v172_v39  ;;  %v89_v40 = vpop.xlane.xlu0 %88  ;;  %v92_v41 = vpop.xlane.xlu1 %91 }
  0xad   :  { %v108_v43 = vmul.f32 0.03125, %v89_v40  ;;  %v109_v46 = vmul.f32 0.03125, %v92_v41  ;;  %v138_v47 = vmul.f32 %v1284_v38, %v1284_v38  ;;  %v139_v24 = vmul.f32 %v1287_v21, %v1287_v21 }
  0xaf   :  { %v1296_v48 = vsub.f32 %v1207_v28, %v108_v43  ;;  %v1299_v25 = vsub.f32 %v1212_v29, %v109_v46  ;;  %v178_v49 = vsel %vm44_vm0, %v138_v47, 0.0  ;;  %v181_v50 = vsel %vm44_vm0, %v139_v24, 0.0  ;;  %v298_v29 = vld [vmem:[%s1626_s3] sm:$0xff] }
  0xb0   :  { %176 = vadd.xlane.f32.xlu1 %v175_v42  ;;  %179 = vadd.xlane.f32.xlu0 %v178_v49  ;;  %v946_v57 = vpack.c.bf16 %v299_v56, %v298_v29  ;;  %v1355_v43 = vld [vmem:[%s1628_s1] ss:$0 sm:$0xff] }
  0xb1   :  { %v140_v51 = vmul.f32 %v1296_v48, %v1296_v48  ;;  %v141_v52 = vmul.f32 %v1299_v25, %v1299_v25 }
  0xb2   :  { %947 = vmatprep.subr.bf16.mxu0 %v946_v57 }
  0xb3   :  { %v184_v53 = vsel %vm44_vm0, %v140_v51, 0.0  ;;  %v187_v28 = vsel %vm44_vm0, %v141_v52, 0.0  ;;  %949 = vmatpush3.bf16.msra.mxu0 %v946_v57  ;;  %v1361_v51 = vld [vmem:[%s1629_s2] ss:$0 sm:$0xff] }
  0xb4   :  { %182 = vadd.xlane.f32.xlu1 %v181_v50  ;;  %185 = vadd.xlane.f32.xlu0 %v184_v53 }
  0xb5   :  { %951 = vmatprep.subr.bf16.mxu0 %v950_v60 }
  0xb7   :  { %953 = vmatpush3.bf16.msra.mxu0 %v950_v60 }
  0xb8   :  { %188 = vadd.xlane.f32.xlu1 %v187_v28  ;;  %955 = vmatprep.subr.bf16.mxu0 %v1330_v3 }
 0x125   :  { %v144_v9 = vpop.xlane.xlu0 %143 }
 0x126   :  { %v190_v10 = vmul.f32 0.03125, %v144_v9 }
 0x128   :  { %v206_v13 = vadd.f32 1e-05, %v190_v10 }
 0x129   :  { %v147_v14 = vpop.xlane.xlu1 %146  ;;  %v150_v15 = vpop.xlane.xlu0 %149 }
 0x12a   :  { %1002 = vrsqrt.f32 %v206_v13  ;;  %v191_v18 = vmul.f32 0.03125, %v147_v14  ;;  %v192_v19 = vmul.f32 0.03125, %v150_v15 }
 0x12c   :  { %v207_v22 = vadd.f32 1e-05, %v191_v18  ;;  %v208_v23 = vadd.f32 1e-05, %v192_v19 }
 0x12d   :  { %v153_v16 = vpop.xlane.xlu1 %152  ;;  %v156_v27 = vpop.xlane.xlu0 %155 }
 0x12e   :  { %1004 = vrsqrt.f32 %v207_v22  ;;  %v193_v30 = vmul.f32 0.03125, %v153_v16  ;;  %v194_v31 = vmul.f32 0.03125, %v156_v27 }
 0x12f   :  { %1006 = vrsqrt.f32 %v208_v23 }
 0x130   :  { %v209_v32 = vadd.f32 1e-05, %v193_v30  ;;  %v210_v33 = vadd.f32 1e-05, %v194_v31 }
 0x131   :  { %v159_v34 = vpop.xlane.xlu1 %158  ;;  %v162_v35 = vpop.xlane.xlu0 %161 }
 0x132   :  { %1008 = vrsqrt.f32 %v209_v32  ;;  %v195_v20 = vmul.f32 0.03125, %v159_v34  ;;  %v196_v39 = vmul.f32 0.03125, %v162_v35 }
 0x133   :  { %1010 = vrsqrt.f32 %v210_v33 }
 0x134   :  { %v1003_v40 = vpop.eup %1002  ;;  %v211_v41 = vadd.f32 1e-05, %v195_v20  ;;  %v212_v42 = vadd.f32 1e-05, %v196_v39 }
 0x135   :  { %v165_v46 = vpop.xlane.xlu1 %164  ;;  %v168_v47 = vpop.xlane.xlu0 %167  ;;  %v238_v24 = vmul.f32 %v1003_v40, %v1218_v36 }
 0x136   :  { %1012 = vrsqrt.f32 %v211_v41  ;;  %v197_v49 = vmul.f32 0.03125, %v165_v46  ;;  %v198_v50 = vmul.f32 0.03125, %v168_v47 }
 0x137   :  { %1014 = vrsqrt.f32 %v212_v42  ;;  %v260_v52 = vmul.f32 %v1355_v43, %v238_v24 }
 0x138   :  { %v1005_v53 = vpop.eup %1004  ;;  %v213_v28 = vadd.f32 1e-05, %v197_v49  ;;  %v214_v29 = vadd.f32 1e-05, %v198_v50 }
 0x139   :  { %v1007_v56 = vpop.eup %1006  ;;  %v171_v57 = vpop.xlane.xlu1 %170  ;;  %v282_v59 = vadd.f32 %v1361_v51, %v260_v52  ;;  %v239_v36 = vmul.f32 %v1005_v53, %v1227_v44 }
 0x13a   :  { %v174_v58 = vpop.xlane.xlu0 %173  ;;  %1016 = vrsqrt.f32 %v213_v28  ;;  %v199_v60 = vmul.f32 0.03125, %v171_v57  ;;  %v240_v62 = vmul.f32 %v1007_v56, %v1220_v37 }
 0x13b   :  { %v200_v61 = vmul.f32 0.03125, %v174_v58  ;;  %1018 = vrsqrt.f32 %v214_v29  ;;  %866 = vmatprep.mubr.msk.f32.mxu0 %vm44_vm0, %v282_v59  ;;  %v261_v63 = vmul.f32 %v1355_v43, %v239_v36 }
 0x13c   :  { %v1009_v4 = vpop.eup %1008  ;;  %v215_v6 = vadd.f32 1e-05, %v199_v60  ;;  %v262_v9 = vmul.f32 %v1355_v43, %v240_v62 }
 0x13d   :  { %v216_v7 = vadd.f32 1e-05, %v200_v61  ;;  %v1011_v10 = vpop.eup %1010  ;;  %v177_v13 = vpop.xlane.xlu1 %176  ;;  %v283_v44 = vadd.f32 %v1361_v51, %v261_v63  ;;  %v241_v15 = vmul.f32 %v1009_v4, %v1229_v45 }
 0x13e   :  { %v180_v14 = vpop.xlane.xlu0 %179  ;;  %1020 = vrsqrt.f32 %v215_v6  ;;  %v201_v18 = vmul.f32 0.03125, %v177_v13  ;;  %v284_v19 = vadd.f32 %v1361_v51, %v262_v9  ;;  %v242_v23 = vmul.f32 %v1011_v10, %v1237_v54 }
 0x13f   :  { %v202_v37 = vmul.f32 0.03125, %v180_v14  ;;  %1022 = vrsqrt.f32 %v216_v7  ;;  %867 = vmatmul.mubr.msk.f32.vlgmr.msra.gmra.mrb[0].mxu0 %vm44_vm0, %v283_v44  ;;  %v263_v22 = vmul.f32 %v1355_v43, %v241_v15 }
 0x140   :  { %v1013_v16 = vpop.eup %1012  ;;  %v217_v27 = vadd.f32 1e-05, %v201_v18  ;;  %869 = vmatprep.mubr.msk.f32.mxu0 %vm44_vm0, %v284_v19  ;;  %957 = vmatpush3.bf16.msra.mxu0 %v1330_v3  ;;  %v264_v34 = vmul.f32 %v1355_v43, %v242_v23 }
 0x141   :  { %v218_v30 = vadd.f32 1e-05, %v202_v37  ;;  %v1015_v45 = vpop.eup %1014  ;;  %v183_v31 = vpop.xlane.xlu1 %182  ;;  %v285_v33 = vadd.f32 %v1361_v51, %v263_v22  ;;  %v243_v35 = vmul.f32 %v1013_v16, %v1239_v55  ;;  %959 = vmatprep.subr.bf16.mxu0 %v1336_v5  ;;  %v588_v22 = vld [vmem:[%s1627_s5 + $0x30] sm:$0xff] }
 0x142   :  { %v186_v32 = vpop.xlane.xlu0 %185  ;;  %1024 = vrsqrt.f32 %v217_v27  ;;  %v203_v54 = vmul.f32 0.03125, %v183_v31  ;;  %v244_v39 = vmul.f32 %v1015_v45, %v1248_v0  ;;  %v286_v3 = vadd.f32 %v1361_v51, %v264_v34  ;;  %v592_v27 = vld [vmem:[%s1627_s5 + $0x50] sm:$0xff]  ;;  %v594_v31 = vld [vmem:[%s1627_s5 + $0x60] sm:$0xff] }
 0x143   :  { %v204_v20 = vmul.f32 0.03125, %v186_v32  ;;  %1026 = vrsqrt.f32 %v218_v30  ;;  %870 = vmatmul.mubr.msk.f32.gmra.mrb[2].mxu0 %vm44_vm0, %v285_v33  ;;  %v265_v40 = vmul.f32 %v1355_v43, %v243_v35  ;;  %v593_v30 = vld [vmem:[%s1627_s5 + $0x58] sm:$0xff]  ;;  %v595_v32 = vld [vmem:[%s1627_s5 + $0x68] sm:$0xff]  ;;  %v596_v34 = vld [vmem:[%s1627_s5 + $0x70] sm:$0xff] }
 0x144   :  { %v1017_v41 = vpop.eup %1016  ;;  %v219_v42 = vadd.f32 1e-05, %v203_v54  ;;  %v266_v47 = vmul.f32 %v1355_v43, %v244_v39  ;;  %961 = vmatpush3.bf16.msra.mxu0 %v1336_v5  ;;  %872 = vmatprep.mubr.msk.f32.mxu0 %vm44_vm0, %v286_v3  ;;  %v974_v45 = vpack.c.bf16 %v593_v30, %v592_v27  ;;  %v978_v33 = vpack.c.bf16 %v595_v32, %v594_v31  ;;  %v597_v35 = vld [vmem:[%s1627_s5 + $0x78] sm:$0xff] }
 0x145   :  { %v220_v46 = vadd.f32 1e-05, %v204_v20  ;;  %v1019_v55 = vpop.eup %1018  ;;  %v189_v24 = vpop.xlane.xlu1 %188  ;;  %v287_v0 = vadd.f32 %v1361_v51, %v265_v40  ;;  %v245_v49 = vmul.f32 %v1017_v41, %v1251_v1  ;;  %963 = vmatprep.subr.bf16.mxu0 %v1347_v8  ;;  %v982_v54 = vpack.c.bf16 %v597_v35, %v596_v34  ;;  %v1464_v20 = vld [vmem:[%s1630_s4] ss:$0 sm:$0xff] }
 0x146   :  { %1028 = vrsqrt.f32 %v219_v42  ;;  %v205_v50 = vmul.f32 0.03125, %v189_v24  ;;  %v288_v52 = vadd.f32 %v1361_v51, %v266_v47  ;;  %v246_v53 = vmul.f32 %v1019_v55, %v1260_v11 }
 0x147   :  { %1030 = vrsqrt.f32 %v220_v46  ;;  %873 = vmatmul.mubr.msk.f32.gmra.mrb[4].mxu0 %vm44_vm0, %v287_v0  ;;  %v267_v5 = vmul.f32 %v1355_v43, %v245_v49 }
 0x148   :  { %v1021_v28 = vpop.eup %1020  ;;  %v221_v29 = vadd.f32 1e-05, %v205_v50  ;;  %875 = vmatprep.mubr.msk.f32.mxu0 %vm44_vm0, %v288_v52  ;;  %v268_v56 = vmul.f32 %v1355_v43, %v246_v53  ;;  %965 = vmatpush3.bf16.msra.mxu0 %v1347_v8 }
 0x149   :  { %v1023_v1 = vpop.eup %1022  ;;  %v289_v57 = vadd.f32 %v1361_v51, %v267_v5  ;;  %v247_v58 = vmul.f32 %v1021_v28, %v1263_v12 }
 0x14a   :  { %1032 = vrsqrt.f32 %v221_v29  ;;  %v290_v11 = vadd.f32 %v1361_v51, %v268_v56  ;;  %v248_v59 = vmul.f32 %v1023_v1, %v1272_v26 }
 0x14b   :  { %876 = vmatmul.mubr.msk.f32.gmra.mrb[6].mxu0 %vm44_vm0, %v289_v57  ;;  %v269_v36 = vmul.f32 %v1355_v43, %v247_v58 }
 0x14c   :  { %v1025_v60 = vpop.eup %1024  ;;  %878 = vmatprep.mubr.msk.f32.mxu0 %vm44_vm0, %v290_v11  ;;  %v270_v61 = vmul.f32 %v1355_v43, %v248_v59 }
 0x14d   :  { %v1027_v8 = vpop.eup %1026  ;;  %v291_v62 = vadd.f32 %v1361_v51, %v269_v36  ;;  %v249_v63 = vmul.f32 %v1025_v60, %v1275_v17 }
 0x14e   :  { %v292_v12 = vadd.f32 %v1361_v51, %v270_v61  ;;  %v250_v4 = vmul.f32 %v1027_v8, %v1284_v38 }
 0x14f   :  { %879 = vmatmul.mubr.msk.f32.gmra.mrb[8].mxu0 %vm44_vm0, %v291_v62  ;;  %v271_v26 = vmul.f32 %v1355_v43, %v249_v63 }
 0x150   :  { %v1029_v6 = vpop.eup %1028  ;;  %881 = vmatprep.mubr.msk.f32.mxu0 %vm44_vm0, %v292_v12  ;;  %v272_v7 = vmul.f32 %v1355_v43, %v250_v4 }
 0x151   :  { %v1031_v9 = vpop.eup %1030  ;;  %v293_v10 = vadd.f32 %v1361_v51, %v271_v26  ;;  %v251_v13 = vmul.f32 %v1029_v6, %v1287_v21 }
 0x152   :  { %v294_v17 = vadd.f32 %v1361_v51, %v272_v7  ;;  %v252_v14 = vmul.f32 %v1031_v9, %v1296_v48 }
 0x153   :  { %882 = vmatmul.mubr.msk.f32.gmra.mrb[10].mxu0 %vm44_vm0, %v293_v10  ;;  %v273_v38 = vmul.f32 %v1355_v43, %v251_v13 }
 0x154   :  { %v1033_v44 = vpop.eup %1032  ;;  %884 = vmatprep.mubr.msk.f32.mxu0 %vm44_vm0, %v294_v17  ;;  %v274_v15 = vmul.f32 %v1355_v43, %v252_v14 }
 0x155   :  { %v295_v18 = vadd.f32 %v1361_v51, %v273_v38  ;;  %v253_v37 = vmul.f32 %v1033_v44, %v1299_v25  ;;  %v589_v25 = vld [vmem:[%s1627_s5 + $0x38] sm:$0xff] }
 0x156   :  { %v296_v19 = vadd.f32 %v1361_v51, %v274_v15  ;;  %v966_v23 = vpack.c.bf16 %v589_v25, %v588_v22 }
 0x157   :  { %885 = vmatmul.mubr.msk.f32.gmra.mrb[12].mxu0 %vm44_vm0, %v295_v18  ;;  %v275_v21 = vmul.f32 %v1355_v43, %v253_v37  ;;  %v590_v43 = vld [vmem:[%s1627_s5 + $0x40] sm:$0xff] }
 0x158   :  { %887 = vmatprep.mubr.msk.f32.mxu0 %vm44_vm0, %v296_v19  ;;  %967 = vmatprep.subr.bf16.mxu0 %v966_v23 }
 0x159   :  { %v297_v48 = vadd.f32 %v1361_v51, %v275_v21  ;;  %989 = vmatprep.subr.bf16.mxu1 %v966_v23  ;;  %969 = vmatpush3.bf16.msra.mxu0 %v966_v23  ;;  %v591_v51 = vld [vmem:[%s1627_s5 + $0x48] sm:$0xff] }
 0x15a   :  { %997 = vmatpush3.bf16.msra.mxu1 %v966_v23  ;;  %v970_v16 = vpack.c.bf16 %v591_v51, %v590_v43 }
 0x15b   :  { %888 = vmatmul.mubr.msk.f32.gmra.mrb[14].mxu0 %vm44_vm0, %v297_v48 }
 0x15c   :  { %971 = vmatprep.subr.bf16.mxu0 %v970_v16  ;;  %990 = vmatprep.subr.bf16.mxu1 %v970_v16 }
 0x15d   :  { %973 = vmatpush3.bf16.msra.mxu0 %v970_v16 }
 0x15e   :  { %998 = vmatpush3.bf16.msra.mxu1 %v970_v16  ;;  %975 = vmatprep.subr.bf16.mxu0 %v974_v45 }
 0x15f   :  { %991 = vmatprep.subr.bf16.mxu1 %v974_v45 }
 0x161   :  { %977 = vmatpush3.bf16.msra.mxu0 %v974_v45 }
 0x162   :  { %999 = vmatpush3.bf16.msra.mxu1 %v974_v45  ;;  %979 = vmatprep.subr.bf16.mxu0 %v978_v33 }
 0x163   :  { %992 = vmatprep.subr.bf16.mxu1 %v978_v33 }
 0x165   :  { %981 = vmatpush3.bf16.msra.mxu0 %v978_v33 }
 0x166   :  { %1000 = vmatpush3.bf16.msra.mxu1 %v978_v33  ;;  %983 = vmatprep.subr.bf16.mxu0 %v982_v54 }
 0x167   :  { %993 = vmatprep.subr.bf16.mxu1 %v982_v54 }
 0x169   :  { %985 = vmatpush3.bf16.msra.mxu0 %v982_v54 }
 0x16a   :  { %1001 = vmatpush3.bf16.msra.mxu1 %v982_v54 }
 0x212   :  { %v868_v39 = vpop.f32.mrb[0].mxu0 }
 0x213   :  { %v429_v3 = vadd.f32 %v868_v39, %v1464_v20  ;;  %v423_v40 = vpop.f32.mrb[1].mxu0 }
 0x214   :  { %v424_v41 = vadd.f32 %v1464_v20, %v423_v40 }
 0x215   :  { %v519_v42 = vmul.f32 0.70710677, %v429_v3  ;;  %v503_v6 = vmul.f32 0.5, %v429_v3 }
 0x216   :  { %v518_v46 = vmul.f32 0.70710677, %v424_v41  ;;  %v871_v47 = vpop.f32.mrb[2].mxu0  ;;  %v502_v63 = vmul.f32 0.5, %v424_v41 }
 0x217   :  { %1034 = verf.f32 %v519_v42  ;;  %v439_v55 = vadd.f32 %v871_v47, %v1464_v20  ;;  %v433_v24 = vpop.f32.mrb[3].mxu0 }
 0x218   :  { %1036 = verf.f32 %v518_v46  ;;  %v434_v0 = vadd.f32 %v1464_v20, %v433_v24 }
 0x219   :  { %v521_v49 = vmul.f32 0.70710677, %v439_v55  ;;  %v505_v48 = vmul.f32 0.5, %v439_v55 }
 0x21a   :  { %v520_v50 = vmul.f32 0.70710677, %v434_v0  ;;  %v874_v52 = vpop.f32.mrb[4].mxu0  ;;  %v504_v18 = vmul.f32 0.5, %v434_v0 }
 0x21b   :  { %1038 = verf.f32 %v521_v49  ;;  %v449_v53 = vadd.f32 %v874_v52, %v1464_v20  ;;  %v443_v5 = vpop.f32.mrb[5].mxu0 }
 0x21c   :  { %1040 = verf.f32 %v520_v50  ;;  %v444_v28 = vadd.f32 %v1464_v20, %v443_v5 }
 0x21d   :  { %v523_v29 = vmul.f32 0.70710677, %v449_v53  ;;  %v507_v35 = vmul.f32 0.5, %v449_v53 }
 0x21e   :  { %v522_v56 = vmul.f32 0.70710677, %v444_v28  ;;  %v877_v1 = vpop.f32.mrb[6].mxu0  ;;  %v506_v31 = vmul.f32 0.5, %v444_v28 }
 0x21f   :  { %1042 = verf.f32 %v523_v29  ;;  %v1473_v57 = vadd.f32 %v877_v1, %v1464_v20  ;;  %v453_v58 = vpop.f32.mrb[7].mxu0 }
 0x220   :  { %1044 = verf.f32 %v522_v56  ;;  %v454_v11 = vadd.f32 %v1464_v20, %v453_v58 }
 0x221   :  { %v1035_v59 = vpop.eup %1034  ;;  %v525_v36 = vmul.f32 0.70710677, %v1473_v57  ;;  %v509_v52 = vmul.f32 0.5, %v1473_v57 }
 0x222   :  { %v1037_v60 = vpop.eup %1036  ;;  %v551_v61 = vadd.f32 1.0, %v1035_v59  ;;  %v524_v8 = vmul.f32 0.70710677, %v454_v11  ;;  %v880_v62 = vpop.f32.mrb[8].mxu0  ;;  %v508_v49 = vmul.f32 0.5, %v454_v11 }
 0x223   :  { %v550_v12 = vadd.f32 1.0, %v1037_v60  ;;  %1046 = verf.f32 %v525_v36  ;;  %v1478_v4 = vadd.f32 %v880_v62, %v1464_v20  ;;  %v463_v26 = vpop.f32.mrb[9].mxu0 }
 0x224   :  { %1048 = verf.f32 %v524_v8  ;;  %v464_v7 = vadd.f32 %v1464_v20, %v463_v26  ;;  %v567_v14 = vmul.f32 %v551_v61, %v503_v6 }
 0x225   :  { %v1039_v9 = vpop.eup %1038  ;;  %v527_v10 = vmul.f32 0.70710677, %v1478_v4  ;;  %v566_v13 = vmul.f32 %v550_v12, %v502_v63  ;;  %v511_v11 = vmul.f32 0.5, %v1478_v4 }
 0x226   :  { %v1041_v17 = vpop.eup %1040  ;;  %v553_v38 = vadd.f32 1.0, %v1039_v9  ;;  %v526_v44 = vmul.f32 0.70710677, %v464_v7  ;;  %v883_v15 = vpop.f32.mrb[10].mxu0  ;;  %v510_v36 = vmul.f32 0.5, %v464_v7 }
 0x227   :  { %v552_v37 = vadd.f32 1.0, %v1041_v17  ;;  %1050 = verf.f32 %v527_v10  ;;  %v1483_v19 = vadd.f32 %v883_v15, %v1464_v20  ;;  %v473_v21 = vpop.f32.mrb[11].mxu0  ;;  %922 = vmatprep.mubr.f32.mxu0 %v566_v13 }
 0x228   :  { %1052 = verf.f32 %v526_v44  ;;  %v474_v22 = vadd.f32 %v1464_v20, %v473_v21  ;;  %923 = vmatmul.mubr.f32.vlgmr.msra.gmra.mrb[16].mxu0 %v567_v14  ;;  %v569_v45 = vmul.f32 %v553_v38, %v505_v48 }
 0x229   :  { %v1043_v25 = vpop.eup %1042  ;;  %v529_v23 = vmul.f32 0.70710677, %v1483_v19  ;;  %v568_v43 = vmul.f32 %v552_v37, %v504_v18  ;;  %v513_v26 = vmul.f32 0.5, %v1483_v19 }
 0x22a   :  { %v1045_v51 = vpop.eup %1044  ;;  %v555_v16 = vadd.f32 1.0, %v1043_v25  ;;  %v528_v27 = vmul.f32 0.70710677, %v474_v22  ;;  %v886_v30 = vpop.f32.mrb[12].mxu0  ;;  %v512_v63 = vmul.f32 0.5, %v474_v22 }
 0x22b   :  { %v554_v32 = vadd.f32 1.0, %v1045_v51  ;;  %1054 = verf.f32 %v529_v23  ;;  %v489_v33 = vadd.f32 %v886_v30, %v1464_v20  ;;  %v483_v34 = vpop.f32.mrb[13].mxu0  ;;  %925 = vmatprep.mubr.f32.mxu0 %v568_v43  ;;  %v1497_v23 = vld [vmem:[%s1631_s6] ss:$0 sm:$0xff] }
 0x22c   :  { %1056 = verf.f32 %v528_v27  ;;  %v484_v54 = vadd.f32 %v1464_v20, %v483_v34  ;;  %926 = vmatmul.mubr.f32.gmra.mrb[18].mxu0 %v569_v45  ;;  %v571_v55 = vmul.f32 %v555_v16, %v507_v35  ;;  %v1066_v45 = vld [vmem:[%s1625_s0] sm:$0xff] }
 0x22d   :  { %v1047_v39 = vpop.eup %1046  ;;  %v531_v3 = vmul.f32 0.70710677, %v489_v33  ;;  %v570_v40 = vmul.f32 %v554_v32, %v506_v31  ;;  %v515_v14 = vmul.f32 0.5, %v489_v33 }
 0x22e   :  { %v1049_v41 = vpop.eup %1048  ;;  %v557_v42 = vadd.f32 1.0, %v1047_v39  ;;  %v530_v46 = vmul.f32 0.70710677, %v484_v54  ;;  %v889_v47 = vpop.f32.mrb[14].mxu0  ;;  %v514_v17 = vmul.f32 0.5, %v484_v54 }
 0x22f   :  { %1058 = verf.f32 %v531_v3  ;;  %v499_v24 = vadd.f32 %v889_v47, %v1464_v20  ;;  %v493_v0 = vpop.f32.mrb[15].mxu0  ;;  %928 = vmatprep.mubr.f32.mxu0 %v570_v40  ;;  %v556_v50 = vadd.f32 1.0, %v1049_v41 }
 0x230   :  { %1060 = verf.f32 %v530_v46  ;;  %v494_v53 = vadd.f32 %v1464_v20, %v493_v0  ;;  %929 = vmatmul.mubr.f32.gmra.mrb[20].mxu0 %v571_v55  ;;  %v573_v59 = vmul.f32 %v557_v42, %v509_v52 }
 0x231   :  { %v1051_v5 = vpop.eup %1050  ;;  %v533_v28 = vmul.f32 0.70710677, %v499_v24  ;;  %v572_v29 = vmul.f32 %v556_v50, %v508_v49  ;;  %v517_v19 = vmul.f32 0.5, %v499_v24 }
 0x232   :  { %v1053_v56 = vpop.eup %1052  ;;  %v559_v1 = vadd.f32 1.0, %v1051_v5  ;;  %v532_v58 = vmul.f32 0.70710677, %v494_v53  ;;  %v516_v21 = vmul.f32 0.5, %v494_v53 }
 0x233   :  { %v558_v60 = vadd.f32 1.0, %v1053_v56  ;;  %1062 = verf.f32 %v533_v28  ;;  %931 = vmatprep.mubr.f32.mxu1 %v572_v29 }
 0x234   :  { %1064 = verf.f32 %v532_v58  ;;  %932 = vmatmul.mubr.f32.vlgmr.msra.gmra.mrb[0].mxu1 %v573_v59  ;;  %v575_v62 = vmul.f32 %v559_v1, %v511_v11 }
 0x235   :  { %v1055_v57 = vpop.eup %1054  ;;  %v574_v61 = vmul.f32 %v558_v60, %v510_v36 }
 0x236   :  { %v1057_v8 = vpop.eup %1056  ;;  %v561_v20 = vadd.f32 1.0, %v1055_v57 }
 0x237   :  { %v560_v12 = vadd.f32 1.0, %v1057_v8  ;;  %934 = vmatprep.mubr.f32.mxu1 %v574_v61 }
 0x238   :  { %935 = vmatmul.mubr.f32.gmra.mrb[2].mxu1 %v575_v62  ;;  %v577_v13 = vmul.f32 %v561_v20, %v513_v26 }
 0x239   :  { %v1059_v6 = vpop.eup %1058  ;;  %v576_v7 = vmul.f32 %v560_v12, %v512_v63 }
 0x23a   :  { %v1061_v9 = vpop.eup %1060  ;;  %v563_v10 = vadd.f32 1.0, %v1059_v6 }
 0x23b   :  { %v562_v4 = vadd.f32 1.0, %v1061_v9  ;;  %937 = vmatprep.mubr.f32.mxu1 %v576_v7 }
 0x23c   :  { %938 = vmatmul.mubr.f32.gmra.mrb[4].mxu1 %v577_v13  ;;  %v579_v37 = vmul.f32 %v563_v10, %v515_v14 }
 0x23d   :  { %v1063_v38 = vpop.eup %1062  ;;  %v578_v44 = vmul.f32 %v562_v4, %v514_v17 }
 0x23e   :  { %v1065_v15 = vpop.eup %1064  ;;  %v565_v18 = vadd.f32 1.0, %v1063_v38 }
 0x23f   :  { %v564_v48 = vadd.f32 1.0, %v1065_v15  ;;  %940 = vmatprep.mubr.f32.mxu1 %v578_v44 }
 0x240   :  { %941 = vmatmul.mubr.f32.gmra.mrb[6].mxu1 %v579_v37  ;;  %v581_v25 = vmul.f32 %v565_v18, %v517_v19 }
 0x241   :  { %v580_v22 = vmul.f32 %v564_v48, %v516_v21 }
 0x243   :  { %943 = vmatprep.mubr.f32.mxu1 %v580_v22 }
 0x244   :  { %944 = vmatmul.mubr.f32.gmra.mrb[8].mxu1 %v581_v25 }
 0x2fb   :  { %v924_v43 = vpop.f32.mrb[16].mxu0 }
 0x2fc   :  { %v677_v51 = vadd.f32 %v924_v43, %v1497_v23  ;;  %v671_v16 = vpop.f32.mrb[17].mxu0 }
 0x2fd   :  { %v672_v27 = vadd.f32 %v1497_v23, %v671_v16 }
 0x2fe   :  { %v751_v30 = vadd.f32 %v677_v51, %v1130_v2 }
 0x2ff   :  { %v750_v31 = vadd.f32 %v1066_v45, %v672_v27  ;;  %v927_v32 = vpop.f32.mrb[18].mxu0 }
 0x300   :  { %767 = vst.msk [vmem:[%s1632_s7 + $0x8] sm:$0xff] %vm44_vm0, %v751_v30  ;;  %v687_v33 = vadd.f32 %v927_v32, %v1497_v23  ;;  %v681_v34 = vpop.f32.mrb[19].mxu0 }
 0x301   :  { %766 = vst.msk [vmem:[%s1632_s7] sm:$0xff] %vm44_vm0, %v750_v31  ;;  %v682_v2 = vadd.f32 %v1497_v23, %v681_v34 }
 0x303   :  { %v930_v40 = vpop.f32.mrb[20].mxu0 }
 0x304   :  { %v697_v41 = vadd.f32 %v930_v40, %v1497_v23  ;;  %v691_v42 = vpop.f32.mrb[21].mxu0 }
 0x305   :  { %v692_v46 = vadd.f32 %v1497_v23, %v691_v42 }
 0x307   :  { %v933_v49 = vpop.f32.mrb[0].mxu1 }
 0x308   :  { %v1067_v35 = vld [vmem:[%s1625_s0 + $0x18] sm:$0xff]  ;;  %v1068_v39 = vld [vmem:[%s1625_s0 + $0x10] sm:$0xff]  ;;  %v707_v50 = vadd.f32 %v933_v49, %v1497_v23  ;;  %v701_v52 = vpop.f32.mrb[1].mxu1 }
 0x309   :  { %v753_v54 = vadd.f32 %v1067_v35, %v687_v33  ;;  %v752_v3 = vadd.f32 %v1068_v39, %v682_v2  ;;  %v702_v53 = vadd.f32 %v1497_v23, %v701_v52 }
 0x30b   :  { %769 = vst.msk [vmem:[%s1632_s7 + $0x18] sm:$0xff] %vm44_vm0, %v753_v54  ;;  %768 = vst.msk [vmem:[%s1632_s7 + $0x10] sm:$0xff] %vm44_vm0, %v752_v3  ;;  %v936_v1 = vpop.f32.mrb[2].mxu1 }
 0x30c   :  { %v717_v58 = vadd.f32 %v936_v1, %v1497_v23  ;;  %v711_v59 = vpop.f32.mrb[3].mxu1 }
 0x30d   :  { %v712_v36 = vadd.f32 %v1497_v23, %v711_v59 }
 0x30f   :  { %v939_v8 = vpop.f32.mrb[4].mxu1 }
 0x310   :  { %v727_v20 = vadd.f32 %v939_v8, %v1497_v23  ;;  %v721_v62 = vpop.f32.mrb[5].mxu1 }
 0x311   :  { %v722_v63 = vadd.f32 %v1497_v23, %v721_v62 }
 0x312   :  { %v1069_v47 = vld [vmem:[%s1625_s0 + $0x28] sm:$0xff]  ;;  %v1070_v24 = vld [vmem:[%s1625_s0 + $0x20] sm:$0xff] }
 0x313   :  { %v755_v55 = vadd.f32 %v1069_v47, %v697_v41  ;;  %v754_v0 = vadd.f32 %v1070_v24, %v692_v46  ;;  %v942_v9 = vpop.f32.mrb[6].mxu1 }
 0x314   :  { %v737_v10 = vadd.f32 %v942_v9, %v1497_v23  ;;  %v731_v13 = vpop.f32.mrb[7].mxu1 }
 0x315   :  { %771 = vst.msk [vmem:[%s1632_s7 + $0x28] sm:$0xff] %vm44_vm0, %v755_v55  ;;  %770 = vst.msk [vmem:[%s1632_s7 + $0x20] sm:$0xff] %vm44_vm0, %v754_v0  ;;  %v732_v17 = vadd.f32 %v1497_v23, %v731_v13 }
 0x317   :  { %v945_v15 = vpop.f32.mrb[8].mxu1 }
 0x318   :  { %v747_v18 = vadd.f32 %v945_v15, %v1497_v23  ;;  %v741_v37 = vpop.f32.mrb[9].mxu1 }
 0x319   :  { %v742_v21 = vadd.f32 %v1497_v23, %v741_v37 }
 0x31c   :  { %v1071_v5 = vld [vmem:[%s1625_s0 + $0x38] sm:$0xff]  ;;  %v1072_v29 = vld [vmem:[%s1625_s0 + $0x30] sm:$0xff] }
 0x31d   :  { %v757_v28 = vadd.f32 %v1071_v5, %v707_v50  ;;  %v756_v56 = vadd.f32 %v1072_v29, %v702_v53 }
 0x31f   :  { %773 = vst.msk [vmem:[%s1632_s7 + $0x38] sm:$0xff] %vm44_vm0, %v757_v28  ;;  %772 = vst.msk [vmem:[%s1632_s7 + $0x30] sm:$0xff] %vm44_vm0, %v756_v56 }
 0x326   :  { %v1073_v60 = vld [vmem:[%s1625_s0 + $0x48] sm:$0xff]  ;;  %v1074_v57 = vld [vmem:[%s1625_s0 + $0x40] sm:$0xff] }
 0x327   :  { %v759_v11 = vadd.f32 %v1073_v60, %v717_v58  ;;  %v758_v61 = vadd.f32 %v1074_v57, %v712_v36 }
 0x329   :  { %775 = vst.msk [vmem:[%s1632_s7 + $0x48] sm:$0xff] %vm44_vm0, %v759_v11  ;;  %774 = vst.msk [vmem:[%s1632_s7 + $0x40] sm:$0xff] %vm44_vm0, %v758_v61 }
 0x330   :  { %v1075_v12 = vld [vmem:[%s1625_s0 + $0x58] sm:$0xff]  ;;  %v1076_v6 = vld [vmem:[%s1625_s0 + $0x50] sm:$0xff] }
 0x331   :  { %v761_v26 = vadd.f32 %v1075_v12, %v727_v20  ;;  %v760_v7 = vadd.f32 %v1076_v6, %v722_v63 }
 0x333   :  { %777 = vst.msk [vmem:[%s1632_s7 + $0x58] sm:$0xff] %vm44_vm0, %v761_v26  ;;  %776 = vst.msk [vmem:[%s1632_s7 + $0x50] sm:$0xff] %vm44_vm0, %v760_v7 }
 0x33a   :  { %v1077_v4 = vld [vmem:[%s1625_s0 + $0x68] sm:$0xff]  ;;  %v1078_v38 = vld [vmem:[%s1625_s0 + $0x60] sm:$0xff] }
 0x33b   :  { %v763_v14 = vadd.f32 %v1077_v4, %v737_v10  ;;  %v762_v44 = vadd.f32 %v1078_v38, %v732_v17 }
 0x33d   :  { %779 = vst.msk [vmem:[%s1632_s7 + $0x68] sm:$0xff] %vm44_vm0, %v763_v14  ;;  %778 = vst.msk [vmem:[%s1632_s7 + $0x60] sm:$0xff] %vm44_vm0, %v762_v44 }
 0x344   :  { %v1079_v48 = vld [vmem:[%s1625_s0 + $0x78] sm:$0xff]  ;;  %v1080_v22 = vld [vmem:[%s1625_s0 + $0x70] sm:$0xff] }
 0x345   :  { %v765_v19 = vadd.f32 %v1079_v48, %v747_v18  ;;  %v764_v25 = vadd.f32 %v1080_v22, %v742_v21 }
 0x347   :  { %781 = vst.msk [vmem:[%s1632_s7 + $0x78] sm:$0xff] %vm44_vm0, %v765_v19  ;;  %780 = vst.msk [vmem:[%s1632_s7 + $0x70] sm:$0xff] %vm44_vm0, %v764_v25 }

// kernel: basic_layer_forward.6
= control target key start
LH: loop header
LB: loop body
LE: loop exit
PB: predicated region body
PF: predicated region fallthrough
CT: control target
= control target key end

     0   :  { %s2487_s27 = smov 0   ;;  %s2977_s0 = inlined_call_operand.vmem [shape: f32[2,64,32], index: 0, kind: input, shape index: {}, may-alias: {0,8}]   ;;  %s2978_s1 = inlined_call_operand.vmem [shape: f32[1,32], index: 1, kind: input, shape index: {}]   ;;  %s2979_s2 = inlined_call_operand.vmem [shape: f32[1,32], index: 2, kind: input, shape index: {}]   ;;  %s2980_s3 = inlined_call_operand.vmem [shape: f32[32,96], index: 3, kind: input, shape index: {}]   ;;  %s2981_s4 = inlined_call_operand.vmem [shape: f32[1,96], index: 4, kind: input, shape index: {}]   ;;  %s2982_s5 = inlined_call_operand.vmem [shape: f32[2,64,64], index: 5, kind: input, shape index: {}]   ;;  %s2983_s6 = inlined_call_operand.vmem [shape: f32[32,32], index: 6, kind: input, shape index: {}]   ;;  %s2984_s7 = inlined_call_operand.vmem [shape: f32[1,32], index: 7, kind: input, shape index: {}]   ;;  %s2985_s8 = inlined_call_operand.vmem [shape: f32[2,64,32], index: 8, kind: output, shape index: {}, may-alias: {0,8}]  }
   0x1 LB: > { %s1785_s28 = sadd.s32 4294967295, %s2435_s27   ;;  %p1789_p0 = scmp.ge.s32.totalorder %s2435_s27, 1  ;;  %s2435_s27 = sphi %s2487_s27, %s18_s27  }
   0x2   : > { %p262_p1 = scmp.lt.s32.totalorder %s2435_s27, 3 }
   0x4   : > { %p263_p2 = pnand %p1789_p0, %p262_p1 }
   0x5   : > { %p296_p3 = scmp.lt.s32.totalorder (!%p263_p2), %s1785_s28, 1  ;;  %vm316_vm0 = vcmask (!%p263_p2), 261120   ;;  %v450_v56 = vld [vmem:[%s2980_s3] sm:$0xff] (!%p263_p2)  ;;  %v451_v57 = vld [vmem:[%s2980_s3 + $0x8] sm:$0xff] (!%p263_p2)  ;;  %v452_v59 = vld [vmem:[%s2980_s3 + $0x10] sm:$0xff] (!%p263_p2)  ;;  %vm630_vm1 = vcmask (!%p263_p2), 130048  }
   0x6   : > { %266 = sbr.rel (%p263_p2) target bundleno = 2000 (0x7d0), region = 52  ;;  %v2142_v58 = vpack.c.bf16 (!%p263_p2), %v451_v57, %v450_v56  ;;  %v453_v60 = vld [vmem:[%s2980_s3 + $0x18] sm:$0xff] (!%p263_p2)  ;;  %s2437_s25 = smov (!%p263_p2), 96   ;;  %vm2665_vm2 = vmpackc.low (!%p263_p2), %vm630_vm1, %vm630_vm1  ;;  %vm776_vm3 = vcmask (!%p263_p2), 523264  }
   0x7   : > { %v2146_v61 = vpack.c.bf16 (!%p263_p2), %v453_v60, %v452_v59  ;;  %s2438_s26 = smov (!%p263_p2), 64   ;;  %s2439_s23 = smov (!%p263_p2), 80  }
   0x8   : > { %2143 = vmatprep.subr.bf16.mxu0 (!%p263_p2), %v2142_v58  ;;  %s2441_s30 = smov (!%p263_p2), 48  }
   0x9   : > { %2145 = vmatpush3.bf16.msra.mxu0 (!%p263_p2), %v2142_v58 }
   0xa   : > { %2147 = vmatprep.subr.bf16.mxu0 (!%p263_p2), %v2146_v61 }
   0xd   : > { %s2989_s28 = smov (!%p296_p3, %s1785_s28), 1  ;;  %2149 = vmatpush3.bf16.msra.mxu0 %v2146_v61 }
   0xe   : > { %s1880_s29 = sshll.u32 %s2989_s28, 6 }
   0xf   : > { %s2503_s10 = scalar_lea.vmem %s2977_s0, %s1880_s29  ;;  %s2948_s20 = scalar_lea.vmem %s2985_s8, %s1880_s29 }
  0x10   : > { %v306_v0 = vld [vmem:[%s2503_s10] sm:$0xff]  ;;  %v2507_v1 = vld [vmem:[%s2503_s10 + $0x10] sm:$0xff]  ;;  %v307_v2 = vld [vmem:[%s2503_s10 + $0x8] sm:$0xff] }
  0x11   : > { %v317_v3 = vsel %vm316_vm0, %v306_v0, 0.0  ;;  %v323_v4 = vsel %vm316_vm0, %v2507_v1, 0.0  ;;  %v2514_v5 = vld [vmem:[%s2503_s10 + $0x18] sm:$0xff]  ;;  %v320_v6 = vsel %vm316_vm0, %v307_v2, 0.0  ;;  %v2520_v8 = vld [vmem:[%s2503_s10 + $0x20] sm:$0xff]  ;;  %v2523_v9 = vld [vmem:[%s2503_s10 + $0x28] sm:$0xff] }
  0x12   : > { %318 = vadd.xlane.f32.xlu0 %v317_v3  ;;  %324 = vadd.xlane.f32.xlu1 %v323_v4  ;;  %v326_v7 = vsel %vm316_vm0, %v2514_v5, 0.0  ;;  %v329_v10 = vsel %vm316_vm0, %v2520_v8, 0.0  ;;  %v332_v11 = vsel %vm316_vm0, %v2523_v9, 0.0  ;;  %v2530_v12 = vld [vmem:[%s2503_s10 + $0x30] sm:$0xff]  ;;  %v2533_v13 = vld [vmem:[%s2503_s10 + $0x38] sm:$0xff] }
  0x13   : > { %v335_v14 = vsel %vm316_vm0, %v2530_v12, 0.0  ;;  %v338_v15 = vsel %vm316_vm0, %v2533_v13, 0.0 }
  0x16   : > { %321 = vadd.xlane.f32.xlu0 %v320_v6  ;;  %327 = vadd.xlane.f32.xlu1 %v326_v7 }
  0x1a   : > { %330 = vadd.xlane.f32.xlu0 %v329_v10  ;;  %333 = vadd.xlane.f32.xlu1 %v332_v11 }
  0x1e   : > { %336 = vadd.xlane.f32.xlu0 %v335_v14  ;;  %339 = vadd.xlane.f32.xlu1 %v338_v15 }
  0x9f   : > { %v319_v16 = vpop.xlane.xlu0 %318  ;;  %v325_v17 = vpop.xlane.xlu1 %324 }
  0xa0   : > { %v342_v18 = vmul.f32 0.03125, %v319_v16  ;;  %v344_v19 = vmul.f32 0.03125, %v325_v17 }
  0xa2   : > { %v2539_v20 = vsub.f32 %v306_v0, %v342_v18  ;;  %v2542_v21 = vsub.f32 %v2507_v1, %v344_v19 }
  0xa3   : > { %v322_v22 = vpop.xlane.xlu0 %321  ;;  %v328_v23 = vpop.xlane.xlu1 %327 }
  0xa4   : > { %v343_v24 = vmul.f32 0.03125, %v322_v22  ;;  %v345_v25 = vmul.f32 0.03125, %v328_v23  ;;  %v358_v26 = vmul.f32 %v2539_v20, %v2539_v20  ;;  %v360_v27 = vmul.f32 %v2542_v21, %v2542_v21 }
  0xa6   : > { %v2548_v28 = vsub.f32 %v307_v2, %v343_v24  ;;  %v2551_v29 = vsub.f32 %v2514_v5, %v345_v25  ;;  %v366_v30 = vsel %vm316_vm0, %v358_v26, 0.0  ;;  %v372_v33 = vsel %vm316_vm0, %v360_v27, 0.0 }
  0xa7   : > { %367 = vadd.xlane.f32.xlu0 %v366_v30  ;;  %v331_v31 = vpop.xlane.xlu0 %330  ;;  %v334_v32 = vpop.xlane.xlu1 %333  ;;  %v1794_v30 = vld [vmem:[%s2978_s1] ss:$0 sm:$0xff] }
  0xa8   : > { %v346_v34 = vmul.f32 0.03125, %v331_v31  ;;  %v347_v35 = vmul.f32 0.03125, %v334_v32  ;;  %v359_v36 = vmul.f32 %v2548_v28, %v2548_v28  ;;  %v361_v37 = vmul.f32 %v2551_v29, %v2551_v29 }
  0xaa   : > { %v2560_v38 = vsub.f32 %v2520_v8, %v346_v34  ;;  %v2563_v39 = vsub.f32 %v2523_v9, %v347_v35  ;;  %v369_v40 = vsel %vm316_vm0, %v359_v36, 0.0  ;;  %v375_v43 = vsel %vm316_vm0, %v361_v37, 0.0  ;;  %v1795_v34 = vld [vmem:[%s2979_s2] ss:$0 sm:$0xff] }
  0xab   : > { %373 = vadd.xlane.f32.xlu0 %v372_v33  ;;  %370 = vadd.xlane.f32.xlu1 %v369_v40  ;;  %v337_v41 = vpop.xlane.xlu0 %336  ;;  %v340_v42 = vpop.xlane.xlu1 %339 }
  0xac   : > { %v348_v44 = vmul.f32 0.03125, %v337_v41  ;;  %v349_v45 = vmul.f32 0.03125, %v340_v42  ;;  %v362_v46 = vmul.f32 %v2560_v38, %v2560_v38  ;;  %v363_v47 = vmul.f32 %v2563_v39, %v2563_v39 }
  0xae   : > { %v2572_v48 = vsub.f32 %v2530_v12, %v348_v44  ;;  %v2575_v49 = vsub.f32 %v2533_v13, %v349_v45  ;;  %v378_v50 = vsel %vm316_vm0, %v362_v46, 0.0  ;;  %v381_v51 = vsel %vm316_vm0, %v363_v47, 0.0 }
  0xaf   : > { %376 = vadd.xlane.f32.xlu1 %v375_v43  ;;  %379 = vadd.xlane.f32.xlu0 %v378_v50 }
  0xb0   : > { %v364_v52 = vmul.f32 %v2572_v48, %v2572_v48  ;;  %v365_v53 = vmul.f32 %v2575_v49, %v2575_v49 }
  0xb2   : > { %v384_v54 = vsel %vm316_vm0, %v364_v52, 0.0  ;;  %v387_v55 = vsel %vm316_vm0, %v365_v53, 0.0 }
  0xb3   : > { %382 = vadd.xlane.f32.xlu1 %v381_v51  ;;  %385 = vadd.xlane.f32.xlu0 %v384_v54 }
  0xb7   : > { %388 = vadd.xlane.f32.xlu1 %v387_v55 }
 0x134   : > { %v368_v62 = vpop.xlane.xlu0 %367 }
 0x135   : > { %v390_v63 = vmul.f32 0.03125, %v368_v62 }
 0x137   : > { %v398_v0 = vadd.f32 1e-05, %v390_v63 }
 0x138   : > { %v371_v2 = vpop.xlane.xlu1 %370  ;;  %v374_v3 = vpop.xlane.xlu0 %373 }
 0x139   : > { %2347 = vrsqrt.f32 %v398_v0  ;;  %v391_v4 = vmul.f32 0.03125, %v371_v2  ;;  %v392_v6 = vmul.f32 0.03125, %v374_v3 }
 0x13b   : > { %v399_v7 = vadd.f32 1e-05, %v391_v4  ;;  %v400_v10 = vadd.f32 1e-05, %v392_v6 }
 0x13c   : > { %v377_v11 = vpop.xlane.xlu1 %376  ;;  %v380_v14 = vpop.xlane.xlu0 %379 }
 0x13d   : > { %2349 = vrsqrt.f32 %v399_v7  ;;  %v393_v15 = vmul.f32 0.03125, %v377_v11  ;;  %v394_v16 = vmul.f32 0.03125, %v380_v14 }
 0x13e   : > { %2351 = vrsqrt.f32 %v400_v10 }
 0x13f   : > { %v401_v17 = vadd.f32 1e-05, %v393_v15  ;;  %v402_v18 = vadd.f32 1e-05, %v394_v16 }
 0x140   : > { %v383_v19 = vpop.xlane.xlu1 %382  ;;  %v386_v22 = vpop.xlane.xlu0 %385 }
 0x141   : > { %2353 = vrsqrt.f32 %v401_v17  ;;  %v395_v23 = vmul.f32 0.03125, %v383_v19  ;;  %v396_v24 = vmul.f32 0.03125, %v386_v22 }
 0x142   : > { %2355 = vrsqrt.f32 %v402_v18 }
 0x143   : > { %v2348_v25 = vpop.eup %2347  ;;  %v403_v26 = vadd.f32 1e-05, %v395_v23  ;;  %v404_v27 = vadd.f32 1e-05, %v396_v24 }
 0x144   : > { %v389_v31 = vpop.xlane.xlu1 %388  ;;  %v414_v32 = vmul.f32 %v2348_v25, %v2539_v20 }
 0x145   : > { %2357 = vrsqrt.f32 %v403_v26  ;;  %v397_v33 = vmul.f32 0.03125, %v389_v31 }
 0x146   : > { %2359 = vrsqrt.f32 %v404_v27  ;;  %v428_v35 = vmul.f32 %v1794_v30, %v414_v32 }
 0x147   : > { %v2350_v36 = vpop.eup %2349  ;;  %v405_v37 = vadd.f32 1e-05, %v397_v33 }
 0x148   : > { %v2352_v40 = vpop.eup %2351  ;;  %v442_v41 = vadd.f32 %v1795_v34, %v428_v35  ;;  %v415_v42 = vmul.f32 %v2350_v36, %v2548_v28 }
 0x149   : > { %2361 = vrsqrt.f32 %v405_v37  ;;  %v416_v43 = vmul.f32 %v2352_v40, %v2542_v21 }
 0x14a   : > { %1986 = vmatprep.mubr.msk.f32.mxu0 %vm316_vm0, %v442_v41  ;;  %v429_v20 = vmul.f32 %v1794_v30, %v415_v42 }
 0x14b   : > { %v2354_v44 = vpop.eup %2353  ;;  %v430_v45 = vmul.f32 %v1794_v30, %v416_v43 }
 0x14c   : > { %v2356_v46 = vpop.eup %2355  ;;  %v443_v47 = vadd.f32 %v1795_v34, %v429_v20  ;;  %v417_v50 = vmul.f32 %v2354_v44, %v2551_v29 }
 0x14d   : > { %v444_v51 = vadd.f32 %v1795_v34, %v430_v45  ;;  %v418_v52 = vmul.f32 %v2356_v46, %v2560_v38 }
 0x14e   : > { %1987 = vmatmul.mubr.msk.f32.vlgmr.msra.gmra.mrb[0].mxu0 %vm316_vm0, %v443_v47  ;;  %v431_v53 = vmul.f32 %v1794_v30, %v417_v50 }
 0x14f   : > { %v2358_v54 = vpop.eup %2357  ;;  %1989 = vmatprep.mubr.msk.f32.mxu0 %vm316_vm0, %v444_v51  ;;  %v432_v28 = vmul.f32 %v1794_v30, %v418_v52 }
 0x150   : > { %v2360_v21 = vpop.eup %2359  ;;  %v445_v55 = vadd.f32 %v1795_v34, %v431_v53  ;;  %v419_v56 = vmul.f32 %v2358_v54, %v2563_v39 }
 0x151   : > { %v446_v57 = vadd.f32 %v1795_v34, %v432_v28  ;;  %v420_v58 = vmul.f32 %v2360_v21, %v2572_v48  ;;  %v1796_v48 = vld [vmem:[%s2981_s4] ss:$0 sm:$0xff] }
 0x152   : > { %1990 = vmatmul.mubr.msk.f32.gmra.mrb[2].mxu0 %vm316_vm0, %v445_v55  ;;  %v433_v29 = vmul.f32 %v1794_v30, %v419_v56 }
 0x153   : > { %v2362_v59 = vpop.eup %2361  ;;  %1992 = vmatprep.mubr.msk.f32.mxu0 %vm316_vm0, %v446_v57  ;;  %v434_v38 = vmul.f32 %v1794_v30, %v420_v58 }
 0x154   : > { %v447_v60 = vadd.f32 %v1795_v34, %v433_v29  ;;  %v421_v61 = vmul.f32 %v2362_v59, %v2575_v49 }
 0x155   : > { %v448_v62 = vadd.f32 %v1795_v34, %v434_v38 }
 0x156   : > { %1993 = vmatmul.mubr.msk.f32.gmra.mrb[4].mxu0 %vm316_vm0, %v447_v60  ;;  %v435_v63 = vmul.f32 %v1794_v30, %v421_v61 }
 0x157   : > { %1995 = vmatprep.mubr.msk.f32.mxu0 %vm316_vm0, %v448_v62 }
 0x158   : > { %v449_v39 = vadd.f32 %v1795_v34, %v435_v63 }
 0x15a   : > { %1996 = vmatmul.mubr.msk.f32.gmra.mrb[6].mxu0 %vm316_vm0, %v449_v39 }
 0x221   : > { %v1988_v0 = vpop.f32.mrb[0].mxu0 }
 0x222   : > { %v2622_v2 = vadd.f32 %v1988_v0, %v1796_v48  ;;  %v551_v3 = vpop.f32.mrb[1].mxu0 }
 0x223   : > { %v552_v4 = vadd.f32 %v1796_v48, %v551_v3 }
 0x224   : > { %v2686_v62 = vmul.f32 0.25, %v2622_v2 }
 0x225   : > { %v1991_v49 = vpop.f32.mrb[2].mxu0  ;;  %v2625_v6 = vpack.i.bf16 %v2622_v2, %v552_v4  ;;  %v2627_v7 = vmul.f32 0.25, %v552_v4  ;;  %v599_v4 = vld [vmem:[%s2982_s5 + $0x8] sm:$0xff] }
 0x226   : > { %v2629_v10 = vadd.f32 %v1991_v49, %v1796_v48  ;;  %v561_v11 = vpop.f32.mrb[3].mxu0  ;;  %v598_v49 = vld [vmem:[%s2982_s5] sm:$0xff] }
 0x227   : > { %v2631_v14 = vadd.f32 %v1796_v48, %v561_v11  ;;  %2268 = vrot.lane.b32.xlu0 %v2625_v6, %s2437_s25  ;;  %2014 = vmatprep.mubr.msk.f32.mxu1 %vm630_vm1, %v2627_v7 }
 0x228   : > { %v593_v39 = vmul.f32 0.25, %v2629_v10 }
 0x229   : > { %v1994_v15 = vpop.f32.mrb[4].mxu0  ;;  %v2638_v16 = vpack.i.bf16 %v2629_v10, %v2631_v14  ;;  %v592_v63 = vmul.f32 0.25, %v2631_v14 }
 0x22a   : > { %v2640_v17 = vadd.f32 %v1994_v15, %v1796_v48  ;;  %v571_v18 = vpop.f32.mrb[5].mxu0 }
 0x22b   : > { %v2642_v19 = vadd.f32 %v1796_v48, %v571_v18  ;;  %2288 = vrot.lane.b32.xlu0 %v2625_v6, %s2438_s26  ;;  %2273 = vrot.lane.b32.xlu1 %v2638_v16, %s2437_s25  ;;  %v600_v18 = vld [vmem:[%s2982_s5 + $0x10] sm:$0xff] }
 0x22c   : > { %v595_v0 = vmul.f32 0.25, %v2640_v17 }
 0x22d   : > { %v1997_v22 = vpop.f32.mrb[6].mxu0  ;;  %v2648_v23 = vpack.i.bf16 %v2640_v17, %v2642_v19 }
 0x22e   : > { %v2650_v24 = vadd.f32 %v1997_v22, %v1796_v48  ;;  %v581_v25 = vpop.f32.mrb[7].mxu0 }
 0x22f   : > { %v2652_v26 = vadd.f32 %v1796_v48, %v581_v25  ;;  %2298 = vrot.lane.b32.xlu0 %v2648_v23, %s2438_s26  ;;  %2278 = vrot.lane.b32.xlu1 %v2648_v23, %s2437_s25  ;;  %v594_v48 = vmul.f32 0.25, %v2642_v19 }
 0x230   : > { %v597_v3 = vmul.f32 0.25, %v2650_v24 }
 0x231   : > { %v2658_v27 = vpack.i.bf16 %v2650_v24, %v2652_v26  ;;  %v596_v2 = vmul.f32 0.25, %v2652_v26  ;;  %v603_v26 = vld [vmem:[%s2982_s5 + $0x28] sm:$0xff] }
 0x233   : > { %2283 = vrot.lane.b32.xlu1 %v2658_v27, %s2437_s25 }
 0x237   : > { %2293 = vrot.lane.b32.xlu1 %v2638_v16, %s2438_s26 }
 0x23b   : > { %2303 = vrot.lane.b32.xlu1 %v2658_v27, %s2438_s26  ;;  %s2440_s26 = smov 112  }
 0x299   : > { %v2269_v30 = vpop.permute.xlu0 %2268 }
 0x29a   : > { %v2271_v31 = vunpack.i.h.bf16 %v2269_v30  ;;  %v2270_v32 = vunpack.i.l.bf16 %v2269_v30 }
 0x29c   : > { %v2150_v34 = vpack.c.bf16 %v2271_v31, %v2270_v32 }
 0x29d   : > { %v2274_v35 = vpop.permute.xlu1 %2273  ;;  %v2289_v36 = vpop.permute.xlu0 %2288 }
 0x29e   : > { %v2276_v37 = vunpack.i.h.bf16 %v2274_v35  ;;  %v2275_v40 = vunpack.i.l.bf16 %v2274_v35  ;;  %v2291_v41 = vunpack.i.h.bf16 %v2289_v36  ;;  %v2290_v42 = vunpack.i.l.bf16 %v2289_v36  ;;  %2152 = vmatprep.subr.msk.bf16.mxu1 %vm2665_vm2, %v2150_v34  ;;  %v602_v35 = vld [vmem:[%s2982_s5 + $0x20] sm:$0xff] }
 0x29f   : > { %2155 = vmatpush3.bf16.xpose.msk.msra.mxu1 %vm2665_vm2, %v2150_v34 }
 0x2a0   : > { %v2156_v43 = vpack.c.bf16 %v2276_v37, %v2275_v40  ;;  %v2174_v20 = vpack.c.bf16 %v2291_v41, %v2290_v42  ;;  %v605_v41 = vld [vmem:[%s2982_s5 + $0x38] sm:$0xff] }
 0x2a1   : > { %v2279_v44 = vpop.permute.xlu1 %2278  ;;  %v2299_v51 = vpop.permute.xlu0 %2298 }
 0x2a2   : > { %v2281_v45 = vunpack.i.h.bf16 %v2279_v44  ;;  %v2280_v46 = vunpack.i.l.bf16 %v2279_v44  ;;  %2158 = vmatprep.subr.msk.bf16.mxu1 %vm2665_vm2, %v2156_v43  ;;  %2175 = vmatprep.subr.bf16.mxu0 %v2174_v20  ;;  %v2301_v52 = vunpack.i.h.bf16 %v2299_v51  ;;  %v2300_v53 = vunpack.i.l.bf16 %v2299_v51  ;;  %v604_v44 = vld [vmem:[%s2982_s5 + $0x30] sm:$0xff] }
 0x2a3   : > { %2177 = vmatpush3.bf16.msra.mxu0 %v2174_v20 }
 0x2a4   : > { %v2162_v50 = vpack.c.bf16 %v2281_v45, %v2280_v46  ;;  %v2182_v29 = vpack.c.bf16 %v2301_v52, %v2300_v53 }
 0x2a5   : > { %v2284_v47 = vpop.permute.xlu1 %2283 }
 0x2a6   : > { %v2286_v28 = vunpack.i.h.bf16 %v2284_v47  ;;  %v2285_v21 = vunpack.i.l.bf16 %v2284_v47 }
 0x2a7   : > { %2161 = vmatpush3.bf16.xpose.msk.msra.mxu1 %vm2665_vm2, %v2156_v43 }
 0x2a8   : > { %2164 = vmatprep.subr.msk.bf16.mxu1 %vm2665_vm2, %v2162_v50  ;;  %v2168_v59 = vpack.c.bf16 %v2286_v28, %v2285_v21 }
 0x2a9   : > { %v2294_v54 = vpop.permute.xlu1 %2293 }
 0x2aa   : > { %v2296_v55 = vunpack.i.h.bf16 %v2294_v54  ;;  %v2295_v56 = vunpack.i.l.bf16 %v2294_v54 }
 0x2ac   : > { %v2178_v57 = vpack.c.bf16 %v2296_v55, %v2295_v56 }
 0x2ad   : > { %v2304_v58 = vpop.permute.xlu1 %2303 }
 0x2ae   : > { %v2306_v38 = vunpack.i.h.bf16 %v2304_v58  ;;  %v2305_v60 = vunpack.i.l.bf16 %v2304_v58  ;;  %2179 = vmatprep.subr.bf16.mxu0 %v2178_v57 }
 0x2af   : > { %2167 = vmatpush3.bf16.xpose.msk.msra.mxu1 %vm2665_vm2, %v2162_v50  ;;  %2181 = vmatpush3.bf16.msra.mxu0 %v2178_v57  ;;  %v601_v50 = vld [vmem:[%s2982_s5 + $0x18] sm:$0xff] }
 0x2b0   : > { %2170 = vmatprep.subr.msk.bf16.mxu1 %vm2665_vm2, %v2168_v59  ;;  %2183 = vmatprep.subr.bf16.mxu0 %v2182_v29  ;;  %v2186_v61 = vpack.c.bf16 %v2306_v38, %v2305_v60 }
 0x2b3   : > { %2185 = vmatpush3.bf16.msra.mxu0 %v2182_v29 }
 0x2b4   : > { %2187 = vmatprep.subr.bf16.mxu0 %v2186_v61 }
 0x2b7   : > { %2173 = vmatpush3.bf16.xpose.msk.msra.mxu1 %vm2665_vm2, %v2168_v59  ;;  %2189 = vmatpush3.bf16.msra.mxu0 %v2186_v61 }
 0x2be   : > { %2015 = vmatmul.mubr.msk.f32.vlgmr.msra.gmra.mrb[0].mxu1 %vm630_vm1, %v2686_v62 }
 0x2bf   : > { %2017 = vmatprep.mubr.msk.f32.mxu1 %vm630_vm1, %v592_v63 }
 0x2c2   : > { %2018 = vmatmul.mubr.msk.f32.gmra.mrb[2].mxu1 %vm630_vm1, %v593_v39 }
 0x2c3   : > { %2020 = vmatprep.mubr.msk.f32.mxu1 %vm630_vm1, %v594_v48 }
 0x2c6   : > { %2021 = vmatmul.mubr.msk.f32.gmra.mrb[4].mxu1 %vm630_vm1, %v595_v0 }
 0x2c7   : > { %2023 = vmatprep.mubr.msk.f32.mxu1 %vm630_vm1, %v596_v2 }
 0x2ca   : > { %2024 = vmatmul.mubr.msk.f32.gmra.mrb[6].mxu1 %vm630_vm1, %v597_v3 }
 0x391   : > { %v2016_v10 = vpop.f32.mrb[0].mxu1 }
 0x392   : > { %v743_v11 = vadd.f32 %v2016_v10, %v599_v4  ;;  %v737_v14 = vpop.f32.mrb[1].mxu1 }
 0x393   : > { %v738_v15 = vadd.f32 %v737_v14, %v598_v49 }
 0x394   : > { %v780_v17 = vsel %vm776_vm3, %v743_v11, -inf }
 0x395   : > { %781 = vmax.xlane.f32.xlu1 %v780_v17  ;;  %v2019_v19 = vpop.f32.mrb[2].mxu1  ;;  %v777_v22 = vsel %vm776_vm3, %v738_v15, -inf }
 0x396   : > { %v747_v24 = vpop.f32.mrb[3].mxu1  ;;  %778 = vmax.xlane.f32.xlu0 %v777_v22  ;;  %v753_v51 = vadd.f32 %v2019_v19, %v601_v50 }
 0x397   : > { %v748_v25 = vadd.f32 %v747_v24, %v600_v18 }
 0x398   : > { %v786_v52 = vsel %vm776_vm3, %v753_v51, -inf }
 0x399   : > { %v2022_v30 = vpop.f32.mrb[4].mxu1  ;;  %v783_v31 = vsel %vm776_vm3, %v748_v25, -inf }
 0x39a   : > { %v2717_v32 = vadd.f32 %v2022_v30, %v603_v26  ;;  %v757_v34 = vpop.f32.mrb[5].mxu1  ;;  %784 = vmax.xlane.f32.xlu0 %v783_v31 }
 0x39b   : > { %v2724_v37 = vadd.f32 %v757_v34, %v602_v35 }
 0x39c   : > { %v792_v36 = vsel %vm776_vm3, %v2717_v32, -inf }
 0x39d   : > { %v2025_v40 = vpop.f32.mrb[6].mxu1  ;;  %v789_v20 = vsel %vm776_vm3, %v2724_v37, -inf }
 0x39e   : > { %v767_v42 = vpop.f32.mrb[7].mxu1  ;;  %793 = vmax.xlane.f32.xlu0 %v792_v36  ;;  %v2729_v43 = vadd.f32 %v2025_v40, %v605_v41 }
 0x39f   : > { %v2736_v45 = vadd.f32 %v767_v42, %v604_v44 }
 0x3a0   : > { %v798_v46 = vsel %vm776_vm3, %v2729_v43, -inf }
 0x3a1   : > { %v795_v47 = vsel %vm776_vm3, %v2736_v45, -inf }
 0x3a2   : > { %790 = vmax.xlane.f32.xlu0 %v789_v20 }
 0x3a6   : > { %2308 = vrot.lane.b32.xlu1 %v2625_v6, %s2439_s23  ;;  %799 = vmax.xlane.f32.xlu0 %v798_v46 }
 0x3aa   : > { %796 = vmax.xlane.f32.xlu0 %v795_v47 }
 0x3c0   : > { %2313 = vrot.lane.b32.xlu0 %v2638_v16, %s2439_s23 }
 0x3c4   : > { %1033 = vrot.lane.b32.xlu0 %v592_v63, %s2440_s26 }
 0x3c8   : > { %1037 = vrot.lane.b32.xlu0 %v594_v48, %s2440_s26 }
 0x3ca   : > { %787 = vmax.xlane.f32.xlu1 %v786_v52 }
 0x3cc   : > { %1041 = vrot.lane.b32.xlu0 %v596_v2, %s2440_s26 }
 0x3db   : > { %2318 = vrot.lane.b32.xlu1 %v2648_v23, %s2439_s23 }
 0x3df   : > { %2323 = vrot.lane.b32.xlu1 %v2658_v27, %s2439_s23 }
 0x3e3   : > { %1029 = vrot.lane.b32.xlu1 %v2627_v7, %s2440_s26 }
 0x3e7   : > { %1031 = vrot.lane.b32.xlu1 %v2686_v62, %s2440_s26 }
 0x3eb   : > { %1035 = vrot.lane.b32.xlu1 %v593_v39, %s2440_s26 }
 0x3ef   : > { %1039 = vrot.lane.b32.xlu1 %v595_v0, %s2440_s26 }
 0x3f3   : > { %1043 = vrot.lane.b32.xlu1 %v597_v3, %s2440_s26 }
 0x3f7   : > { %2328 = vrot.lane.b32.xlu1 %v2625_v6, %s2441_s30 }
 0x422   : > { %v782_v53 = vpop.xlane.xlu1 %781 }
 0x423   : > { %v802_v54 = vsub.f32 %v743_v11, %v782_v53  ;;  %v779_v28 = vpop.xlane.xlu0 %778 }
 0x424   : > { %v801_v21 = vsub.f32 %v738_v15, %v779_v28 }
 0x425   : > { %v811_v55 = vmul.f32 1.442695, %v802_v54 }
 0x426   : > { %v809_v56 = vmul.f32 1.442695, %v801_v21  ;;  %v2309_v57 = vpop.permute.xlu1 %2308 }
 0x427   : > { %v2311_v58 = vunpack.i.h.bf16 %v2309_v57  ;;  %v2310_v29 = vunpack.i.l.bf16 %v2309_v57  ;;  %v785_v59 = vpop.xlane.xlu0 %784 }
 0x428   : > { %2363 = vpow2.f32 %v809_v56  ;;  %v803_v7 = vsub.f32 %v748_v25, %v785_v59 }
 0x429   : > { %2365 = vpow2.f32 %v811_v55  ;;  %v2190_v38 = vpack.c.bf16 %v2311_v58, %v2310_v29 }
 0x42a   : > { %v813_v60 = vmul.f32 1.442695, %v803_v7 }
 0x42b   : > { %2192 = vmatprep.subr.msk.bf16.mxu0 %vm2665_vm2, %v2190_v38  ;;  %v794_v61 = vpop.xlane.xlu0 %793 }
 0x42c   : > { %2367 = vpow2.f32 %v813_v60  ;;  %v806_v11 = vsub.f32 %v2717_v32, %v794_v61  ;;  %v1830_v61 = vld [vmem:[%s2982_s5 + $0x48] sm:$0xff] }
 0x42e   : > { %v819_v22 = vmul.f32 1.442695, %v806_v11 }
 0x42f   : > { %v791_v6 = vpop.xlane.xlu0 %790 }
 0x430   : > { %v805_v10 = vsub.f32 %v2724_v37, %v791_v6  ;;  %v1829_v6 = vld [vmem:[%s2982_s5 + $0x40] sm:$0xff] }
 0x432   : > { %v2756_v62 = vpop.eup %2363  ;;  %v817_v17 = vmul.f32 1.442695, %v805_v10 }
 0x433   : > { %v2758_v63 = vpop.eup %2365  ;;  %2042 = vmatprep.mubr.msk.f32.mxu0 %vm776_vm3, %v2756_v62  ;;  %v800_v39 = vpop.xlane.xlu0 %799 }
 0x434   : > { %2043 = vmatmul.mubr.msk.f32.vlgmr.msra.gmra.mrb[8].mxu0 %vm776_vm3, %v2758_v63  ;;  %v808_v25 = vsub.f32 %v2729_v43, %v800_v39 }
 0x435   : > { %2195 = vmatpush3.bf16.xpose.msk.msra.mxu0 %vm2665_vm2, %v2190_v38 }
 0x436   : > { %v2766_v48 = vpop.eup %2367  ;;  %v823_v36 = vmul.f32 1.442695, %v808_v25 }
 0x437   : > { %2045 = vmatprep.mubr.msk.f32.mxu0 %vm776_vm3, %v2766_v48  ;;  %v797_v0 = vpop.xlane.xlu0 %796 }
 0x438   : > { %v807_v18 = vsub.f32 %v2736_v45, %v797_v0 }
 0x43a   : > { %v821_v31 = vmul.f32 1.442695, %v807_v18  ;;  %v1834_v18 = vld [vmem:[%s2982_s5 + $0x68] sm:$0xff] }
 0x43b   : > { %v2314_v2 = vpop.permute.xlu0 %2313 }
 0x43c   : > { %v2316_v3 = vunpack.i.h.bf16 %v2314_v2  ;;  %v2315_v4 = vunpack.i.l.bf16 %v2314_v2 }
 0x43e   : > { %v2196_v49 = vpack.c.bf16 %v2316_v3, %v2315_v4  ;;  %v1832_v4 = vld [vmem:[%s2982_s5 + $0x58] sm:$0xff] }
 0x43f   : > { %v1034_v50 = vpop.permute.xlu0 %1033 }
 0x440   : > { %2198 = vmatprep.subr.msk.bf16.mxu0 %vm2665_vm2, %v2196_v49 }
 0x441   : > { %2201 = vmatpush3.bf16.xpose.msk.msra.mxu0 %vm2665_vm2, %v2196_v49 }
 0x443   : > { %v1038_v52 = vpop.permute.xlu0 %1037 }
 0x447   : > { %v1042_v55 = vpop.permute.xlu0 %1041 }
 0x457   : > { %v788_v14 = vpop.xlane.xlu1 %787 }
 0x458   : > { %v804_v15 = vsub.f32 %v753_v51, %v788_v14 }
 0x45a   : > { %v815_v19 = vmul.f32 1.442695, %v804_v15 }
 0x45b   : > { %v2319_v24 = vpop.permute.xlu1 %2318 }
 0x45c   : > { %2369 = vpow2.f32 %v815_v19  ;;  %v2321_v26 = vunpack.i.h.bf16 %v2319_v24  ;;  %v2320_v30 = vunpack.i.l.bf16 %v2319_v24 }
 0x45d   : > { %2371 = vpow2.f32 %v817_v17  ;;  %v1831_v17 = vld [vmem:[%s2982_s5 + $0x50] sm:$0xff] }
 0x45e   : > { %v2202_v34 = vpack.c.bf16 %v2321_v26, %v2320_v30  ;;  %2373 = vpow2.f32 %v819_v22  ;;  %v1833_v30 = vld [vmem:[%s2982_s5 + $0x60] sm:$0xff] }
 0x45f   : > { %v2324_v35 = vpop.permute.xlu1 %2323  ;;  %2375 = vpow2.f32 %v821_v31 }
 0x460   : > { %v2326_v32 = vunpack.i.h.bf16 %v2324_v35  ;;  %v2325_v37 = vunpack.i.l.bf16 %v2324_v35  ;;  %2204 = vmatprep.subr.msk.bf16.mxu0 %vm2665_vm2, %v2202_v34  ;;  %2377 = vpow2.f32 %v823_v36 }
 0x461   : > { %2207 = vmatpush3.bf16.xpose.msk.msra.mxu0 %vm2665_vm2, %v2202_v34 }
 0x462   : > { %v2208_v40 = vpack.c.bf16 %v2326_v32, %v2325_v37  ;;  %v1836_v32 = vld [vmem:[%s2982_s5 + $0x78] sm:$0xff] }
 0x463   : > { %v1030_v41 = vpop.permute.xlu1 %1029 }
 0x464   : > { %2210 = vmatprep.subr.msk.bf16.mxu0 %vm2665_vm2, %v2208_v40 }
 0x466   : > { %v2784_v42 = vpop.eup %2369 }
 0x467   : > { %v2786_v43 = vpop.eup %2371  ;;  %v1032_v20 = vpop.permute.xlu1 %1031  ;;  %2046 = vmatmul.mubr.msk.f32.gmra.mrb[10].mxu0 %vm776_vm3, %v2784_v42 }
 0x468   : > { %2048 = vmatprep.mubr.msk.f32.mxu0 %vm776_vm3, %v2786_v43  ;;  %v2794_v44 = vpop.eup %2373 }
 0x469   : > { %2213 = vmatpush3.bf16.xpose.msk.msra.mxu0 %vm2665_vm2, %v2208_v40  ;;  %v2796_v45 = vpop.eup %2375 }
 0x46a   : > { %v2802_v47 = vpop.eup %2377 }
 0x46b   : > { %v1036_v46 = vpop.permute.xlu1 %1035  ;;  %2049 = vmatmul.mubr.msk.f32.gmra.mrb[12].mxu0 %vm776_vm3, %v2794_v44 }
 0x46c   : > { %2051 = vmatprep.mubr.msk.f32.mxu0 %vm776_vm3, %v2796_v45 }
 0x46f   : > { %v1040_v51 = vpop.permute.xlu1 %1039  ;;  %2052 = vmatmul.mubr.msk.f32.gmra.mrb[14].mxu0 %vm776_vm3, %v2802_v47 }
 0x470   : > { %2070 = vmatprep.mubr.msk.f32.mxu0 %vm630_vm1, %v1030_v41 }
 0x473   : > { %v1044_v33 = vpop.permute.xlu1 %1043  ;;  %2071 = vmatmul.mubr.msk.f32.vlgmr.msra.gmra.mrb[16].mxu0 %vm630_vm1, %v1032_v20  ;;  %v1835_v20 = vld [vmem:[%s2982_s5 + $0x70] sm:$0xff] }
 0x474   : > { %2073 = vmatprep.mubr.msk.f32.mxu0 %vm630_vm1, %v1034_v50 }
 0x477   : > { %v2329_v53 = vpop.permute.xlu1 %2328  ;;  %2074 = vmatmul.mubr.msk.f32.gmra.mrb[18].mxu0 %vm630_vm1, %v1036_v46 }
 0x478   : > { %v2331_v54 = vunpack.i.h.bf16 %v2329_v53  ;;  %v2330_v28 = vunpack.i.l.bf16 %v2329_v53  ;;  %2076 = vmatprep.mubr.msk.f32.mxu0 %vm630_vm1, %v1038_v52 }
 0x47a   : > { %v2214_v21 = vpack.c.bf16 %v2331_v54, %v2330_v28 }
 0x47b   : > { %2077 = vmatmul.mubr.msk.f32.gmra.mrb[20].mxu0 %vm630_vm1, %v1040_v51 }
 0x47c   : > { %2079 = vmatprep.mubr.msk.f32.mxu0 %vm630_vm1, %v1042_v55  ;;  %2215 = vmatprep.subr.bf16.mxu0 %v2214_v21 }
 0x47d   : > { %2238 = vmatprep.subr.bf16.mxu1 %v2214_v21  ;;  %2217 = vmatpush3.bf16.msra.mxu0 %v2214_v21 }
 0x47e   : > { %2242 = vmatpush3.bf16.msra.mxu1 %v2214_v21 }
 0x47f   : > { %2080 = vmatmul.mubr.msk.f32.gmra.mrb[22].mxu0 %vm630_vm1, %v1044_v33 }
 0x507   : > { %v2814_v56 = vpop.f32.mrb[8].mxu0 }
 0x508   : > { %v2816_v57 = vpop.f32.mrb[9].mxu0 }
 0x53a   : > { %v2818_v58 = vpop.f32.mrb[10].mxu0 }
 0x53b   : > { %v2820_v29 = vpop.f32.mrb[11].mxu0 }
 0x53e   : > { %v2822_v59 = vpop.f32.mrb[12].mxu0 }
 0x53f   : > { %v2824_v7 = vpop.f32.mrb[13].mxu0 }
 0x542   : > { %v2826_v38 = vpop.f32.mrb[14].mxu0 }
 0x543   : > { %v2828_v60 = vpop.f32.mrb[15].mxu0 }
 0x546   : > { %v2072_v39 = vpop.f32.mrb[16].mxu0 }
 0x547   : > { %v1165_v0 = vadd.f32 %v2072_v39, %v1830_v61  ;;  %v1159_v2 = vpop.f32.mrb[17].mxu0 }
 0x548   : > { %v1160_v3 = vadd.f32 %v1829_v6, %v1159_v2 }
 0x549   : > { %v1201_v49 = vsel %vm776_vm3, %v1165_v0, -inf }
 0x54a   : > { %1202 = vmax.xlane.f32.xlu1 %v1201_v49  ;;  %v2075_v10 = vpop.f32.mrb[18].mxu0  ;;  %v1198_v11 = vsel %vm776_vm3, %v1160_v3, -inf }
 0x54b   : > { %v1175_v14 = vadd.f32 %v2075_v10, %v1832_v4  ;;  %v1169_v15 = vpop.f32.mrb[19].mxu0  ;;  %1199 = vmax.xlane.f32.xlu0 %v1198_v11 }
 0x54c   : > { %v1170_v22 = vadd.f32 %v1831_v17, %v1169_v15 }
 0x54d   : > { %v1207_v19 = vsel %vm776_vm3, %v1175_v14, -inf }
 0x54e   : > { %v2078_v24 = vpop.f32.mrb[20].mxu0  ;;  %v1204_v36 = vsel %vm776_vm3, %v1170_v22, -inf }
 0x54f   : > { %v1185_v25 = vadd.f32 %v2078_v24, %v1834_v18  ;;  %v1179_v26 = vpop.f32.mrb[21].mxu0  ;;  %1208 = vmax.xlane.f32.xlu0 %v1207_v19 }
 0x550   : > { %v1180_v34 = vadd.f32 %v1833_v30, %v1179_v26 }
 0x551   : > { %v1213_v31 = vsel %vm776_vm3, %v1185_v25, -inf }
 0x552   : > { %1214 = vmax.xlane.f32.xlu1 %v1213_v31  ;;  %v2081_v35 = vpop.f32.mrb[22].mxu0  ;;  %v1210_v41 = vsel %vm776_vm3, %v1180_v34, -inf }
 0x553   : > { %v1189_v37 = vpop.f32.mrb[23].mxu0  ;;  %1205 = vmax.xlane.f32.xlu0 %v1204_v36  ;;  %v1195_v40 = vadd.f32 %v2081_v35, %v1836_v32 }
 0x554   : > { %v1190_v46 = vadd.f32 %v1835_v20, %v1189_v37 }
 0x555   : > { %v1219_v50 = vsel %vm776_vm3, %v1195_v40, -inf }
 0x556   : > { %v1216_v51 = vsel %vm776_vm3, %v1190_v46, -inf }
 0x557   : > { %1211 = vmax.xlane.f32.xlu0 %v1210_v41 }
 0x55b   : > { %1220 = vmax.xlane.f32.xlu0 %v1219_v50 }
 0x55f   : > { %1217 = vmax.xlane.f32.xlu0 %v1216_v51 }
 0x563   : > { %2338 = vrot.lane.b32.xlu1 %v2648_v23, %s2441_s30 }
 0x567   : > { %2343 = vrot.lane.b32.xlu1 %v2658_v27, %s2441_s30 }
 0x575   : > { %2333 = vrot.lane.b32.xlu0 %v2638_v16, %s2441_s30 }
 0x5d7   : > { %v1203_v33 = vpop.xlane.xlu1 %1202 }
 0x5d8   : > { %v1223_v52 = vsub.f32 %v1165_v0, %v1203_v33  ;;  %v1200_v53 = vpop.xlane.xlu0 %1199 }
 0x5d9   : > { %v1222_v54 = vsub.f32 %v1160_v3, %v1200_v53 }
 0x5da   : > { %v1232_v28 = vmul.f32 1.442695, %v1223_v52 }
 0x5db   : > { %v1230_v21 = vmul.f32 1.442695, %v1222_v54 }
 0x5dc   : > { %2379 = vpow2.f32 %v1232_v28  ;;  %v1209_v55 = vpop.xlane.xlu0 %1208 }
 0x5dd   : > { %2381 = vpow2.f32 %v1230_v21  ;;  %v1225_v61 = vsub.f32 %v1175_v14, %v1209_v55 }
 0x5df   : > { %v1236_v6 = vmul.f32 1.442695, %v1225_v61  ;;  %v1215_v39 = vpop.xlane.xlu1 %1214 }
 0x5e0   : > { %v1227_v2 = vsub.f32 %v1185_v25, %v1215_v39  ;;  %v1206_v23 = vpop.xlane.xlu0 %1205  ;;  %v828_v39 = vsel %vm776_vm3, %v2758_v63, 0.0  ;;  %v840_v63 = vsel %vm776_vm3, %v2794_v44, 0.0  ;;  %v843_v44 = vsel %vm776_vm3, %v2796_v45, 0.0  ;;  %v1019_v45 = vld [vmem:[%s2983_s6 + $0x8] sm:$0xff] }
 0x5e1   : > { %2383 = vpow2.f32 %v1236_v6  ;;  %v1224_v4 = vsub.f32 %v1170_v22, %v1206_v23  ;;  %v834_v23 = vsel %vm776_vm3, %v2784_v42, 0.0  ;;  %v837_v42 = vsel %vm776_vm3, %v2786_v43, 0.0  ;;  %v1018_v43 = vld [vmem:[%s2983_s6] sm:$0xff] }
 0x5e2   : > { %v1240_v27 = vmul.f32 1.442695, %v1227_v2 }
 0x5e3   : > { %v1234_v49 = vmul.f32 1.442695, %v1224_v4  ;;  %v2339_v24 = vpop.permute.xlu1 %2338  ;;  %v825_v4 = vsel %vm776_vm3, %v2756_v62, 0.0  ;;  %v846_v62 = vsel %vm776_vm3, %v2802_v47, 0.0 }
 0x5e4   : > { %2385 = vpow2.f32 %v1240_v27  ;;  %v1212_v16 = vpop.xlane.xlu0 %1211  ;;  %v2341_v32 = vunpack.i.h.bf16 %v2339_v24  ;;  %v831_v27 = vsel %vm776_vm3, %v2766_v48, 0.0  ;;  %v1439_v48 = vld [vmem:[%s2983_s6 + $0x10] sm:$0xff] }
 0x5e5   : > { %2387 = vpow2.f32 %v1234_v49  ;;  %v1226_v0 = vsub.f32 %v1180_v34, %v1212_v16  ;;  %v1440_v49 = vld [vmem:[%s2983_s6 + $0x18] sm:$0xff]  ;;  %v2234_v16 = vpack.c.bf16 %v1019_v45, %v1018_v43 }
 0x5e6   : > { %v2868_v10 = vpop.eup %2379  ;;  %v2230_v47 = vpack.c.bf16 %v1440_v49, %v1439_v48 }
 0x5e7   : > { %v2382_v3 = vpop.eup %2381  ;;  %v1238_v11 = vmul.f32 1.442695, %v1226_v0  ;;  %v1249_v15 = vsel %vm776_vm3, %v2868_v10, 0.0  ;;  %v2344_v51 = vpop.permute.xlu1 %2343 }
 0x5e8   : > { %1250 = vadd.xlane.f32.xlu0 %v1249_v15  ;;  %2098 = vmatprep.mubr.msk.f32.mxu0 %vm776_vm3, %v2382_v3  ;;  %v1221_v14 = vpop.xlane.xlu0 %1220  ;;  %v1246_v17 = vsel %vm776_vm3, %v2382_v3, 0.0  ;;  %v2346_v54 = vunpack.i.h.bf16 %v2344_v51  ;;  %v2345_v28 = vunpack.i.l.bf16 %v2344_v51 }
 0x5e9   : > { %2389 = vpow2.f32 %v1238_v11  ;;  %v1229_v18 = vsub.f32 %v1195_v40, %v1221_v14  ;;  %1247 = vadd.xlane.f32.xlu1 %v1246_v17  ;;  %v2340_v40 = vunpack.i.l.bf16 %v2339_v24 }
 0x5ea   : > { %v2226_v61 = vpack.c.bf16 %v2346_v54, %v2345_v28 }
 0x5eb   : > { %v2384_v19 = vpop.eup %2383  ;;  %v1244_v22 = vmul.f32 1.442695, %v1229_v18  ;;  %v2222_v53 = vpack.c.bf16 %v2341_v32, %v2340_v40 }
 0x5ec   : > { %v1218_v25 = vpop.xlane.xlu0 %1217  ;;  %v1255_v26 = vsel %vm776_vm3, %v2384_v19, 0.0 }
 0x5ed   : > { %2391 = vpow2.f32 %v1244_v22  ;;  %v1228_v30 = vsub.f32 %v1190_v46, %v1218_v25  ;;  %1256 = vadd.xlane.f32.xlu1 %v1255_v26 }
 0x5ee   : > { %v2386_v31 = vpop.eup %2385 }
 0x5ef   : > { %v2388_v34 = vpop.eup %2387  ;;  %v1242_v35 = vmul.f32 1.442695, %v1228_v30  ;;  %v1261_v36 = vsel %vm776_vm3, %v2386_v31, 0.0 }
 0x5f0   : > { %v2334_v37 = vpop.permute.xlu0 %2333  ;;  %v1252_v41 = vsel %vm776_vm3, %v2388_v34, 0.0 }
 0x5f1   : > { %2393 = vpow2.f32 %v1242_v35  ;;  %v2336_v20 = vunpack.i.h.bf16 %v2334_v37  ;;  %v2335_v50 = vunpack.i.l.bf16 %v2334_v37  ;;  %1262 = vadd.xlane.f32.xlu1 %v1261_v36  ;;  %1253 = vadd.xlane.f32.xlu0 %v1252_v41 }
 0x5f3   : > { %v2390_v33 = vpop.eup %2389  ;;  %v2218_v52 = vpack.c.bf16 %v2336_v20, %v2335_v50 }
 0x5f4   : > { %v1258_v46 = vsel %vm776_vm3, %v2390_v33, 0.0 }
 0x5f5   : > { %1259 = vadd.xlane.f32.xlu0 %v1258_v46  ;;  %2219 = vmatprep.subr.bf16.mxu0 %v2218_v52 }
 0x5f6   : > { %2239 = vmatprep.subr.bf16.mxu1 %v2218_v52  ;;  %2221 = vmatpush3.bf16.msra.mxu0 %v2218_v52 }
 0x5f7   : > { %v2392_v21 = vpop.eup %2391  ;;  %2243 = vmatpush3.bf16.msra.mxu1 %v2218_v52  ;;  %2223 = vmatprep.subr.bf16.mxu0 %v2222_v53 }
 0x5f8   : > { %2240 = vmatprep.subr.bf16.mxu1 %v2222_v53  ;;  %v1267_v55 = vsel %vm776_vm3, %v2392_v21, 0.0 }
 0x5f9   : > { %1268 = vadd.xlane.f32.xlu1 %v1267_v55 }
 0x5fa   : > { %2225 = vmatpush3.bf16.msra.mxu0 %v2222_v53 }
 0x5fb   : > { %v2394_v6 = vpop.eup %2393  ;;  %2244 = vmatpush3.bf16.msra.mxu1 %v2222_v53  ;;  %2227 = vmatprep.subr.bf16.mxu0 %v2226_v61 }
 0x5fc   : > { %2241 = vmatprep.subr.bf16.mxu1 %v2226_v61  ;;  %2107 = vmatprep.mubr.msk.f32.mxu1 %vm776_vm3, %v2394_v6  ;;  %v1264_v2 = vsel %vm776_vm3, %v2394_v6, 0.0 }
 0x5fd   : > { %829 = vadd.xlane.f32.xlu1 %v828_v39  ;;  %1265 = vadd.xlane.f32.xlu0 %v1264_v2 }
 0x5fe   : > { %2229 = vmatpush3.bf16.msra.mxu0 %v2226_v61 }
 0x5ff   : > { %2245 = vmatpush3.bf16.msra.mxu1 %v2226_v61 }
 0x600   : > { %2231 = vmatprep.subr.bf16.mxu1 %v2230_v47 }
 0x601   : > { %835 = vadd.xlane.f32.xlu1 %v834_v23  ;;  %826 = vadd.xlane.f32.xlu0 %v825_v4 }
 0x602   : > { %2099 = vmatmul.mubr.msk.f32.vlgmr.msra.gmra.mrb[24].mxu0 %vm776_vm3, %v2868_v10  ;;  %2108 = vmatmul.mubr.msk.f32.vlgmr.msra.gmra.mrb[8].mxu1 %vm776_vm3, %v2392_v21 }
 0x603   : > { %2101 = vmatprep.mubr.msk.f32.mxu0 %vm776_vm3, %v2388_v34  ;;  %2233 = vmatpush3.bf16.msra.mxu1 %v2230_v47 }
 0x604   : > { %2235 = vmatprep.subr.bf16.mxu1 %v2234_v16 }
 0x605   : > { %841 = vadd.xlane.f32.xlu1 %v840_v63  ;;  %832 = vadd.xlane.f32.xlu0 %v831_v27 }
 0x606   : > { %2102 = vmatmul.mubr.msk.f32.gmra.mrb[26].mxu0 %vm776_vm3, %v2384_v19 }
 0x607   : > { %2104 = vmatprep.mubr.msk.f32.mxu0 %vm776_vm3, %v2390_v33 }
 0x609   : > { %847 = vadd.xlane.f32.xlu1 %v846_v62  ;;  %838 = vadd.xlane.f32.xlu0 %v837_v42 }
 0x60a   : > { %2105 = vmatmul.mubr.msk.f32.gmra.mrb[28].mxu0 %vm776_vm3, %v2386_v31 }
 0x60d   : > { %844 = vadd.xlane.f32.xlu0 %v843_v44 }
 0x675   : > { %v1251_v0 = vpop.xlane.xlu0 %1250 }
 0x676   : > { %v1248_v10 = vpop.xlane.xlu1 %1247 }
 0x677   : > { %2395 = vrcp.f32 %v1248_v10 }
 0x678   : > { %2397 = vrcp.f32 %v1251_v0 }
 0x67a   : > { %v1257_v11 = vpop.xlane.xlu1 %1256 }
 0x67e   : > { %v1254_v3 = vpop.xlane.xlu0 %1253  ;;  %v1263_v14 = vpop.xlane.xlu1 %1262 }
 0x67f   : > { %2399 = vrcp.f32 %v1254_v3 }
 0x680   : > { %2401 = vrcp.f32 %v1257_v11 }
 0x681   : > { %v2396_v30 = vpop.eup %2395 }
 0x682   : > { %v1260_v15 = vpop.xlane.xlu0 %1259  ;;  %v2398_v35 = vpop.eup %2397 }
 0x683   : > { %2403 = vrcp.f32 %v1260_v15 }
 0x684   : > { %2405 = vrcp.f32 %v1263_v14  ;;  %v2428_v14 = vld [vmem:[%s2503_s10] sm:$0xff] }
 0x686   : > { %v1269_v18 = vpop.xlane.xlu1 %1268 }
 0x689   : > { %v2400_v40 = vpop.eup %2399 }
 0x68a   : > { %v1266_v17 = vpop.xlane.xlu0 %1265  ;;  %v830_v22 = vpop.xlane.xlu1 %829 }
 0x68b   : > { %2407 = vrcp.f32 %v1266_v17  ;;  %v2402_v50 = vpop.eup %2401 }
 0x68d   : > { %v2404_v53 = vpop.eup %2403 }
 0x68e   : > { %v827_v19 = vpop.xlane.xlu0 %826  ;;  %v836_v32 = vpop.xlane.xlu1 %835 }
 0x68f   : > { %2409 = vrcp.f32 %v827_v19  ;;  %v2406_v21 = vpop.eup %2405 }
 0x690   : > { %2411 = vrcp.f32 %v1269_v18 }
 0x691   : > { %2413 = vrcp.f32 %v830_v22 }
 0x692   : > { %v833_v24 = vpop.xlane.xlu0 %832  ;;  %v842_v54 = vpop.xlane.xlu1 %841 }
 0x693   : > { %2415 = vrcp.f32 %v833_v24 }
 0x694   : > { %2417 = vrcp.f32 %v836_v32 }
 0x695   : > { %v2408_v61 = vpop.eup %2407 }
 0x696   : > { %v839_v51 = vpop.xlane.xlu0 %838  ;;  %v848_v63 = vpop.xlane.xlu1 %847 }
 0x697   : > { %2419 = vrcp.f32 %v839_v51 }
 0x698   : > { %2421 = vrcp.f32 %v842_v54 }
 0x699   : > { %v2410_v23 = vpop.eup %2409 }
 0x69a   : > { %v845_v39 = vpop.xlane.xlu0 %844  ;;  %v2412_v4 = vpop.eup %2411  ;;  %v1003_v42 = vmul.f32 %v2410_v23, %v2816_v57 }
 0x69b   : > { %2423 = vrcp.f32 %v845_v39  ;;  %v2414_v62 = vpop.eup %2413 }
 0x69c   : > { %2425 = vrcp.f32 %v848_v63  ;;  %v1005_v48 = vmul.f32 %v2414_v62, %v2814_v56 }
 0x69d   : > { %v2416_v44 = vpop.eup %2415 }
 0x69e   : > { %v2418_v49 = vpop.eup %2417  ;;  %v1007_v47 = vmul.f32 %v2416_v44, %v2820_v29 }
 0x69f   : > { %v1009_v45 = vmul.f32 %v2418_v49, %v2818_v58 }
 0x6a1   : > { %v2420_v43 = vpop.eup %2419 }
 0x6a2   : > { %v1011_v57 = vmul.f32 %v2420_v43, %v2824_v7  ;;  %v1877_v7 = vld [vmem:[%s2984_s7] ss:$0 sm:$0xff] }
 0x6d5   : > { %v2100_v25 = vpop.f32.mrb[24].mxu0  ;;  %v2109_v26 = vpop.f32.mrb[8].mxu1 }
 0x6d6   : > { %v1384_v31 = vpop.f32.mrb[25].mxu0  ;;  %v1414_v34 = vpop.f32.mrb[9].mxu1  ;;  %v1426_v37 = vmul.f32 %v2398_v35, %v2100_v25  ;;  %v1438_v27 = vmul.f32 %v2412_v4, %v2109_v26 }
 0x6d7   : > { %v1424_v36 = vmul.f32 %v2396_v30, %v1384_v31  ;;  %v1436_v2 = vmul.f32 %v2408_v61, %v1414_v34 }
 0x6d9   : > { %v2103_v41 = vpop.f32.mrb[26].mxu0  ;;  %2114 = vmatprep.mubr.msk.f32.mxu1 %vm630_vm1, %v1424_v36 }
 0x6da   : > { %v1394_v20 = vpop.f32.mrb[27].mxu0  ;;  %2115 = vmatmul.mubr.msk.f32.vlgmr.msra.gmra.mrb[10].mxu1 %vm630_vm1, %v1426_v37  ;;  %v1430_v52 = vmul.f32 %v2402_v50, %v2103_v41 }
 0x6db   : > { %v1428_v33 = vmul.f32 %v2400_v40, %v1394_v20  ;;  %2237 = vmatpush3.bf16.msra.mxu1 %v2234_v16  ;;  %v2422_v16 = vpop.eup %2421 }
 0x6dc   : > { %v2424_v0 = vpop.eup %2423  ;;  %v1013_v56 = vmul.f32 %v2422_v16, %v2822_v59 }
 0x6dd   : > { %v2106_v46 = vpop.f32.mrb[28].mxu0  ;;  %2117 = vmatprep.mubr.msk.f32.mxu1 %vm630_vm1, %v1428_v33  ;;  %v2426_v29 = vpop.eup %2425  ;;  %v1015_v10 = vmul.f32 %v2424_v0, %v2828_v60 }
 0x6de   : > { %v1404_v28 = vpop.f32.mrb[29].mxu0  ;;  %2118 = vmatmul.mubr.msk.f32.gmra.mrb[12].mxu1 %vm630_vm1, %v1430_v52  ;;  %v1434_v6 = vmul.f32 %v2406_v21, %v2106_v46  ;;  %v1017_v58 = vmul.f32 %v2426_v29, %v2826_v38  ;;  %v2427_v38 = vld [vmem:[%s2503_s10 + $0x8] sm:$0xff] }
 0x6df   : > { %v1432_v55 = vmul.f32 %v2404_v53, %v1404_v28 }
 0x6e1   : > { %2120 = vmatprep.mubr.msk.f32.mxu1 %vm630_vm1, %v1432_v55 }
 0x6e2   : > { %2121 = vmatmul.mubr.msk.f32.gmra.mrb[14].mxu1 %vm630_vm1, %v1434_v6 }
 0x6e3   : > { %2123 = vmatprep.mubr.msk.f32.mxu1 %vm630_vm1, %v1436_v2 }
 0x6e6   : > { %2124 = vmatmul.mubr.msk.f32.gmra.mrb[16].mxu1 %vm630_vm1, %v1438_v27 }
 0x6e7   : > { %2130 = vmatprep.mubr.msk.f32.mxu1 %vm630_vm1, %v1003_v42 }
 0x6ea   : > { %2131 = vmatmul.mubr.msk.f32.vlgmr.msra.gmra.mrb[10].mxu1 %vm630_vm1, %v1005_v48 }
 0x6eb   : > { %2133 = vmatprep.mubr.msk.f32.mxu1 %vm630_vm1, %v1007_v47 }
 0x6ee   : > { %2134 = vmatmul.mubr.msk.f32.gmra.mrb[12].mxu1 %vm630_vm1, %v1009_v45 }
 0x6ef   : > { %2136 = vmatprep.mubr.msk.f32.mxu1 %vm630_vm1, %v1011_v57 }
 0x6f2   : > { %2137 = vmatmul.mubr.msk.f32.gmra.mrb[14].mxu1 %vm630_vm1, %v1013_v56 }
 0x6f3   : > { %2139 = vmatprep.mubr.msk.f32.mxu1 %vm630_vm1, %v1015_v10 }
 0x6f6   : > { %2140 = vmatmul.mubr.msk.f32.gmra.mrb[16].mxu1 %vm630_vm1, %v1017_v58 }
 0x7bd   : > { %v2132_v3 = vpop.f32.mrb[10].mxu1 }
 0x7be   : > { %v1707_v11 = vadd.f32 %v2132_v3, %v1877_v7  ;;  %v1660_v15 = vpop.f32.mrb[11].mxu1 }
 0x7bf   : > { %v1706_v59 = vadd.f32 %v1877_v7, %v1660_v15 }
 0x7c0   : > { %v1715_v60 = vadd.f32 %v2427_v38, %v1707_v11 }
 0x7c1   : > { %v1714_v17 = vadd.f32 %v2428_v14, %v1706_v59  ;;  %v2135_v18 = vpop.f32.mrb[12].mxu1 }
 0x7c2   : > { %1723 = vst.msk [vmem:[%s2948_s20 + $0x8] sm:$0xff] %vm316_vm0, %v1715_v60  ;;  %v1709_v19 = vadd.f32 %v2135_v18, %v1877_v7  ;;  %v1670_v22 = vpop.f32.mrb[13].mxu1 }
 0x7c3   : > { %1722 = vst.msk [vmem:[%s2948_s20] sm:$0xff] %vm316_vm0, %v1714_v17  ;;  %v1708_v24 = vadd.f32 %v1877_v7, %v1670_v22 }
 0x7c4   : > { %v1717_v25 = vadd.f32 %v1709_v19, %v2514_v5 }
 0x7c5   : > { %v1716_v26 = vadd.f32 %v1708_v24, %v2507_v1  ;;  %v2138_v30 = vpop.f32.mrb[14].mxu1 }
 0x7c6   : > { %1725 = vst.msk [vmem:[%s2948_s20 + $0x18] sm:$0xff] %vm316_vm0, %v1717_v25  ;;  %v1711_v31 = vadd.f32 %v2138_v30, %v1877_v7  ;;  %v1680_v34 = vpop.f32.mrb[15].mxu1 }
 0x7c7   : > { %1724 = vst.msk [vmem:[%s2948_s20 + $0x10] sm:$0xff] %vm316_vm0, %v1716_v26  ;;  %v1710_v35 = vadd.f32 %v1877_v7, %v1680_v34 }
 0x7c8   : > { %v1719_v36 = vadd.f32 %v1711_v31, %v2523_v9 }
 0x7c9   : > { %v1718_v32 = vadd.f32 %v1710_v35, %v2520_v8  ;;  %v2141_v37 = vpop.f32.mrb[16].mxu1 }
 0x7ca   : > { %1727 = vst.msk [vmem:[%s2948_s20 + $0x28] sm:$0xff] %vm316_vm0, %v1719_v36  ;;  %v1713_v5 = vadd.f32 %v2141_v37, %v1877_v7  ;;  %v1690_v41 = vpop.f32.mrb[17].mxu1 }
 0x7cb   : > { %1726 = vst.msk [vmem:[%s2948_s20 + $0x20] sm:$0xff] %vm316_vm0, %v1718_v32  ;;  %v1712_v1 = vadd.f32 %v1877_v7, %v1690_v41 }
 0x7cc   : > { %v1721_v40 = vadd.f32 %v1713_v5, %v2533_v13 }
 0x7cd   : > { %v1720_v20 = vadd.f32 %v1712_v1, %v2530_v12 }
 0x7ce   : > { %1729 = vst.msk [vmem:[%s2948_s20 + $0x38] sm:$0xff] %vm316_vm0, %v1721_v40 }
 0x7cf   : > { %1728 = vst.msk [vmem:[%s2948_s20 + $0x30] sm:$0xff] %vm316_vm0, %v1720_v20 }
 0x7d0 PF: > { %s18_s27 = sadd.s32 1, %s2435_s27  }
 0x7d1   : > { %p15_p4 = scmp.ge.s32.totalorder %s18_s27, 4  }
 0x7d3   :  { %17 = sbr.rel (!%p15_p4) target bundleno = 1 (0x1), region = 83 }

// kernel: basic_layer_forward.4
= control target key start
LH: loop header
LB: loop body
LE: loop exit
PB: predicated region body
PF: predicated region fallthrough
CT: control target
= control target key end

     0   :  { %13 = vsyncpa [#allocation3], 0  ;;  %s2564_s27 = smov 0   ;;  %s3081_s0 = inlined_call_operand.vmem [shape: f32[2,64,32], index: 0, kind: input, shape index: {}, may-alias: {0,8}]   ;;  %s3082_s1 = inlined_call_operand.vmem [shape: f32[1,32], index: 1, kind: input, shape index: {}]   ;;  %s3083_s2 = inlined_call_operand.vmem [shape: f32[1,32], index: 2, kind: input, shape index: {}]   ;;  %s3084_s3 = inlined_call_operand.vmem [shape: f32[32,96], index: 3, kind: input, shape index: {}]   ;;  %s3085_s4 = inlined_call_operand.vmem [shape: f32[1,96], index: 4, kind: input, shape index: {}]   ;;  %s3086_s5 = inlined_call_operand.vmem [shape: f32[2,64,64], index: 5, kind: input, shape index: {}]   ;;  %s3087_s6 = inlined_call_operand.hbm [shape: f32[32,32], index: 6, kind: input, shape index: {}]   ;;  %s3088_s7 = inlined_call_operand.vmem [shape: f32[1,32], index: 7, kind: input, shape index: {}]   ;;  %s3089_s8 = inlined_call_operand.vmem [shape: f32[2,64,32], index: 8, kind: output, shape index: {}, may-alias: {0,8}]  }
   0x1 LB: > { %s2570_s28 = sadd.s32 4294967295, %s2509_s27   ;;  %p1814_p0 = scmp.ge.s32.totalorder %s2509_s27, 1  ;;  %s2509_s27 = sphi %s2564_s27, %s19_s27  }
   0x2   : > { %p223_p1 = scmp.lt.s32.totalorder %s2509_s27, 3  ;;  %s2511_s29 = smov [#allocation2]  }
   0x3   : > { %s250_s30 = sshll.u32 %s2511_s29, 4  ;;  %p3090_p3 = scmp.eq.s32.totalorder %s2570_s28, 0  ;;  %s251_s30 = int_to_ptr.vmem [resolvable:$true] %s250_s30 }
   0x4   : > { %p2574_p2 = pnand %p1814_p0, %p223_p1  ;;  %s2471_s13 = scalar_lea.hbm %s3087_s6, 512 }
   0x5   : > { %p2472_p6 = scmp.ne.s32.totalorder %s3087_s6, %s2471_s13  ;;  %p2478_p10 = scmp.lt.u32.totalorder %s2471_s13, %s3087_s6 }
   0x6   : > { %s3092_s9 = scalar_select %p2574_p2, 1, 0 }
   0x7   : > { %p2287_p4 = pneg %p2574_p2 }
   0x9   : > { %p2583_p5 = pnand %p3090_p3, %p2287_p4 }
   0xb   : > { %p2473_p7 = pneg %p2583_p5 }
   0xd   : > { %p2474_p8 = pnand %p2473_p7, %p2472_p6 }
   0xf   : > { %p2475_p9 = pneg %p2474_p8 }
  0x11   : > { %p2480_p11 = pnand %p2478_p10, %p2475_p9 }
  0x13   : > { %2483 = shalt.err (!%p2480_p11)
}
  0x14   : > { %s2484_s18 = scalar_lea.vmem %s251_s30, 512  ;;  %p2492_p1 = scmp.lt.s32.totalorder %s251_s30, %s251_s30 }
  0x15   : > { %p2485_p12 = scmp.ne.s32.totalorder %s251_s30, %s2484_s18  ;;  %p2493_p4 = scmp.lt.s32.totalorder %s2484_s18, %s2484_s18 }
  0x17   : > { %p2487_p13 = pnand %p2485_p12, %p2473_p7  ;;  %p2494_p3 = por %p2493_p4, %p2492_p1 }
  0x19   : > { %p2488_p0 = pneg %p2487_p13 }
  0x1b   : > { %p2495_p2 = pnand %p2494_p3, %p2488_p0 }
  0x1d   : > { %2498 = shalt.err (!%p2495_p2)
}
  0x1e   : > { %s2512_s19 = smov 128   ;;  %s2513_s20 = smov 8  }
  0x1f   : > { %2290 = dma.hbm_to_vmem [thread:$0]  (!%p2583_p5), %s3087_s6, 512, %s251_s30, [#allocation3], %s2512_s19, %s2512_s19, %s2513_s20  }
  0x20   : > { %p3094_p6 = scmp.ne.s32.totalorder %s3092_s9, 0 }
  0x21   : > { %p3095_p8 = scmp.eq.s32.totalorder (!%p3094_p6), %s2570_s28, 0 }
  0x22   : > { %277 = sbr.rel (%p3094_p6) target bundleno = 2031 (0x7ef), region = 52 }
  0x29   : > { %2504 = dma.done.wait (%p3095_p8), [#allocation3], 512   ;;  %p3096_p7 = pmov %p3095_p8 }
  0x2a   : > { %p311_p2 = scmp.lt.s32.totalorder %s2570_s28, 1  ;;  %vm331_vm0 = vcmask 261120   ;;  %v465_v56 = vld [vmem:[%s3084_s3] sm:$0xff]  ;;  %v466_v57 = vld [vmem:[%s3084_s3 + $0x8] sm:$0xff]  ;;  %v467_v59 = vld [vmem:[%s3084_s3 + $0x10] sm:$0xff]  ;;  %vm645_vm1 = vcmask 130048  }
  0x2b   : > { %2506 = vsyncadd (%p3096_p7), [#allocation3], 4294966784  ;;  %v2171_v58 = vpack.c.bf16 %v466_v57, %v465_v56  ;;  %v468_v60 = vld [vmem:[%s3084_s3 + $0x18] sm:$0xff]  ;;  %s2514_s21 = smov 96   ;;  %s2515_s22 = smov 64   ;;  %vm791_vm3 = vcmask 523264  }
  0x2c   : > { %s3100_s28 = smov (!%p311_p2, %s2570_s28), 1  ;;  %v2175_v61 = vpack.c.bf16 %v468_v60, %v467_v59  ;;  %vm2781_vm2 = vmpackc.low %vm645_vm1, %vm645_vm1  ;;  %s2516_s19 = smov 80  }
  0x2d   : > { %s1909_s23 = sshll.u32 %s3100_s28, 6  ;;  %2172 = vmatprep.subr.bf16.mxu0 %v2171_v58  ;;  %s2518_s24 = smov 48  }
  0x2e   : > { %s2619_s26 = scalar_lea.vmem %s3081_s0, %s1909_s23  ;;  %2174 = vmatpush3.bf16.msra.mxu0 %v2171_v58  ;;  %s3052_s30 = scalar_lea.vmem %s3089_s8, %s1909_s23 }
  0x2f   : > { %v321_v0 = vld [vmem:[%s2619_s26] sm:$0xff]  ;;  %v2623_v1 = vld [vmem:[%s2619_s26 + $0x10] sm:$0xff]  ;;  %v322_v2 = vld [vmem:[%s2619_s26 + $0x8] sm:$0xff]  ;;  %2176 = vmatprep.subr.bf16.mxu0 %v2175_v61 }
  0x30   : > { %v332_v3 = vsel %vm331_vm0, %v321_v0, 0.0  ;;  %v338_v4 = vsel %vm331_vm0, %v2623_v1, 0.0  ;;  %v2630_v5 = vld [vmem:[%s2619_s26 + $0x18] sm:$0xff]  ;;  %v335_v6 = vsel %vm331_vm0, %v322_v2, 0.0  ;;  %v2636_v8 = vld [vmem:[%s2619_s26 + $0x20] sm:$0xff]  ;;  %v2639_v9 = vld [vmem:[%s2619_s26 + $0x28] sm:$0xff] }
  0x31   : > { %333 = vadd.xlane.f32.xlu0 %v332_v3  ;;  %339 = vadd.xlane.f32.xlu1 %v338_v4  ;;  %v341_v7 = vsel %vm331_vm0, %v2630_v5, 0.0  ;;  %v344_v10 = vsel %vm331_vm0, %v2636_v8, 0.0  ;;  %v347_v11 = vsel %vm331_vm0, %v2639_v9, 0.0  ;;  %v2646_v12 = vld [vmem:[%s2619_s26 + $0x30] sm:$0xff]  ;;  %v2649_v13 = vld [vmem:[%s2619_s26 + $0x38] sm:$0xff] }
  0x32   : > { %v350_v14 = vsel %vm331_vm0, %v2646_v12, 0.0  ;;  %v353_v15 = vsel %vm331_vm0, %v2649_v13, 0.0  ;;  %2178 = vmatpush3.bf16.msra.mxu0 %v2175_v61 }
  0x35   : > { %336 = vadd.xlane.f32.xlu0 %v335_v6  ;;  %342 = vadd.xlane.f32.xlu1 %v341_v7 }
  0x39   : > { %345 = vadd.xlane.f32.xlu0 %v344_v10  ;;  %348 = vadd.xlane.f32.xlu1 %v347_v11 }
  0x3d   : > { %351 = vadd.xlane.f32.xlu0 %v350_v14  ;;  %354 = vadd.xlane.f32.xlu1 %v353_v15 }
  0xbe   : > { %v334_v16 = vpop.xlane.xlu0 %333  ;;  %v340_v17 = vpop.xlane.xlu1 %339 }
  0xbf   : > { %v357_v18 = vmul.f32 0.03125, %v334_v16  ;;  %v359_v19 = vmul.f32 0.03125, %v340_v17 }
  0xc1   : > { %v2655_v20 = vsub.f32 %v321_v0, %v357_v18  ;;  %v2658_v21 = vsub.f32 %v2623_v1, %v359_v19 }
  0xc2   : > { %v337_v22 = vpop.xlane.xlu0 %336  ;;  %v343_v23 = vpop.xlane.xlu1 %342 }
  0xc3   : > { %v358_v24 = vmul.f32 0.03125, %v337_v22  ;;  %v360_v25 = vmul.f32 0.03125, %v343_v23  ;;  %v373_v26 = vmul.f32 %v2655_v20, %v2655_v20  ;;  %v375_v27 = vmul.f32 %v2658_v21, %v2658_v21 }
  0xc5   : > { %v2664_v28 = vsub.f32 %v322_v2, %v358_v24  ;;  %v2667_v29 = vsub.f32 %v2630_v5, %v360_v25  ;;  %v381_v30 = vsel %vm331_vm0, %v373_v26, 0.0  ;;  %v387_v33 = vsel %vm331_vm0, %v375_v27, 0.0 }
  0xc6   : > { %382 = vadd.xlane.f32.xlu0 %v381_v30  ;;  %v346_v31 = vpop.xlane.xlu0 %345  ;;  %v349_v32 = vpop.xlane.xlu1 %348  ;;  %v1823_v30 = vld [vmem:[%s3082_s1] ss:$0 sm:$0xff] }
  0xc7   : > { %v361_v34 = vmul.f32 0.03125, %v346_v31  ;;  %v362_v35 = vmul.f32 0.03125, %v349_v32  ;;  %v374_v36 = vmul.f32 %v2664_v28, %v2664_v28  ;;  %v376_v37 = vmul.f32 %v2667_v29, %v2667_v29 }
  0xc9   : > { %v2676_v38 = vsub.f32 %v2636_v8, %v361_v34  ;;  %v2679_v39 = vsub.f32 %v2639_v9, %v362_v35  ;;  %v384_v40 = vsel %vm331_vm0, %v374_v36, 0.0  ;;  %v390_v43 = vsel %vm331_vm0, %v376_v37, 0.0  ;;  %v1824_v34 = vld [vmem:[%s3083_s2] ss:$0 sm:$0xff] }
  0xca   : > { %388 = vadd.xlane.f32.xlu0 %v387_v33  ;;  %385 = vadd.xlane.f32.xlu1 %v384_v40  ;;  %v352_v41 = vpop.xlane.xlu0 %351  ;;  %v355_v42 = vpop.xlane.xlu1 %354 }
  0xcb   : > { %v363_v44 = vmul.f32 0.03125, %v352_v41  ;;  %v364_v45 = vmul.f32 0.03125, %v355_v42  ;;  %v377_v46 = vmul.f32 %v2676_v38, %v2676_v38  ;;  %v378_v47 = vmul.f32 %v2679_v39, %v2679_v39 }
  0xcd   : > { %v2688_v48 = vsub.f32 %v2646_v12, %v363_v44  ;;  %v2691_v49 = vsub.f32 %v2649_v13, %v364_v45  ;;  %v393_v50 = vsel %vm331_vm0, %v377_v46, 0.0  ;;  %v396_v51 = vsel %vm331_vm0, %v378_v47, 0.0 }
  0xce   : > { %391 = vadd.xlane.f32.xlu1 %v390_v43  ;;  %394 = vadd.xlane.f32.xlu0 %v393_v50 }
  0xcf   : > { %v379_v52 = vmul.f32 %v2688_v48, %v2688_v48  ;;  %v380_v53 = vmul.f32 %v2691_v49, %v2691_v49 }
  0xd1   : > { %v399_v54 = vsel %vm331_vm0, %v379_v52, 0.0  ;;  %v402_v55 = vsel %vm331_vm0, %v380_v53, 0.0 }
  0xd2   : > { %397 = vadd.xlane.f32.xlu1 %v396_v51  ;;  %400 = vadd.xlane.f32.xlu0 %v399_v54 }
  0xd6   : > { %403 = vadd.xlane.f32.xlu1 %v402_v55 }
 0x153   : > { %v383_v62 = vpop.xlane.xlu0 %382 }
 0x154   : > { %v405_v63 = vmul.f32 0.03125, %v383_v62 }
 0x156   : > { %v413_v0 = vadd.f32 1e-05, %v405_v63 }
 0x157   : > { %v386_v2 = vpop.xlane.xlu1 %385  ;;  %v389_v3 = vpop.xlane.xlu0 %388 }
 0x158   : > { %2389 = vrsqrt.f32 %v413_v0  ;;  %v406_v4 = vmul.f32 0.03125, %v386_v2  ;;  %v407_v6 = vmul.f32 0.03125, %v389_v3 }
 0x15a   : > { %v414_v7 = vadd.f32 1e-05, %v406_v4  ;;  %v415_v10 = vadd.f32 1e-05, %v407_v6 }
 0x15b   : > { %v392_v11 = vpop.xlane.xlu1 %391  ;;  %v395_v14 = vpop.xlane.xlu0 %394 }
 0x15c   : > { %2391 = vrsqrt.f32 %v414_v7  ;;  %v408_v15 = vmul.f32 0.03125, %v392_v11  ;;  %v409_v16 = vmul.f32 0.03125, %v395_v14 }
 0x15d   : > { %2393 = vrsqrt.f32 %v415_v10 }
 0x15e   : > { %v416_v17 = vadd.f32 1e-05, %v408_v15  ;;  %v417_v18 = vadd.f32 1e-05, %v409_v16 }
 0x15f   : > { %v398_v19 = vpop.xlane.xlu1 %397  ;;  %v401_v22 = vpop.xlane.xlu0 %400 }
 0x160   : > { %2395 = vrsqrt.f32 %v416_v17  ;;  %v410_v23 = vmul.f32 0.03125, %v398_v19  ;;  %v411_v24 = vmul.f32 0.03125, %v401_v22 }
 0x161   : > { %2397 = vrsqrt.f32 %v417_v18 }
 0x162   : > { %v2390_v25 = vpop.eup %2389  ;;  %v418_v26 = vadd.f32 1e-05, %v410_v23  ;;  %v419_v27 = vadd.f32 1e-05, %v411_v24 }
 0x163   : > { %v404_v31 = vpop.xlane.xlu1 %403  ;;  %v429_v32 = vmul.f32 %v2390_v25, %v2655_v20 }
 0x164   : > { %2399 = vrsqrt.f32 %v418_v26  ;;  %v412_v33 = vmul.f32 0.03125, %v404_v31 }
 0x165   : > { %2401 = vrsqrt.f32 %v419_v27  ;;  %v443_v35 = vmul.f32 %v1823_v30, %v429_v32 }
 0x166   : > { %v2392_v36 = vpop.eup %2391  ;;  %v420_v37 = vadd.f32 1e-05, %v412_v33 }
 0x167   : > { %v2394_v40 = vpop.eup %2393  ;;  %v457_v41 = vadd.f32 %v1824_v34, %v443_v35  ;;  %v430_v42 = vmul.f32 %v2392_v36, %v2664_v28 }
 0x168   : > { %2403 = vrsqrt.f32 %v420_v37  ;;  %v431_v43 = vmul.f32 %v2394_v40, %v2658_v21 }
 0x169   : > { %2015 = vmatprep.mubr.msk.f32.mxu0 %vm331_vm0, %v457_v41  ;;  %v444_v20 = vmul.f32 %v1823_v30, %v430_v42 }
 0x16a   : > { %v2396_v44 = vpop.eup %2395  ;;  %v445_v45 = vmul.f32 %v1823_v30, %v431_v43 }
 0x16b   : > { %v2398_v46 = vpop.eup %2397  ;;  %v458_v47 = vadd.f32 %v1824_v34, %v444_v20  ;;  %v432_v50 = vmul.f32 %v2396_v44, %v2667_v29 }
 0x16c   : > { %v459_v51 = vadd.f32 %v1824_v34, %v445_v45  ;;  %v433_v52 = vmul.f32 %v2398_v46, %v2676_v38 }
 0x16d   : > { %2016 = vmatmul.mubr.msk.f32.vlgmr.msra.gmra.mrb[0].mxu0 %vm331_vm0, %v458_v47  ;;  %v446_v53 = vmul.f32 %v1823_v30, %v432_v50 }
 0x16e   : > { %v2400_v54 = vpop.eup %2399  ;;  %2018 = vmatprep.mubr.msk.f32.mxu0 %vm331_vm0, %v459_v51  ;;  %v447_v28 = vmul.f32 %v1823_v30, %v433_v52 }
 0x16f   : > { %v2402_v21 = vpop.eup %2401  ;;  %v460_v55 = vadd.f32 %v1824_v34, %v446_v53  ;;  %v434_v56 = vmul.f32 %v2400_v54, %v2679_v39 }
 0x170   : > { %v461_v57 = vadd.f32 %v1824_v34, %v447_v28  ;;  %v435_v58 = vmul.f32 %v2402_v21, %v2688_v48  ;;  %v1825_v48 = vld [vmem:[%s3085_s4] ss:$0 sm:$0xff] }
 0x171   : > { %2019 = vmatmul.mubr.msk.f32.gmra.mrb[2].mxu0 %vm331_vm0, %v460_v55  ;;  %v448_v29 = vmul.f32 %v1823_v30, %v434_v56 }
 0x172   : > { %v2404_v59 = vpop.eup %2403  ;;  %2021 = vmatprep.mubr.msk.f32.mxu0 %vm331_vm0, %v461_v57  ;;  %v449_v38 = vmul.f32 %v1823_v30, %v435_v58 }
 0x173   : > { %v462_v60 = vadd.f32 %v1824_v34, %v448_v29  ;;  %v436_v61 = vmul.f32 %v2404_v59, %v2691_v49 }
 0x174   : > { %v463_v62 = vadd.f32 %v1824_v34, %v449_v38 }
 0x175   : > { %2022 = vmatmul.mubr.msk.f32.gmra.mrb[4].mxu0 %vm331_vm0, %v462_v60  ;;  %v450_v63 = vmul.f32 %v1823_v30, %v436_v61 }
 0x176   : > { %2024 = vmatprep.mubr.msk.f32.mxu0 %vm331_vm0, %v463_v62 }
 0x177   : > { %v464_v39 = vadd.f32 %v1824_v34, %v450_v63 }
 0x179   : > { %2025 = vmatmul.mubr.msk.f32.gmra.mrb[6].mxu0 %vm331_vm0, %v464_v39 }
 0x240   : > { %v2017_v0 = vpop.f32.mrb[0].mxu0 }
 0x241   : > { %v2738_v2 = vadd.f32 %v2017_v0, %v1825_v48  ;;  %v566_v3 = vpop.f32.mrb[1].mxu0 }
 0x242   : > { %v567_v4 = vadd.f32 %v1825_v48, %v566_v3 }
 0x243   : > { %v2802_v62 = vmul.f32 0.25, %v2738_v2 }
 0x244   : > { %v2020_v49 = vpop.f32.mrb[2].mxu0  ;;  %v2741_v6 = vpack.i.bf16 %v2738_v2, %v567_v4  ;;  %v2743_v7 = vmul.f32 0.25, %v567_v4  ;;  %v614_v4 = vld [vmem:[%s3086_s5 + $0x8] sm:$0xff] }
 0x245   : > { %v2745_v10 = vadd.f32 %v2020_v49, %v1825_v48  ;;  %v576_v11 = vpop.f32.mrb[3].mxu0  ;;  %v613_v49 = vld [vmem:[%s3086_s5] sm:$0xff] }
 0x246   : > { %v2747_v14 = vadd.f32 %v1825_v48, %v576_v11  ;;  %2310 = vrot.lane.b32.xlu0 %v2741_v6, %s2514_s21  ;;  %2043 = vmatprep.mubr.msk.f32.mxu1 %vm645_vm1, %v2743_v7 }
 0x247   : > { %v608_v39 = vmul.f32 0.25, %v2745_v10 }
 0x248   : > { %v2023_v15 = vpop.f32.mrb[4].mxu0  ;;  %v2754_v16 = vpack.i.bf16 %v2745_v10, %v2747_v14  ;;  %v607_v63 = vmul.f32 0.25, %v2747_v14 }
 0x249   : > { %v2756_v17 = vadd.f32 %v2023_v15, %v1825_v48  ;;  %v586_v18 = vpop.f32.mrb[5].mxu0 }
 0x24a   : > { %v2758_v19 = vadd.f32 %v1825_v48, %v586_v18  ;;  %2330 = vrot.lane.b32.xlu0 %v2741_v6, %s2515_s22  ;;  %2315 = vrot.lane.b32.xlu1 %v2754_v16, %s2514_s21  ;;  %v615_v18 = vld [vmem:[%s3086_s5 + $0x10] sm:$0xff] }
 0x24b   : > { %v610_v0 = vmul.f32 0.25, %v2756_v17 }
 0x24c   : > { %v2026_v22 = vpop.f32.mrb[6].mxu0  ;;  %v2764_v23 = vpack.i.bf16 %v2756_v17, %v2758_v19 }
 0x24d   : > { %v2766_v24 = vadd.f32 %v2026_v22, %v1825_v48  ;;  %v596_v25 = vpop.f32.mrb[7].mxu0 }
 0x24e   : > { %v2768_v26 = vadd.f32 %v1825_v48, %v596_v25  ;;  %2340 = vrot.lane.b32.xlu0 %v2764_v23, %s2515_s22  ;;  %2320 = vrot.lane.b32.xlu1 %v2764_v23, %s2514_s21  ;;  %v609_v48 = vmul.f32 0.25, %v2758_v19 }
 0x24f   : > { %v612_v3 = vmul.f32 0.25, %v2766_v24 }
 0x250   : > { %v2774_v27 = vpack.i.bf16 %v2766_v24, %v2768_v26  ;;  %v611_v2 = vmul.f32 0.25, %v2768_v26  ;;  %v618_v26 = vld [vmem:[%s3086_s5 + $0x28] sm:$0xff] }
 0x252   : > { %2325 = vrot.lane.b32.xlu1 %v2774_v27, %s2514_s21 }
 0x256   : > { %2335 = vrot.lane.b32.xlu1 %v2754_v16, %s2515_s22 }
 0x25a   : > { %2345 = vrot.lane.b32.xlu1 %v2774_v27, %s2515_s22  ;;  %s2517_s22 = smov 112  }
 0x2b8   : > { %v2311_v30 = vpop.permute.xlu0 %2310 }
 0x2b9   : > { %v2313_v31 = vunpack.i.h.bf16 %v2311_v30  ;;  %v2312_v32 = vunpack.i.l.bf16 %v2311_v30 }
 0x2bb   : > { %v2179_v34 = vpack.c.bf16 %v2313_v31, %v2312_v32 }
 0x2bc   : > { %v2316_v35 = vpop.permute.xlu1 %2315  ;;  %v2331_v36 = vpop.permute.xlu0 %2330 }
 0x2bd   : > { %v2318_v37 = vunpack.i.h.bf16 %v2316_v35  ;;  %v2317_v40 = vunpack.i.l.bf16 %v2316_v35  ;;  %v2333_v41 = vunpack.i.h.bf16 %v2331_v36  ;;  %v2332_v42 = vunpack.i.l.bf16 %v2331_v36  ;;  %2181 = vmatprep.subr.msk.bf16.mxu1 %vm2781_vm2, %v2179_v34  ;;  %v617_v35 = vld [vmem:[%s3086_s5 + $0x20] sm:$0xff] }
 0x2be   : > { %2184 = vmatpush3.bf16.xpose.msk.msra.mxu1 %vm2781_vm2, %v2179_v34 }
 0x2bf   : > { %v2185_v43 = vpack.c.bf16 %v2318_v37, %v2317_v40  ;;  %v2203_v20 = vpack.c.bf16 %v2333_v41, %v2332_v42  ;;  %v620_v41 = vld [vmem:[%s3086_s5 + $0x38] sm:$0xff] }
 0x2c0   : > { %v2321_v44 = vpop.permute.xlu1 %2320  ;;  %v2341_v51 = vpop.permute.xlu0 %2340 }
 0x2c1   : > { %v2323_v45 = vunpack.i.h.bf16 %v2321_v44  ;;  %v2322_v46 = vunpack.i.l.bf16 %v2321_v44  ;;  %2187 = vmatprep.subr.msk.bf16.mxu1 %vm2781_vm2, %v2185_v43  ;;  %2204 = vmatprep.subr.bf16.mxu0 %v2203_v20  ;;  %v2343_v52 = vunpack.i.h.bf16 %v2341_v51  ;;  %v2342_v53 = vunpack.i.l.bf16 %v2341_v51  ;;  %v619_v44 = vld [vmem:[%s3086_s5 + $0x30] sm:$0xff] }
 0x2c2   : > { %2206 = vmatpush3.bf16.msra.mxu0 %v2203_v20 }
 0x2c3   : > { %v2191_v50 = vpack.c.bf16 %v2323_v45, %v2322_v46  ;;  %v2211_v29 = vpack.c.bf16 %v2343_v52, %v2342_v53 }
 0x2c4   : > { %v2326_v47 = vpop.permute.xlu1 %2325 }
 0x2c5   : > { %v2328_v28 = vunpack.i.h.bf16 %v2326_v47  ;;  %v2327_v21 = vunpack.i.l.bf16 %v2326_v47 }
 0x2c6   : > { %2190 = vmatpush3.bf16.xpose.msk.msra.mxu1 %vm2781_vm2, %v2185_v43 }
 0x2c7   : > { %2193 = vmatprep.subr.msk.bf16.mxu1 %vm2781_vm2, %v2191_v50  ;;  %v2197_v59 = vpack.c.bf16 %v2328_v28, %v2327_v21 }
 0x2c8   : > { %v2336_v54 = vpop.permute.xlu1 %2335 }
 0x2c9   : > { %v2338_v55 = vunpack.i.h.bf16 %v2336_v54  ;;  %v2337_v56 = vunpack.i.l.bf16 %v2336_v54 }
 0x2cb   : > { %v2207_v57 = vpack.c.bf16 %v2338_v55, %v2337_v56 }
 0x2cc   : > { %v2346_v58 = vpop.permute.xlu1 %2345 }
 0x2cd   : > { %v2348_v38 = vunpack.i.h.bf16 %v2346_v58  ;;  %v2347_v60 = vunpack.i.l.bf16 %v2346_v58  ;;  %2208 = vmatprep.subr.bf16.mxu0 %v2207_v57 }
 0x2ce   : > { %2196 = vmatpush3.bf16.xpose.msk.msra.mxu1 %vm2781_vm2, %v2191_v50  ;;  %2210 = vmatpush3.bf16.msra.mxu0 %v2207_v57  ;;  %v616_v50 = vld [vmem:[%s3086_s5 + $0x18] sm:$0xff] }
 0x2cf   : > { %2199 = vmatprep.subr.msk.bf16.mxu1 %vm2781_vm2, %v2197_v59  ;;  %2212 = vmatprep.subr.bf16.mxu0 %v2211_v29  ;;  %v2215_v61 = vpack.c.bf16 %v2348_v38, %v2347_v60 }
 0x2d2   : > { %2214 = vmatpush3.bf16.msra.mxu0 %v2211_v29 }
 0x2d3   : > { %2216 = vmatprep.subr.bf16.mxu0 %v2215_v61 }
 0x2d6   : > { %2202 = vmatpush3.bf16.xpose.msk.msra.mxu1 %vm2781_vm2, %v2197_v59  ;;  %2218 = vmatpush3.bf16.msra.mxu0 %v2215_v61 }
 0x2dd   : > { %2044 = vmatmul.mubr.msk.f32.vlgmr.msra.gmra.mrb[0].mxu1 %vm645_vm1, %v2802_v62 }
 0x2de   : > { %2046 = vmatprep.mubr.msk.f32.mxu1 %vm645_vm1, %v607_v63 }
 0x2e1   : > { %2047 = vmatmul.mubr.msk.f32.gmra.mrb[2].mxu1 %vm645_vm1, %v608_v39 }
 0x2e2   : > { %2049 = vmatprep.mubr.msk.f32.mxu1 %vm645_vm1, %v609_v48 }
 0x2e5   : > { %2050 = vmatmul.mubr.msk.f32.gmra.mrb[4].mxu1 %vm645_vm1, %v610_v0 }
 0x2e6   : > { %2052 = vmatprep.mubr.msk.f32.mxu1 %vm645_vm1, %v611_v2 }
 0x2e9   : > { %2053 = vmatmul.mubr.msk.f32.gmra.mrb[6].mxu1 %vm645_vm1, %v612_v3 }
 0x3b0   : > { %v2045_v10 = vpop.f32.mrb[0].mxu1 }
 0x3b1   : > { %v758_v11 = vadd.f32 %v2045_v10, %v614_v4  ;;  %v752_v14 = vpop.f32.mrb[1].mxu1 }
 0x3b2   : > { %v753_v15 = vadd.f32 %v752_v14, %v613_v49 }
 0x3b3   : > { %v795_v17 = vsel %vm791_vm3, %v758_v11, -inf }
 0x3b4   : > { %796 = vmax.xlane.f32.xlu1 %v795_v17  ;;  %v2048_v19 = vpop.f32.mrb[2].mxu1  ;;  %v792_v22 = vsel %vm791_vm3, %v753_v15, -inf }
 0x3b5   : > { %v762_v24 = vpop.f32.mrb[3].mxu1  ;;  %793 = vmax.xlane.f32.xlu0 %v792_v22  ;;  %v768_v51 = vadd.f32 %v2048_v19, %v616_v50 }
 0x3b6   : > { %v763_v25 = vadd.f32 %v762_v24, %v615_v18 }
 0x3b7   : > { %v801_v52 = vsel %vm791_vm3, %v768_v51, -inf }
 0x3b8   : > { %v2051_v30 = vpop.f32.mrb[4].mxu1  ;;  %v798_v31 = vsel %vm791_vm3, %v763_v25, -inf }
 0x3b9   : > { %v2833_v32 = vadd.f32 %v2051_v30, %v618_v26  ;;  %v772_v34 = vpop.f32.mrb[5].mxu1  ;;  %799 = vmax.xlane.f32.xlu0 %v798_v31 }
 0x3ba   : > { %v2840_v37 = vadd.f32 %v772_v34, %v617_v35 }
 0x3bb   : > { %v807_v36 = vsel %vm791_vm3, %v2833_v32, -inf }
 0x3bc   : > { %v2054_v40 = vpop.f32.mrb[6].mxu1  ;;  %v804_v20 = vsel %vm791_vm3, %v2840_v37, -inf }
 0x3bd   : > { %v782_v42 = vpop.f32.mrb[7].mxu1  ;;  %808 = vmax.xlane.f32.xlu0 %v807_v36  ;;  %v2845_v43 = vadd.f32 %v2054_v40, %v620_v41 }
 0x3be   : > { %v2852_v45 = vadd.f32 %v782_v42, %v619_v44 }
 0x3bf   : > { %v813_v46 = vsel %vm791_vm3, %v2845_v43, -inf }
 0x3c0   : > { %v810_v47 = vsel %vm791_vm3, %v2852_v45, -inf }
 0x3c1   : > { %805 = vmax.xlane.f32.xlu0 %v804_v20 }
 0x3c5   : > { %2350 = vrot.lane.b32.xlu1 %v2741_v6, %s2516_s19  ;;  %814 = vmax.xlane.f32.xlu0 %v813_v46 }
 0x3c9   : > { %811 = vmax.xlane.f32.xlu0 %v810_v47 }
 0x3df   : > { %2355 = vrot.lane.b32.xlu0 %v2754_v16, %s2516_s19 }
 0x3e3   : > { %1048 = vrot.lane.b32.xlu0 %v607_v63, %s2517_s22 }
 0x3e7   : > { %1052 = vrot.lane.b32.xlu0 %v609_v48, %s2517_s22 }
 0x3e9   : > { %802 = vmax.xlane.f32.xlu1 %v801_v52 }
 0x3eb   : > { %1056 = vrot.lane.b32.xlu0 %v611_v2, %s2517_s22 }
 0x3fa   : > { %2360 = vrot.lane.b32.xlu1 %v2764_v23, %s2516_s19 }
 0x3fe   : > { %2365 = vrot.lane.b32.xlu1 %v2774_v27, %s2516_s19 }
 0x402   : > { %1044 = vrot.lane.b32.xlu1 %v2743_v7, %s2517_s22 }
 0x406   : > { %1046 = vrot.lane.b32.xlu1 %v2802_v62, %s2517_s22 }
 0x40a   : > { %1050 = vrot.lane.b32.xlu1 %v608_v39, %s2517_s22 }
 0x40e   : > { %1054 = vrot.lane.b32.xlu1 %v610_v0, %s2517_s22 }
 0x412   : > { %1058 = vrot.lane.b32.xlu1 %v612_v3, %s2517_s22 }
 0x416   : > { %2370 = vrot.lane.b32.xlu1 %v2741_v6, %s2518_s24 }
 0x441   : > { %v797_v53 = vpop.xlane.xlu1 %796 }
 0x442   : > { %v817_v54 = vsub.f32 %v758_v11, %v797_v53  ;;  %v794_v28 = vpop.xlane.xlu0 %793 }
 0x443   : > { %v816_v21 = vsub.f32 %v753_v15, %v794_v28 }
 0x444   : > { %v826_v55 = vmul.f32 1.442695, %v817_v54 }
 0x445   : > { %v824_v56 = vmul.f32 1.442695, %v816_v21  ;;  %v2351_v57 = vpop.permute.xlu1 %2350 }
 0x446   : > { %v2353_v58 = vunpack.i.h.bf16 %v2351_v57  ;;  %v2352_v29 = vunpack.i.l.bf16 %v2351_v57  ;;  %v800_v59 = vpop.xlane.xlu0 %799 }
 0x447   : > { %2405 = vpow2.f32 %v824_v56  ;;  %v818_v7 = vsub.f32 %v763_v25, %v800_v59 }
 0x448   : > { %2407 = vpow2.f32 %v826_v55  ;;  %v2219_v38 = vpack.c.bf16 %v2353_v58, %v2352_v29 }
 0x449   : > { %v828_v60 = vmul.f32 1.442695, %v818_v7 }
 0x44a   : > { %2221 = vmatprep.subr.msk.bf16.mxu0 %vm2781_vm2, %v2219_v38  ;;  %v809_v61 = vpop.xlane.xlu0 %808 }
 0x44b   : > { %2409 = vpow2.f32 %v828_v60  ;;  %v821_v11 = vsub.f32 %v2833_v32, %v809_v61  ;;  %v1859_v61 = vld [vmem:[%s3086_s5 + $0x48] sm:$0xff] }
 0x44d   : > { %v834_v22 = vmul.f32 1.442695, %v821_v11 }
 0x44e   : > { %v806_v6 = vpop.xlane.xlu0 %805 }
 0x44f   : > { %v820_v10 = vsub.f32 %v2840_v37, %v806_v6  ;;  %v1858_v6 = vld [vmem:[%s3086_s5 + $0x40] sm:$0xff] }
 0x451   : > { %v2872_v62 = vpop.eup %2405  ;;  %v832_v17 = vmul.f32 1.442695, %v820_v10 }
 0x452   : > { %v2874_v63 = vpop.eup %2407  ;;  %2071 = vmatprep.mubr.msk.f32.mxu0 %vm791_vm3, %v2872_v62  ;;  %v815_v39 = vpop.xlane.xlu0 %814 }
 0x453   : > { %2072 = vmatmul.mubr.msk.f32.vlgmr.msra.gmra.mrb[8].mxu0 %vm791_vm3, %v2874_v63  ;;  %v823_v25 = vsub.f32 %v2845_v43, %v815_v39 }
 0x454   : > { %2224 = vmatpush3.bf16.xpose.msk.msra.mxu0 %vm2781_vm2, %v2219_v38 }
 0x455   : > { %v2882_v48 = vpop.eup %2409  ;;  %v838_v36 = vmul.f32 1.442695, %v823_v25 }
 0x456   : > { %2074 = vmatprep.mubr.msk.f32.mxu0 %vm791_vm3, %v2882_v48  ;;  %v812_v0 = vpop.xlane.xlu0 %811 }
 0x457   : > { %v822_v18 = vsub.f32 %v2852_v45, %v812_v0 }
 0x459   : > { %v836_v31 = vmul.f32 1.442695, %v822_v18  ;;  %v1863_v18 = vld [vmem:[%s3086_s5 + $0x68] sm:$0xff] }
 0x45a   : > { %v2356_v2 = vpop.permute.xlu0 %2355 }
 0x45b   : > { %v2358_v3 = vunpack.i.h.bf16 %v2356_v2  ;;  %v2357_v4 = vunpack.i.l.bf16 %v2356_v2 }
 0x45d   : > { %v2225_v49 = vpack.c.bf16 %v2358_v3, %v2357_v4  ;;  %v1861_v4 = vld [vmem:[%s3086_s5 + $0x58] sm:$0xff] }
 0x45e   : > { %v1049_v50 = vpop.permute.xlu0 %1048 }
 0x45f   : > { %2227 = vmatprep.subr.msk.bf16.mxu0 %vm2781_vm2, %v2225_v49 }
 0x460   : > { %2230 = vmatpush3.bf16.xpose.msk.msra.mxu0 %vm2781_vm2, %v2225_v49 }
 0x462   : > { %v1053_v52 = vpop.permute.xlu0 %1052 }
 0x466   : > { %v1057_v55 = vpop.permute.xlu0 %1056 }
 0x476   : > { %v803_v14 = vpop.xlane.xlu1 %802 }
 0x477   : > { %v819_v15 = vsub.f32 %v768_v51, %v803_v14 }
 0x479   : > { %v830_v19 = vmul.f32 1.442695, %v819_v15 }
 0x47a   : > { %v2361_v24 = vpop.permute.xlu1 %2360 }
 0x47b   : > { %2411 = vpow2.f32 %v830_v19  ;;  %v2363_v26 = vunpack.i.h.bf16 %v2361_v24  ;;  %v2362_v30 = vunpack.i.l.bf16 %v2361_v24 }
 0x47c   : > { %2413 = vpow2.f32 %v832_v17  ;;  %v1860_v17 = vld [vmem:[%s3086_s5 + $0x50] sm:$0xff] }
 0x47d   : > { %v2231_v34 = vpack.c.bf16 %v2363_v26, %v2362_v30  ;;  %2415 = vpow2.f32 %v834_v22  ;;  %v1862_v30 = vld [vmem:[%s3086_s5 + $0x60] sm:$0xff] }
 0x47e   : > { %v2366_v35 = vpop.permute.xlu1 %2365  ;;  %2417 = vpow2.f32 %v836_v31 }
 0x47f   : > { %v2368_v32 = vunpack.i.h.bf16 %v2366_v35  ;;  %v2367_v37 = vunpack.i.l.bf16 %v2366_v35  ;;  %2233 = vmatprep.subr.msk.bf16.mxu0 %vm2781_vm2, %v2231_v34  ;;  %2419 = vpow2.f32 %v838_v36 }
 0x480   : > { %2236 = vmatpush3.bf16.xpose.msk.msra.mxu0 %vm2781_vm2, %v2231_v34 }
 0x481   : > { %v2237_v40 = vpack.c.bf16 %v2368_v32, %v2367_v37  ;;  %v1865_v32 = vld [vmem:[%s3086_s5 + $0x78] sm:$0xff] }
 0x482   : > { %v1045_v41 = vpop.permute.xlu1 %1044 }
 0x483   : > { %2239 = vmatprep.subr.msk.bf16.mxu0 %vm2781_vm2, %v2237_v40 }
 0x485   : > { %v2900_v42 = vpop.eup %2411 }
 0x486   : > { %v2902_v43 = vpop.eup %2413  ;;  %v1047_v20 = vpop.permute.xlu1 %1046  ;;  %2075 = vmatmul.mubr.msk.f32.gmra.mrb[10].mxu0 %vm791_vm3, %v2900_v42 }
 0x487   : > { %2077 = vmatprep.mubr.msk.f32.mxu0 %vm791_vm3, %v2902_v43  ;;  %v2910_v44 = vpop.eup %2415 }
 0x488   : > { %2242 = vmatpush3.bf16.xpose.msk.msra.mxu0 %vm2781_vm2, %v2237_v40  ;;  %v2912_v45 = vpop.eup %2417 }
 0x489   : > { %v2918_v47 = vpop.eup %2419 }
 0x48a   : > { %v1051_v46 = vpop.permute.xlu1 %1050  ;;  %2078 = vmatmul.mubr.msk.f32.gmra.mrb[12].mxu0 %vm791_vm3, %v2910_v44 }
 0x48b   : > { %2080 = vmatprep.mubr.msk.f32.mxu0 %vm791_vm3, %v2912_v45 }
 0x48e   : > { %v1055_v51 = vpop.permute.xlu1 %1054  ;;  %2081 = vmatmul.mubr.msk.f32.gmra.mrb[14].mxu0 %vm791_vm3, %v2918_v47 }
 0x48f   : > { %2099 = vmatprep.mubr.msk.f32.mxu0 %vm645_vm1, %v1045_v41 }
 0x492   : > { %v1059_v33 = vpop.permute.xlu1 %1058  ;;  %2100 = vmatmul.mubr.msk.f32.vlgmr.msra.gmra.mrb[16].mxu0 %vm645_vm1, %v1047_v20  ;;  %v1864_v20 = vld [vmem:[%s3086_s5 + $0x70] sm:$0xff] }
 0x493   : > { %2102 = vmatprep.mubr.msk.f32.mxu0 %vm645_vm1, %v1049_v50 }
 0x496   : > { %v2371_v53 = vpop.permute.xlu1 %2370  ;;  %2103 = vmatmul.mubr.msk.f32.gmra.mrb[18].mxu0 %vm645_vm1, %v1051_v46 }
 0x497   : > { %v2373_v54 = vunpack.i.h.bf16 %v2371_v53  ;;  %v2372_v28 = vunpack.i.l.bf16 %v2371_v53  ;;  %2105 = vmatprep.mubr.msk.f32.mxu0 %vm645_vm1, %v1053_v52 }
 0x499   : > { %v2243_v21 = vpack.c.bf16 %v2373_v54, %v2372_v28 }
 0x49a   : > { %2106 = vmatmul.mubr.msk.f32.gmra.mrb[20].mxu0 %vm645_vm1, %v1055_v51 }
 0x49b   : > { %2108 = vmatprep.mubr.msk.f32.mxu0 %vm645_vm1, %v1057_v55  ;;  %2244 = vmatprep.subr.bf16.mxu0 %v2243_v21 }
 0x49c   : > { %2267 = vmatprep.subr.bf16.mxu1 %v2243_v21  ;;  %2246 = vmatpush3.bf16.msra.mxu0 %v2243_v21 }
 0x49d   : > { %2271 = vmatpush3.bf16.msra.mxu1 %v2243_v21 }
 0x49e   : > { %2109 = vmatmul.mubr.msk.f32.gmra.mrb[22].mxu0 %vm645_vm1, %v1059_v33 }
 0x526   : > { %v2930_v56 = vpop.f32.mrb[8].mxu0 }
 0x527   : > { %v2932_v57 = vpop.f32.mrb[9].mxu0 }
 0x559   : > { %v2934_v58 = vpop.f32.mrb[10].mxu0 }
 0x55a   : > { %v2936_v29 = vpop.f32.mrb[11].mxu0 }
 0x55d   : > { %v2938_v59 = vpop.f32.mrb[12].mxu0 }
 0x55e   : > { %v2940_v7 = vpop.f32.mrb[13].mxu0 }
 0x561   : > { %v2942_v38 = vpop.f32.mrb[14].mxu0 }
 0x562   : > { %v2944_v60 = vpop.f32.mrb[15].mxu0 }
 0x565   : > { %v2101_v39 = vpop.f32.mrb[16].mxu0 }
 0x566   : > { %v1180_v0 = vadd.f32 %v2101_v39, %v1859_v61  ;;  %v1174_v2 = vpop.f32.mrb[17].mxu0 }
 0x567   : > { %v1175_v3 = vadd.f32 %v1858_v6, %v1174_v2 }
 0x568   : > { %v1216_v49 = vsel %vm791_vm3, %v1180_v0, -inf }
 0x569   : > { %1217 = vmax.xlane.f32.xlu1 %v1216_v49  ;;  %v2104_v10 = vpop.f32.mrb[18].mxu0  ;;  %v1213_v11 = vsel %vm791_vm3, %v1175_v3, -inf }
 0x56a   : > { %v1190_v14 = vadd.f32 %v2104_v10, %v1861_v4  ;;  %v1184_v15 = vpop.f32.mrb[19].mxu0  ;;  %1214 = vmax.xlane.f32.xlu0 %v1213_v11 }
 0x56b   : > { %v1185_v22 = vadd.f32 %v1860_v17, %v1184_v15 }
 0x56c   : > { %v1222_v19 = vsel %vm791_vm3, %v1190_v14, -inf }
 0x56d   : > { %v2107_v24 = vpop.f32.mrb[20].mxu0  ;;  %v1219_v36 = vsel %vm791_vm3, %v1185_v22, -inf }
 0x56e   : > { %v1200_v25 = vadd.f32 %v2107_v24, %v1863_v18  ;;  %v1194_v26 = vpop.f32.mrb[21].mxu0  ;;  %1223 = vmax.xlane.f32.xlu0 %v1222_v19 }
 0x56f   : > { %v1195_v34 = vadd.f32 %v1862_v30, %v1194_v26 }
 0x570   : > { %v1228_v31 = vsel %vm791_vm3, %v1200_v25, -inf }
 0x571   : > { %1229 = vmax.xlane.f32.xlu1 %v1228_v31  ;;  %v2110_v35 = vpop.f32.mrb[22].mxu0  ;;  %v1225_v41 = vsel %vm791_vm3, %v1195_v34, -inf }
 0x572   : > { %v1204_v37 = vpop.f32.mrb[23].mxu0  ;;  %1220 = vmax.xlane.f32.xlu0 %v1219_v36  ;;  %v1210_v40 = vadd.f32 %v2110_v35, %v1865_v32 }
 0x573   : > { %v1205_v46 = vadd.f32 %v1864_v20, %v1204_v37 }
 0x574   : > { %v1234_v50 = vsel %vm791_vm3, %v1210_v40, -inf }
 0x575   : > { %v1231_v51 = vsel %vm791_vm3, %v1205_v46, -inf }
 0x576   : > { %1226 = vmax.xlane.f32.xlu0 %v1225_v41 }
 0x57a   : > { %1235 = vmax.xlane.f32.xlu0 %v1234_v50 }
 0x57e   : > { %1232 = vmax.xlane.f32.xlu0 %v1231_v51 }
 0x582   : > { %2380 = vrot.lane.b32.xlu1 %v2764_v23, %s2518_s24 }
 0x586   : > { %2385 = vrot.lane.b32.xlu1 %v2774_v27, %s2518_s24 }
 0x594   : > { %2375 = vrot.lane.b32.xlu0 %v2754_v16, %s2518_s24 }
 0x5f6   : > { %v1218_v33 = vpop.xlane.xlu1 %1217 }
 0x5f7   : > { %v1238_v52 = vsub.f32 %v1180_v0, %v1218_v33  ;;  %v1215_v53 = vpop.xlane.xlu0 %1214 }
 0x5f8   : > { %v1237_v54 = vsub.f32 %v1175_v3, %v1215_v53 }
 0x5f9   : > { %v1247_v28 = vmul.f32 1.442695, %v1238_v52 }
 0x5fa   : > { %v1245_v21 = vmul.f32 1.442695, %v1237_v54 }
 0x5fb   : > { %2421 = vpow2.f32 %v1247_v28  ;;  %v1224_v55 = vpop.xlane.xlu0 %1223 }
 0x5fc   : > { %2423 = vpow2.f32 %v1245_v21  ;;  %v1240_v61 = vsub.f32 %v1190_v14, %v1224_v55 }
 0x5fe   : > { %v1251_v6 = vmul.f32 1.442695, %v1240_v61  ;;  %v1230_v39 = vpop.xlane.xlu1 %1229 }
 0x5ff   : > { %v1242_v2 = vsub.f32 %v1200_v25, %v1230_v39  ;;  %v1221_v23 = vpop.xlane.xlu0 %1220  ;;  %v843_v39 = vsel %vm791_vm3, %v2874_v63, 0.0  ;;  %v855_v63 = vsel %vm791_vm3, %v2910_v44, 0.0  ;;  %v858_v44 = vsel %vm791_vm3, %v2912_v45, 0.0 }
 0x600   : > { %2425 = vpow2.f32 %v1251_v6  ;;  %v1239_v4 = vsub.f32 %v1185_v22, %v1221_v23  ;;  %v849_v23 = vsel %vm791_vm3, %v2900_v42, 0.0  ;;  %v852_v42 = vsel %vm791_vm3, %v2902_v43, 0.0 }
 0x601   : > { %v1255_v27 = vmul.f32 1.442695, %v1242_v2 }
 0x602   : > { %v1249_v49 = vmul.f32 1.442695, %v1239_v4  ;;  %v2381_v24 = vpop.permute.xlu1 %2380  ;;  %v840_v4 = vsel %vm791_vm3, %v2872_v62, 0.0  ;;  %v861_v62 = vsel %vm791_vm3, %v2918_v47, 0.0 }
 0x603   : > { %2427 = vpow2.f32 %v1255_v27  ;;  %v1227_v16 = vpop.xlane.xlu0 %1226  ;;  %v2383_v32 = vunpack.i.h.bf16 %v2381_v24  ;;  %v846_v27 = vsel %vm791_vm3, %v2882_v48, 0.0  ;;  %v1454_v48 = vld [vmem:[#allocation2 + $0x10] sm:$0xff] }
 0x604   : > { %2429 = vpow2.f32 %v1249_v49  ;;  %v1241_v0 = vsub.f32 %v1195_v34, %v1227_v16  ;;  %v1455_v49 = vld [vmem:[#allocation2 + $0x18] sm:$0xff] }
 0x605   : > { %v2984_v10 = vpop.eup %2421  ;;  %v2259_v16 = vpack.c.bf16 %v1455_v49, %v1454_v48 }
 0x606   : > { %v2424_v3 = vpop.eup %2423  ;;  %v1253_v11 = vmul.f32 1.442695, %v1241_v0  ;;  %v1264_v15 = vsel %vm791_vm3, %v2984_v10, 0.0  ;;  %v2386_v51 = vpop.permute.xlu1 %2385  ;;  %v1033_v0 = vld [vmem:[#allocation2] sm:$0xff] }
 0x607   : > { %1265 = vadd.xlane.f32.xlu0 %v1264_v15  ;;  %2127 = vmatprep.mubr.msk.f32.mxu0 %vm791_vm3, %v2424_v3  ;;  %v1236_v14 = vpop.xlane.xlu0 %1235  ;;  %v1261_v17 = vsel %vm791_vm3, %v2424_v3, 0.0  ;;  %v2388_v54 = vunpack.i.h.bf16 %v2386_v51  ;;  %v2387_v28 = vunpack.i.l.bf16 %v2386_v51 }
 0x608   : > { %2431 = vpow2.f32 %v1253_v11  ;;  %v1244_v18 = vsub.f32 %v1210_v40, %v1236_v14  ;;  %1262 = vadd.xlane.f32.xlu1 %v1261_v17  ;;  %v2382_v40 = vunpack.i.l.bf16 %v2381_v24 }
 0x609   : > { %v2255_v61 = vpack.c.bf16 %v2388_v54, %v2387_v28 }
 0x60a   : > { %v2426_v19 = vpop.eup %2425  ;;  %v1259_v22 = vmul.f32 1.442695, %v1244_v18  ;;  %v2251_v53 = vpack.c.bf16 %v2383_v32, %v2382_v40 }
 0x60b   : > { %v1233_v25 = vpop.xlane.xlu0 %1232  ;;  %v1270_v26 = vsel %vm791_vm3, %v2426_v19, 0.0 }
 0x60c   : > { %2433 = vpow2.f32 %v1259_v22  ;;  %v1243_v30 = vsub.f32 %v1205_v46, %v1233_v25  ;;  %1271 = vadd.xlane.f32.xlu1 %v1270_v26 }
 0x60d   : > { %v2428_v31 = vpop.eup %2427 }
 0x60e   : > { %v2430_v34 = vpop.eup %2429  ;;  %v1257_v35 = vmul.f32 1.442695, %v1243_v30  ;;  %v1276_v36 = vsel %vm791_vm3, %v2428_v31, 0.0 }
 0x60f   : > { %v2376_v37 = vpop.permute.xlu0 %2375  ;;  %v1267_v41 = vsel %vm791_vm3, %v2430_v34, 0.0 }
 0x610   : > { %2435 = vpow2.f32 %v1257_v35  ;;  %v2378_v20 = vunpack.i.h.bf16 %v2376_v37  ;;  %v2377_v50 = vunpack.i.l.bf16 %v2376_v37  ;;  %1277 = vadd.xlane.f32.xlu1 %v1276_v36  ;;  %1268 = vadd.xlane.f32.xlu0 %v1267_v41 }
 0x612   : > { %v2432_v33 = vpop.eup %2431  ;;  %v2247_v52 = vpack.c.bf16 %v2378_v20, %v2377_v50 }
 0x613   : > { %v1273_v46 = vsel %vm791_vm3, %v2432_v33, 0.0 }
 0x614   : > { %1274 = vadd.xlane.f32.xlu0 %v1273_v46  ;;  %2248 = vmatprep.subr.bf16.mxu0 %v2247_v52 }
 0x615   : > { %2268 = vmatprep.subr.bf16.mxu1 %v2247_v52  ;;  %2250 = vmatpush3.bf16.msra.mxu0 %v2247_v52 }
 0x616   : > { %v2434_v21 = vpop.eup %2433  ;;  %2272 = vmatpush3.bf16.msra.mxu1 %v2247_v52  ;;  %2252 = vmatprep.subr.bf16.mxu0 %v2251_v53 }
 0x617   : > { %2269 = vmatprep.subr.bf16.mxu1 %v2251_v53  ;;  %v1282_v55 = vsel %vm791_vm3, %v2434_v21, 0.0 }
 0x618   : > { %1283 = vadd.xlane.f32.xlu1 %v1282_v55 }
 0x619   : > { %2254 = vmatpush3.bf16.msra.mxu0 %v2251_v53 }
 0x61a   : > { %v2436_v6 = vpop.eup %2435  ;;  %2273 = vmatpush3.bf16.msra.mxu1 %v2251_v53  ;;  %2256 = vmatprep.subr.bf16.mxu0 %v2255_v61 }
 0x61b   : > { %2270 = vmatprep.subr.bf16.mxu1 %v2255_v61  ;;  %2136 = vmatprep.mubr.msk.f32.mxu1 %vm791_vm3, %v2436_v6  ;;  %v1279_v2 = vsel %vm791_vm3, %v2436_v6, 0.0 }
 0x61c   : > { %844 = vadd.xlane.f32.xlu1 %v843_v39  ;;  %1280 = vadd.xlane.f32.xlu0 %v1279_v2 }
 0x61d   : > { %2258 = vmatpush3.bf16.msra.mxu0 %v2255_v61 }
 0x61e   : > { %2274 = vmatpush3.bf16.msra.mxu1 %v2255_v61 }
 0x61f   : > { %2260 = vmatprep.subr.bf16.mxu1 %v2259_v16 }
 0x620   : > { %850 = vadd.xlane.f32.xlu1 %v849_v23  ;;  %841 = vadd.xlane.f32.xlu0 %v840_v4 }
 0x621   : > { %2128 = vmatmul.mubr.msk.f32.vlgmr.msra.gmra.mrb[24].mxu0 %vm791_vm3, %v2984_v10  ;;  %2137 = vmatmul.mubr.msk.f32.vlgmr.msra.gmra.mrb[8].mxu1 %vm791_vm3, %v2434_v21  ;;  %v1034_v10 = vld [vmem:[#allocation2 + $0x8] sm:$0xff] }
 0x622   : > { %2130 = vmatprep.mubr.msk.f32.mxu0 %vm791_vm3, %v2430_v34  ;;  %2262 = vmatpush3.bf16.msra.mxu1 %v2259_v16  ;;  %v2263_v3 = vpack.c.bf16 %v1034_v10, %v1033_v0 }
 0x624   : > { %856 = vadd.xlane.f32.xlu1 %v855_v63  ;;  %847 = vadd.xlane.f32.xlu0 %v846_v27 }
 0x625   : > { %2131 = vmatmul.mubr.msk.f32.gmra.mrb[26].mxu0 %vm791_vm3, %v2426_v19  ;;  %2264 = vmatprep.subr.bf16.mxu1 %v2263_v3 }
 0x626   : > { %2133 = vmatprep.mubr.msk.f32.mxu0 %vm791_vm3, %v2432_v33 }
 0x628   : > { %862 = vadd.xlane.f32.xlu1 %v861_v62  ;;  %853 = vadd.xlane.f32.xlu0 %v852_v42 }
 0x629   : > { %2134 = vmatmul.mubr.msk.f32.gmra.mrb[28].mxu0 %vm791_vm3, %v2428_v31 }
 0x62c   : > { %859 = vadd.xlane.f32.xlu0 %v858_v44 }
 0x694   : > { %v1266_v47 = vpop.xlane.xlu0 %1265 }
 0x695   : > { %v1263_v11 = vpop.xlane.xlu1 %1262 }
 0x696   : > { %2437 = vrcp.f32 %v1263_v11 }
 0x697   : > { %2439 = vrcp.f32 %v1266_v47 }
 0x699   : > { %v1272_v15 = vpop.xlane.xlu1 %1271 }
 0x69d   : > { %v1269_v43 = vpop.xlane.xlu0 %1268  ;;  %v1278_v17 = vpop.xlane.xlu1 %1277 }
 0x69e   : > { %2441 = vrcp.f32 %v1269_v43 }
 0x69f   : > { %2443 = vrcp.f32 %v1272_v15 }
 0x6a0   : > { %v2438_v30 = vpop.eup %2437 }
 0x6a1   : > { %v1275_v14 = vpop.xlane.xlu0 %1274  ;;  %v2440_v35 = vpop.eup %2439 }
 0x6a2   : > { %2445 = vrcp.f32 %v1275_v14 }
 0x6a3   : > { %2447 = vrcp.f32 %v1278_v17  ;;  %v2470_v17 = vld [vmem:[%s2619_s26] sm:$0xff] }
 0x6a5   : > { %v1284_v19 = vpop.xlane.xlu1 %1283 }
 0x6a8   : > { %v2442_v40 = vpop.eup %2441 }
 0x6a9   : > { %v1281_v18 = vpop.xlane.xlu0 %1280  ;;  %v845_v22 = vpop.xlane.xlu1 %844 }
 0x6aa   : > { %2449 = vrcp.f32 %v1281_v18  ;;  %v2444_v50 = vpop.eup %2443 }
 0x6ac   : > { %v2446_v53 = vpop.eup %2445 }
 0x6ad   : > { %v842_v45 = vpop.xlane.xlu0 %841  ;;  %v851_v32 = vpop.xlane.xlu1 %850 }
 0x6ae   : > { %2451 = vrcp.f32 %v842_v45  ;;  %v2448_v21 = vpop.eup %2447 }
 0x6af   : > { %2453 = vrcp.f32 %v1284_v19 }
 0x6b0   : > { %2455 = vrcp.f32 %v845_v22 }
 0x6b1   : > { %v848_v24 = vpop.xlane.xlu0 %847  ;;  %v857_v54 = vpop.xlane.xlu1 %856 }
 0x6b2   : > { %2457 = vrcp.f32 %v848_v24 }
 0x6b3   : > { %2459 = vrcp.f32 %v851_v32 }
 0x6b4   : > { %v2450_v61 = vpop.eup %2449 }
 0x6b5   : > { %v854_v51 = vpop.xlane.xlu0 %853  ;;  %v863_v63 = vpop.xlane.xlu1 %862 }
 0x6b6   : > { %2461 = vrcp.f32 %v854_v51 }
 0x6b7   : > { %2463 = vrcp.f32 %v857_v54 }
 0x6b8   : > { %v2452_v23 = vpop.eup %2451 }
 0x6b9   : > { %v860_v39 = vpop.xlane.xlu0 %859  ;;  %v2454_v4 = vpop.eup %2453  ;;  %v1018_v42 = vmul.f32 %v2452_v23, %v2932_v57 }
 0x6ba   : > { %2465 = vrcp.f32 %v860_v39  ;;  %v2456_v62 = vpop.eup %2455 }
 0x6bb   : > { %2467 = vrcp.f32 %v863_v63  ;;  %v1020_v48 = vmul.f32 %v2456_v62, %v2930_v56 }
 0x6bc   : > { %v2458_v44 = vpop.eup %2457 }
 0x6bd   : > { %v2460_v49 = vpop.eup %2459  ;;  %v1022_v16 = vmul.f32 %v2458_v44, %v2936_v29 }
 0x6be   : > { %v1024_v10 = vmul.f32 %v2460_v49, %v2934_v58 }
 0x6c0   : > { %v2462_v0 = vpop.eup %2461 }
 0x6c1   : > { %v1026_v57 = vmul.f32 %v2462_v0, %v2940_v7  ;;  %v1906_v7 = vld [vmem:[%s3088_s7] ss:$0 sm:$0xff] }
 0x6f4   : > { %v2129_v25 = vpop.f32.mrb[24].mxu0  ;;  %v2138_v26 = vpop.f32.mrb[8].mxu1 }
 0x6f5   : > { %v1399_v31 = vpop.f32.mrb[25].mxu0  ;;  %v1429_v34 = vpop.f32.mrb[9].mxu1  ;;  %v1441_v37 = vmul.f32 %v2440_v35, %v2129_v25  ;;  %v1453_v27 = vmul.f32 %v2454_v4, %v2138_v26 }
 0x6f6   : > { %v1439_v36 = vmul.f32 %v2438_v30, %v1399_v31  ;;  %v1451_v2 = vmul.f32 %v2450_v61, %v1429_v34 }
 0x6f8   : > { %v2132_v41 = vpop.f32.mrb[26].mxu0  ;;  %2143 = vmatprep.mubr.msk.f32.mxu1 %vm645_vm1, %v1439_v36 }
 0x6f9   : > { %v1409_v20 = vpop.f32.mrb[27].mxu0  ;;  %2144 = vmatmul.mubr.msk.f32.vlgmr.msra.gmra.mrb[10].mxu1 %vm645_vm1, %v1441_v37  ;;  %v1445_v52 = vmul.f32 %v2444_v50, %v2132_v41 }
 0x6fa   : > { %v1443_v33 = vmul.f32 %v2442_v40, %v1409_v20  ;;  %2266 = vmatpush3.bf16.msra.mxu1 %v2263_v3  ;;  %v2464_v3 = vpop.eup %2463 }
 0x6fb   : > { %v2466_v47 = vpop.eup %2465  ;;  %v1028_v56 = vmul.f32 %v2464_v3, %v2938_v59 }
 0x6fc   : > { %v2135_v46 = vpop.f32.mrb[28].mxu0  ;;  %2146 = vmatprep.mubr.msk.f32.mxu1 %vm645_vm1, %v1443_v33  ;;  %v2468_v29 = vpop.eup %2467  ;;  %v1030_v11 = vmul.f32 %v2466_v47, %v2944_v60 }
 0x6fd   : > { %v1419_v28 = vpop.f32.mrb[29].mxu0  ;;  %2147 = vmatmul.mubr.msk.f32.gmra.mrb[12].mxu1 %vm645_vm1, %v1445_v52  ;;  %v1449_v6 = vmul.f32 %v2448_v21, %v2135_v46  ;;  %v1032_v58 = vmul.f32 %v2468_v29, %v2942_v38  ;;  %v2469_v38 = vld [vmem:[%s2619_s26 + $0x8] sm:$0xff] }
 0x6fe   : > { %v1447_v55 = vmul.f32 %v2446_v53, %v1419_v28 }
 0x700   : > { %2149 = vmatprep.mubr.msk.f32.mxu1 %vm645_vm1, %v1447_v55 }
 0x701   : > { %2150 = vmatmul.mubr.msk.f32.gmra.mrb[14].mxu1 %vm645_vm1, %v1449_v6 }
 0x702   : > { %2152 = vmatprep.mubr.msk.f32.mxu1 %vm645_vm1, %v1451_v2 }
 0x705   : > { %2153 = vmatmul.mubr.msk.f32.gmra.mrb[16].mxu1 %vm645_vm1, %v1453_v27 }
 0x706   : > { %2159 = vmatprep.mubr.msk.f32.mxu1 %vm645_vm1, %v1018_v42 }
 0x709   : > { %2160 = vmatmul.mubr.msk.f32.vlgmr.msra.gmra.mrb[10].mxu1 %vm645_vm1, %v1020_v48 }
 0x70a   : > { %2162 = vmatprep.mubr.msk.f32.mxu1 %vm645_vm1, %v1022_v16 }
 0x70d   : > { %2163 = vmatmul.mubr.msk.f32.gmra.mrb[12].mxu1 %vm645_vm1, %v1024_v10 }
 0x70e   : > { %2165 = vmatprep.mubr.msk.f32.mxu1 %vm645_vm1, %v1026_v57 }
 0x711   : > { %2166 = vmatmul.mubr.msk.f32.gmra.mrb[14].mxu1 %vm645_vm1, %v1028_v56 }
 0x712   : > { %2168 = vmatprep.mubr.msk.f32.mxu1 %vm645_vm1, %v1030_v11 }
 0x715   : > { %2169 = vmatmul.mubr.msk.f32.gmra.mrb[16].mxu1 %vm645_vm1, %v1032_v58 }
 0x7dc   : > { %v2161_v43 = vpop.f32.mrb[10].mxu1 }
 0x7dd   : > { %v1722_v15 = vadd.f32 %v2161_v43, %v1906_v7  ;;  %v1675_v14 = vpop.f32.mrb[11].mxu1 }
 0x7de   : > { %v1721_v59 = vadd.f32 %v1906_v7, %v1675_v14 }
 0x7df   : > { %v1730_v60 = vadd.f32 %v2469_v38, %v1722_v15 }
 0x7e0   : > { %v1729_v18 = vadd.f32 %v2470_v17, %v1721_v59  ;;  %v2164_v19 = vpop.f32.mrb[12].mxu1 }
 0x7e1   : > { %1738 = vst.msk [vmem:[%s3052_s30 + $0x8] sm:$0xff] %vm331_vm0, %v1730_v60  ;;  %v1724_v45 = vadd.f32 %v2164_v19, %v1906_v7  ;;  %v1685_v22 = vpop.f32.mrb[13].mxu1 }
 0x7e2   : > { %1737 = vst.msk [vmem:[%s3052_s30] sm:$0xff] %vm331_vm0, %v1729_v18  ;;  %v1723_v24 = vadd.f32 %v1906_v7, %v1685_v22 }
 0x7e3   : > { %v1732_v25 = vadd.f32 %v1724_v45, %v2630_v5 }
 0x7e4   : > { %v1731_v26 = vadd.f32 %v1723_v24, %v2623_v1  ;;  %v2167_v30 = vpop.f32.mrb[14].mxu1 }
 0x7e5   : > { %1740 = vst.msk [vmem:[%s3052_s30 + $0x18] sm:$0xff] %vm331_vm0, %v1732_v25  ;;  %v1726_v31 = vadd.f32 %v2167_v30, %v1906_v7  ;;  %v1695_v34 = vpop.f32.mrb[15].mxu1 }
 0x7e6   : > { %1739 = vst.msk [vmem:[%s3052_s30 + $0x10] sm:$0xff] %vm331_vm0, %v1731_v26  ;;  %v1725_v35 = vadd.f32 %v1906_v7, %v1695_v34 }
 0x7e7   : > { %v1734_v36 = vadd.f32 %v1726_v31, %v2639_v9 }
 0x7e8   : > { %v1733_v32 = vadd.f32 %v1725_v35, %v2636_v8  ;;  %v2170_v37 = vpop.f32.mrb[16].mxu1 }
 0x7e9   : > { %1742 = vst.msk [vmem:[%s3052_s30 + $0x28] sm:$0xff] %vm331_vm0, %v1734_v36  ;;  %v1728_v5 = vadd.f32 %v2170_v37, %v1906_v7  ;;  %v1705_v41 = vpop.f32.mrb[17].mxu1 }
 0x7ea   : > { %1741 = vst.msk [vmem:[%s3052_s30 + $0x20] sm:$0xff] %vm331_vm0, %v1733_v32  ;;  %v1727_v1 = vadd.f32 %v1906_v7, %v1705_v41 }
 0x7eb   : > { %v1736_v40 = vadd.f32 %v1728_v5, %v2649_v13 }
 0x7ec   : > { %v1735_v20 = vadd.f32 %v1727_v1, %v2646_v12 }
 0x7ed   : > { %1744 = vst.msk [vmem:[%s3052_s30 + $0x38] sm:$0xff] %vm331_vm0, %v1736_v40 }
 0x7ee   : > { %1743 = vst.msk [vmem:[%s3052_s30 + $0x30] sm:$0xff] %vm331_vm0, %v1735_v20 }
 0x7ef PF: > { %s19_s27 = sadd.s32 1, %s2509_s27  }
 0x7f0   : > { %p16_p3 = scmp.ge.s32.totalorder %s19_s27, 4  }
 0x7f2   :  { %18 = sbr.rel (!%p16_p3) target bundleno = 1 (0x1), region = 88 }
 0x7f9   :  { %1766 = vsyncpa [#allocation3], 1 }
 0x7fa   :  { %1768 = vsyncpa [#allocation3 + $0x1], 1 }

</bundles_post_ra>
